<compile_context>
chip_gen: v5e
topology: v5e:2x2
jax: 0.10.0
libtpu: 0.0.40
codegen_flags: <defaults>
</compile_context>

<pallas_src>
import jax
import jax.numpy as jnp
import numpy as np
from jax.experimental import pallas as pl
from jax.experimental.pallas import tpu as pltpu

EMB = 768                 # emb_dim / config.hidden_size
HEADS = 8                 # num_heads
DEPTH = EMB // HEADS      # 96 (true per-head depth, no padding)
GROUPS = 2                # grid steps / head groups (dual-TC on v7x)
HG = HEADS // GROUPS      # 4 heads per group
GW = HG * DEPTH           # 384 group width (= 3 * 128, lane-aligned output)
SCALE = EMB ** -0.5       # matches the PyTorch module: emb_dim ** -0.5


# ---------------------------------------------------------------------------
# Kernel 1: Q/K/V projection + per-head cross-attention + query-mean pooling.
# Gridded over head groups so weight strips are double-buffered / TC-sharded.
# ---------------------------------------------------------------------------
def cross_attention_pool(cls_last, sym_last, kp):
    """cls_last: [B, S1, EMB] (keys/values), sym_last: [B, S2, EMB] (queries)."""
    B, S1, D = cls_last.shape
    _, S2, _ = sym_last.shape
    assert D == EMB

    # Stack batch into the matmul row dimension (free reshape of contiguous dims).
    sym2d = sym_last.reshape(B * S2, D)
    cls2d = cls_last.reshape(B * S1, D)
    inv_q = 1.0 / S2

    def kernel(sym_ref, cls_ref, wq_ref, bq_ref, wkv_ref, bkv_ref, pooled_ref):
        f32, bf16 = jnp.float32, jnp.bfloat16

        sym = sym_ref[...].astype(bf16)            # [B*S2, EMB] queries
        cls = cls_ref[...].astype(bf16)            # [B*S1, EMB] keys/values

        # Per-group projections (one MXU pass each for the whole batch).
        q_all = jnp.dot(sym, wq_ref[0], preferred_element_type=f32) + bq_ref[0]    # [B*S2, GW]
        kv_all = jnp.dot(cls, wkv_ref[0], preferred_element_type=f32) + bkv_ref[0]  # [B*S1, 2*GW]
        k_all = kv_all[:, :GW]                     # [B*S1, GW]
        v_all = kv_all[:, GW:]                     # [B*S1, GW]

        rows = []
        for b in range(B):                         # tiny; fully unrolled
            qb = q_all[b * S2:(b + 1) * S2, :]
            kb = k_all[b * S1:(b + 1) * S1, :]
            vb = v_all[b * S1:(b + 1) * S1, :]
            parts = []
            for h in range(HG):                    # 4 heads per grid step
                lo = h * DEPTH
                qh = qb[:, lo:lo + DEPTH]          # [S2, 96]
                kh = kb[:, lo:lo + DEPTH]          # [S1, 96]
                vh = vb[:, lo:lo + DEPTH]          # [S1, 96]
                # scores = Q @ K^T
                s = jax.lax.dot_general(qh, kh, (((1,), (1,)), ((), ())),
                                        preferred_element_type=f32) * SCALE
                s = s - jnp.max(s, axis=-1, keepdims=True)
                e = jnp.exp(s)
                p_att = e / jnp.sum(e, axis=-1, keepdims=True)        # [S2, S1]
                # mean over queries commutes with (P @ V): [1,S1] @ [S1,96]
                pbar = jnp.sum(p_att, axis=0, keepdims=True) * inv_q  # [1, S1]
                parts.append(jnp.dot(pbar, vh, preferred_element_type=f32))
            rows.append(jnp.concatenate(parts, axis=-1))              # [1, GW]
        pooled_ref[...] = jnp.concatenate(rows, axis=0)               # [B, GW]

    flops = (2 * (B * S2) * EMB * EMB            # Q projection (all groups)
             + 2 * (B * S1) * EMB * 2 * EMB      # fused K/V projection
             + B * HEADS * 2 * S2 * S1 * DEPTH   # scores
             + B * HEADS * 2 * S1 * DEPTH)       # pooled @ V
    bytes_accessed = (EMB * EMB * 2 + EMB * 2 * EMB * 2      # bf16 weights
                      + (EMB + 2 * EMB) * 4                  # f32 biases
                      + (B * S2 + B * S1) * EMB * 4          # activations in
                      + B * EMB * 4)                         # pooled out
    cost = pl.CostEstimate(flops=flops,
                           transcendentals=B * HEADS * S2 * S1,
                           bytes_accessed=bytes_accessed)

    return pl.pallas_call(
        kernel,
        out_shape=jax.ShapeDtypeStruct((B, EMB), jnp.float32),
        grid=(GROUPS,),
        in_specs=[
            pl.BlockSpec((B * S2, EMB), lambda g: (0, 0)),   # resident across grid
            pl.BlockSpec((B * S1, EMB), lambda g: (0, 0)),   # resident across grid
            pl.BlockSpec((1, EMB, GW), lambda g: (g, 0, 0)),       # wq strip
            pl.BlockSpec((1, 1, GW), lambda g: (g, 0, 0)),         # bq strip
            pl.BlockSpec((1, EMB, 2 * GW), lambda g: (g, 0, 0)),   # wkv strip
            pl.BlockSpec((1, 1, 2 * GW), lambda g: (g, 0, 0)),     # bkv strip
        ],
        out_specs=pl.BlockSpec((B, GW), lambda g: (0, g)),   # lane-dense 384-wide slab
        compiler_params=pltpu.CompilerParams(
            dimension_semantics=("parallel",),
            vmem_limit_bytes=16 << 20),
        cost_estimate=cost,
    )(sym2d, cls2d, kp["wq_g"], kp["bq_g"], kp["wkv_g"], kp["bkv_g"])


# ---------------------------------------------------------------------------
# Kernel 2: folded RobertaClassificationHead (tanh(x @ w12 + b12) @ w3 + b3)
# + sigmoid.  Tiny (≈1.1 MiB weights), gridless.
# ---------------------------------------------------------------------------
def classifier_head(pooled, kp):
    B = pooled.shape[0]

    def kernel(x_ref, w12_ref, b12_ref, w3_ref, b3_ref, out_ref):
        f32, bf16 = jnp.float32, jnp.bfloat16
        h = jnp.tanh(jnp.dot(x_ref[...].astype(bf16), w12_ref[...],
                             preferred_element_type=f32) + b12_ref[...])
        logits = jnp.dot(h.astype(bf16), w3_ref[...],
                         preferred_element_type=f32) + b3_ref[...]
        out_ref[...] = jax.nn.sigmoid(logits)                         # [B, 2]

    def _full(shape):
        return pl.BlockSpec(shape, lambda *_: (0,) * len(shape))

    flops = 2 * B * EMB * EMB + 2 * B * EMB * 2
    bytes_accessed = (EMB * EMB * 2 + EMB * 4 + EMB * 2 * 2 + 2 * 4
                      + B * EMB * 4 + B * 2 * 4)
    cost = pl.CostEstimate(flops=flops, transcendentals=B * (EMB + 2),
                           bytes_accessed=bytes_accessed)

    return pl.pallas_call(
        kernel,
        out_shape=jax.ShapeDtypeStruct((B, 2), jnp.float32),
        in_specs=[_full(pooled.shape), _full(kp["w12"].shape), _full(kp["b12"].shape),
                  _full(kp["w3"].shape), _full(kp["b3"].shape)],
        out_specs=_full((B, 2)),
        compiler_params=pltpu.CompilerParams(vmem_limit_bytes=16 << 20),
        cost_estimate=cost,
    )(pooled, kp["w12"], kp["b12"], kp["w3"], kp["b3"])


def model_forward(cls_last, sym_last, kparams, labels=None):
    pooled = cross_attention_pool(cls_last, sym_last, kparams)   # [B, 768]
    prob = classifier_head(pooled, kparams)                      # [B, 2]
    if labels is not None:
        labels = labels.astype(jnp.float32)
        loss = (1.2 * jnp.log(prob[:, 0] + 1e-10) * labels
                + jnp.log((1.0 - prob)[:, 0] + 1e-10) * (1.0 - labels))
        return -jnp.mean(loss), prob
    return prob


# ---------------------------------------------------------------------------
# One-time weight re-packing: split Q / fused-KV weights into head groups,
# fold the classifier's activation-free w1·w2 pair, cast matrices to bf16.
# ---------------------------------------------------------------------------
def prepare_params(p):
    bf16, f32 = jnp.bfloat16, jnp.float32

    def group_cols(w):            # [in, EMB] -> [GROUPS, in, GW]
        r = w.shape[0]
        return w.reshape(r, GROUPS, GW).transpose(1, 0, 2)

    wq_g = group_cols(p["wq"]).astype(bf16)                              # [G,768,384]
    bq_g = group_cols(p["bq"]).astype(f32)                               # [G,1,384]
    wkv_g = jnp.concatenate([group_cols(p["wk"]), group_cols(p["wv"])],
                            axis=2).astype(bf16)                         # [G,768,768]
    bkv_g = jnp.concatenate([group_cols(p["bk"]), group_cols(p["bv"])],
                            axis=2).astype(f32)                          # [G,1,768]

    # Fold classifier.linear -> classifier.dense (no activation between them;
    # dropout is identity at inference).  Valid for inference only.
    w12 = jnp.dot(p["w1"], p["w2"], preferred_element_type=f32)          # [768,768]
    b12 = jnp.dot(p["b1"], p["w2"], preferred_element_type=f32) + p["b2"]

    return dict(wq_g=wq_g, bq_g=bq_g, wkv_g=wkv_g, bkv_g=bkv_g,
                w12=w12.astype(bf16), b12=b12.astype(f32),
                w3=p["w3"].astype(bf16), b3=p["b3"].astype(f32))


# ---------------------------------------------------------------------------
# Deterministic parameter init (synthetic; matches nn.Linear shapes, f32).
# ---------------------------------------------------------------------------
def init_params(key):
    ks = jax.random.split(key, 12)

    def lin(kw, kb, din, dout):
        w = jax.random.normal(kw, (din, dout), jnp.float32) / np.sqrt(din)
        b = jax.random.normal(kb, (1, dout), jnp.float32) * 0.01
        return w, b

    wq, bq = lin(ks[0], ks[1], EMB, EMB)
    wk, bk = lin(ks[2], ks[3], EMB, EMB)
    wv, bv = lin(ks[4], ks[5], EMB, EMB)
    w1, b1 = lin(ks[6], ks[7], EMB, 2 * EMB)        # classifier.linear
    w2, b2 = lin(ks[8], ks[9], 2 * EMB, EMB)        # classifier.dense
    w3, b3 = lin(ks[10], ks[11], EMB, 2)            # classifier.out_proj
    return dict(wq=wq, bq=bq, wk=wk, bk=bk, wv=wv, bv=bv,
                w1=w1, b1=b1, w2=w2, b2=b2, w3=w3, b3=b3)


# ---------------------------------------------------------------------------
# Pure-JAX f32 reference (mirrors the PyTorch forward exactly; the kernel's
# bf16 weights introduce ~1e-3..1e-2 deviation on the output probabilities).
# ---------------------------------------------------------------------------
def reference(cls_last, sym_last, p):
    Q = sym_last @ p["wq"] + p["bq"]
    K = cls_last @ p["wk"] + p["bk"]
    V = cls_last @ p["wv"] + p["bv"]
    B, S2, D = Q.shape
    S1 = K.shape[1]
    Qh = Q.reshape(B, S2, HEADS, DEPTH).transpose(0, 2, 1, 3)
    Kh = K.reshape(B, S1, HEADS, DEPTH).transpose(0, 2, 1, 3)
    Vh = V.reshape(B, S1, HEADS, DEPTH).transpose(0, 2, 1, 3)
    att = jnp.einsum('bnid,bnjd->bnij', Qh, Kh) * SCALE
    att = jax.nn.softmax(att, axis=-1)
    out = jnp.einsum('bnij,bnjd->bnid', att, Vh)
    out = out.transpose(0, 2, 1, 3).reshape(B, S2, D)
    pooled = jnp.mean(out, axis=1)
    h1 = pooled @ p["w1"] + p["b1"]
    h2 = jnp.tanh(h1 @ p["w2"] + p["b2"])
    logits = h2 @ p["w3"] + p["b3"]
    return jax.nn.sigmoid(logits)


if __name__ == "__main__":
    key = jax.random.PRNGKey(0)
    B, S_CODE, S_SYM = 2, 16, 8
    k1, k2, k3 = jax.random.split(key, 3)
    # "encoder" last hidden states (stand-ins for RoBERTa outputs)
    cls_last = jax.random.normal(k1, (B, S_CODE, EMB), jnp.float32)
    sym_last = jax.random.normal(k2, (B, S_SYM, EMB), jnp.float32)
    params = init_params(k3)
    kparams = prepare_params(params)     # one-time repack (group split + fold + bf16)

    prob = model_forward(cls_last, sym_last, kparams)
    prob = jax.block_until_ready(prob)

    ref = reference(cls_last, sym_last, params)
    assert prob.shape == (B, 2)
    assert np.allclose(np.asarray(prob), np.asarray(ref), atol=2e-2, rtol=2e-2), (
        float(np.max(np.abs(np.asarray(prob) - np.asarray(ref)))))

    print("KERNEL_OK")
</pallas_src>

<mosaic_0001>
module attributes {stable_mosaic.version = 11 : i64} {
  func.func @kernel(%arg0: i32, %arg1: memref<16x768xf32, #tpu.memory_space<vmem>>, %arg2: memref<32x768xf32, #tpu.memory_space<vmem>>, %arg3: memref<1x768x384xbf16, #tpu.memory_space<vmem>>, %arg4: memref<1x1x384xf32, #tpu.memory_space<vmem>>, %arg5: memref<1x768x768xbf16, #tpu.memory_space<vmem>>, %arg6: memref<1x1x768xf32, #tpu.memory_space<vmem>>, %arg7: memref<2x384xf32, #tpu.memory_space<vmem>>) attributes {dimension_semantics = [#tpu.dimension_semantics<parallel>], iteration_bounds = array<i64: 2>, scalar_prefetch = 0 : i64, scratch_operands = 0 : i64, tpu.core_type = #tpu.core_type<tc>, window_params = [{pipeline_mode = #tpu.pipeline_mode<synchronous>, transform_indices = @transform_0, window_bounds = array<i64: 16, 768>}, {pipeline_mode = #tpu.pipeline_mode<synchronous>, transform_indices = @transform_1, window_bounds = array<i64: 32, 768>}, {transform_indices = @transform_2, window_bounds = array<i64: 1, 768, 384>}, {transform_indices = @transform_3, window_bounds = array<i64: 1, 1, 384>}, {transform_indices = @transform_4, window_bounds = array<i64: 1, 768, 768>}, {transform_indices = @transform_5, window_bounds = array<i64: 1, 1, 768>}, {transform_indices = @transform_6, window_bounds = array<i64: 2, 384>}]} {
    %c0 = arith.constant 0 : index
    %c0_0 = arith.constant 0 : index
    %0 = vector.load %arg1[%c0, %c0_0] : memref<16x768xf32, #tpu.memory_space<vmem>>, vector<16x768xf32>
    %1 = arith.truncf %0 : vector<16x768xf32> to vector<16x768xbf16>
    %c0_1 = arith.constant 0 : index
    %c0_2 = arith.constant 0 : index
    %2 = vector.load %arg2[%c0_1, %c0_2] : memref<32x768xf32, #tpu.memory_space<vmem>>, vector<32x768xf32>
    %3 = arith.truncf %2 : vector<32x768xf32> to vector<32x768xbf16>
    %c0_3 = arith.constant 0 : index
    %c0_4 = arith.constant 0 : index
    %c0_5 = arith.constant 0 : index
    %4 = vector.load %arg3[%c0_3, %c0_4, %c0_5] : memref<1x768x384xbf16, #tpu.memory_space<vmem>>, vector<1x768x384xbf16>
    %5 = vector.shape_cast %4 : vector<1x768x384xbf16> to vector<768x384xbf16>
    %cst = arith.constant dense<0.000000e+00> : vector<16x384xf32>
    %6 = tpu.matmul %1, %5, %cst {dimension_numbers = #tpu.dot_dimension_numbers<[1], [0], [0], [1], [0, 0, 1, 1], [], []>} : vector<16x768xbf16>, vector<768x384xbf16>, vector<16x384xf32> -> vector<16x384xf32>
    %c0_6 = arith.constant 0 : index
    %c0_7 = arith.constant 0 : index
    %c0_8 = arith.constant 0 : index
    %7 = vector.load %arg4[%c0_6, %c0_7, %c0_8] : memref<1x1x384xf32, #tpu.memory_space<vmem>>, vector<1x1x384xf32>
    %8 = vector.shape_cast %7 : vector<1x1x384xf32> to vector<1x384xf32>
    %9 = vector.broadcast %8 : vector<1x384xf32> to vector<16x384xf32>
    %10 = arith.addf %6, %9 : vector<16x384xf32>
    %c0_9 = arith.constant 0 : index
    %c0_10 = arith.constant 0 : index
    %c0_11 = arith.constant 0 : index
    %11 = vector.load %arg5[%c0_9, %c0_10, %c0_11] : memref<1x768x768xbf16, #tpu.memory_space<vmem>>, vector<1x768x768xbf16>
    %12 = vector.shape_cast %11 : vector<1x768x768xbf16> to vector<768x768xbf16>
    %cst_12 = arith.constant dense<0.000000e+00> : vector<32x768xf32>
    %13 = tpu.matmul %3, %12, %cst_12 {dimension_numbers = #tpu.dot_dimension_numbers<[1], [0], [0], [1], [0, 0, 1, 1], [], []>} : vector<32x768xbf16>, vector<768x768xbf16>, vector<32x768xf32> -> vector<32x768xf32>
    %c0_13 = arith.constant 0 : index
    %c0_14 = arith.constant 0 : index
    %c0_15 = arith.constant 0 : index
    %14 = vector.load %arg6[%c0_13, %c0_14, %c0_15] : memref<1x1x768xf32, #tpu.memory_space<vmem>>, vector<1x1x768xf32>
    %15 = vector.shape_cast %14 : vector<1x1x768xf32> to vector<1x768xf32>
    %16 = vector.broadcast %15 : vector<1x768xf32> to vector<32x768xf32>
    %17 = arith.addf %13, %16 : vector<32x768xf32>
    %18 = vector.extract_strided_slice %17 {offsets = [0, 0], sizes = [32, 384], strides = [1, 1]} : vector<32x768xf32> to vector<32x384xf32>
    %19 = vector.extract_strided_slice %17 {offsets = [0, 384], sizes = [32, 384], strides = [1, 1]} : vector<32x768xf32> to vector<32x384xf32>
    %20 = vector.extract_strided_slice %10 {offsets = [0, 0], sizes = [8, 384], strides = [1, 1]} : vector<16x384xf32> to vector<8x384xf32>
    %21 = vector.extract_strided_slice %18 {offsets = [0, 0], sizes = [16, 384], strides = [1, 1]} : vector<32x384xf32> to vector<16x384xf32>
    %22 = vector.extract_strided_slice %19 {offsets = [0, 0], sizes = [16, 384], strides = [1, 1]} : vector<32x384xf32> to vector<16x384xf32>
    %23 = vector.extract_strided_slice %20 {offsets = [0, 0], sizes = [8, 96], strides = [1, 1]} : vector<8x384xf32> to vector<8x96xf32>
    %24 = vector.extract_strided_slice %21 {offsets = [0, 0], sizes = [16, 96], strides = [1, 1]} : vector<16x384xf32> to vector<16x96xf32>
    %25 = vector.extract_strided_slice %22 {offsets = [0, 0], sizes = [16, 96], strides = [1, 1]} : vector<16x384xf32> to vector<16x96xf32>
    %cst_16 = arith.constant dense<0.000000e+00> : vector<8x16xf32>
    %26 = tpu.matmul %23, %24, %cst_16 {dimension_numbers = #tpu.dot_dimension_numbers<[1], [1], [0], [0], [0, 0, 1, 0], [], []>} : vector<8x96xf32>, vector<16x96xf32>, vector<8x16xf32> -> vector<8x16xf32>
    %cst_17 = arith.constant 0.0360843912 : f32
    %27 = vector.broadcast %cst_17 : f32 to vector<8x16xf32>
    %28 = arith.mulf %26, %27 : vector<8x16xf32>
    %cst_18 = arith.constant dense<0xFF800000> : vector<8xf32>
    %29 = vector.multi_reduction <maximumf>, %28, %cst_18 [1] : vector<8x16xf32> to vector<8xf32>
    %30 = vector.shape_cast %29 : vector<8xf32> to vector<8x1xf32>
    %31 = vector.broadcast %30 : vector<8x1xf32> to vector<8x16xf32>
    %32 = arith.subf %28, %31 : vector<8x16xf32>
    %33 = math.exp %32 : vector<8x16xf32>
    %cst_19 = arith.constant dense<0.000000e+00> : vector<8xf32>
    %34 = vector.multi_reduction <add>, %33, %cst_19 [1] : vector<8x16xf32> to vector<8xf32>
    %35 = vector.shape_cast %34 : vector<8xf32> to vector<8x1xf32>
    %36 = vector.broadcast %35 : vector<8x1xf32> to vector<8x16xf32>
    %37 = arith.divf %33, %36 : vector<8x16xf32>
    %cst_20 = arith.constant dense<0.000000e+00> : vector<16xf32>
    %38 = vector.multi_reduction <add>, %37, %cst_20 [0] : vector<8x16xf32> to vector<16xf32>
    %39 = vector.shape_cast %38 : vector<16xf32> to vector<1x16xf32>
    %cst_21 = arith.constant 1.250000e-01 : f32
    %40 = vector.broadcast %cst_21 : f32 to vector<1x16xf32>
    %41 = arith.mulf %39, %40 : vector<1x16xf32>
    %cst_22 = arith.constant dense<0.000000e+00> : vector<1x96xf32>
    %42 = tpu.matmul %41, %25, %cst_22 {dimension_numbers = #tpu.dot_dimension_numbers<[1], [0], [0], [1], [0, 0, 1, 1], [], []>} : vector<1x16xf32>, vector<16x96xf32>, vector<1x96xf32> -> vector<1x96xf32>
    %43 = vector.extract_strided_slice %20 {offsets = [0, 96], sizes = [8, 96], strides = [1, 1]} : vector<8x384xf32> to vector<8x96xf32>
    %44 = vector.extract_strided_slice %21 {offsets = [0, 96], sizes = [16, 96], strides = [1, 1]} : vector<16x384xf32> to vector<16x96xf32>
    %45 = vector.extract_strided_slice %22 {offsets = [0, 96], sizes = [16, 96], strides = [1, 1]} : vector<16x384xf32> to vector<16x96xf32>
    %cst_23 = arith.constant dense<0.000000e+00> : vector<8x16xf32>
    %46 = tpu.matmul %43, %44, %cst_23 {dimension_numbers = #tpu.dot_dimension_numbers<[1], [1], [0], [0], [0, 0, 1, 0], [], []>} : vector<8x96xf32>, vector<16x96xf32>, vector<8x16xf32> -> vector<8x16xf32>
    %cst_24 = arith.constant 0.0360843912 : f32
    %47 = vector.broadcast %cst_24 : f32 to vector<8x16xf32>
    %48 = arith.mulf %46, %47 : vector<8x16xf32>
    %cst_25 = arith.constant dense<0xFF800000> : vector<8xf32>
    %49 = vector.multi_reduction <maximumf>, %48, %cst_25 [1] : vector<8x16xf32> to vector<8xf32>
    %50 = vector.shape_cast %49 : vector<8xf32> to vector<8x1xf32>
    %51 = vector.broadcast %50 : vector<8x1xf32> to vector<8x16xf32>
    %52 = arith.subf %48, %51 : vector<8x16xf32>
    %53 = math.exp %52 : vector<8x16xf32>
    %cst_26 = arith.constant dense<0.000000e+00> : vector<8xf32>
    %54 = vector.multi_reduction <add>, %53, %cst_26 [1] : vector<8x16xf32> to vector<8xf32>
    %55 = vector.shape_cast %54 : vector<8xf32> to vector<8x1xf32>
    %56 = vector.broadcast %55 : vector<8x1xf32> to vector<8x16xf32>
    %57 = arith.divf %53, %56 : vector<8x16xf32>
    %cst_27 = arith.constant dense<0.000000e+00> : vector<16xf32>
    %58 = vector.multi_reduction <add>, %57, %cst_27 [0] : vector<8x16xf32> to vector<16xf32>
    %59 = vector.shape_cast %58 : vector<16xf32> to vector<1x16xf32>
    %cst_28 = arith.constant 1.250000e-01 : f32
    %60 = vector.broadcast %cst_28 : f32 to vector<1x16xf32>
    %61 = arith.mulf %59, %60 : vector<1x16xf32>
    %cst_29 = arith.constant dense<0.000000e+00> : vector<1x96xf32>
    %62 = tpu.matmul %61, %45, %cst_29 {dimension_numbers = #tpu.dot_dimension_numbers<[1], [0], [0], [1], [0, 0, 1, 1], [], []>} : vector<1x16xf32>, vector<16x96xf32>, vector<1x96xf32> -> vector<1x96xf32>
    %63 = vector.extract_strided_slice %20 {offsets = [0, 192], sizes = [8, 96], strides = [1, 1]} : vector<8x384xf32> to vector<8x96xf32>
    %64 = vector.extract_strided_slice %21 {offsets = [0, 192], sizes = [16, 96], strides = [1, 1]} : vector<16x384xf32> to vector<16x96xf32>
    %65 = vector.extract_strided_slice %22 {offsets = [0, 192], sizes = [16, 96], strides = [1, 1]} : vector<16x384xf32> to vector<16x96xf32>
    %cst_30 = arith.constant dense<0.000000e+00> : vector<8x16xf32>
    %66 = tpu.matmul %63, %64, %cst_30 {dimension_numbers = #tpu.dot_dimension_numbers<[1], [1], [0], [0], [0, 0, 1, 0], [], []>} : vector<8x96xf32>, vector<16x96xf32>, vector<8x16xf32> -> vector<8x16xf32>
    %cst_31 = arith.constant 0.0360843912 : f32
    %67 = vector.broadcast %cst_31 : f32 to vector<8x16xf32>
    %68 = arith.mulf %66, %67 : vector<8x16xf32>
    %cst_32 = arith.constant dense<0xFF800000> : vector<8xf32>
    %69 = vector.multi_reduction <maximumf>, %68, %cst_32 [1] : vector<8x16xf32> to vector<8xf32>
    %70 = vector.shape_cast %69 : vector<8xf32> to vector<8x1xf32>
    %71 = vector.broadcast %70 : vector<8x1xf32> to vector<8x16xf32>
    %72 = arith.subf %68, %71 : vector<8x16xf32>
    %73 = math.exp %72 : vector<8x16xf32>
    %cst_33 = arith.constant dense<0.000000e+00> : vector<8xf32>
    %74 = vector.multi_reduction <add>, %73, %cst_33 [1] : vector<8x16xf32> to vector<8xf32>
    %75 = vector.shape_cast %74 : vector<8xf32> to vector<8x1xf32>
    %76 = vector.broadcast %75 : vector<8x1xf32> to vector<8x16xf32>
    %77 = arith.divf %73, %76 : vector<8x16xf32>
    %cst_34 = arith.constant dense<0.000000e+00> : vector<16xf32>
    %78 = vector.multi_reduction <add>, %77, %cst_34 [0] : vector<8x16xf32> to vector<16xf32>
    %79 = vector.shape_cast %78 : vector<16xf32> to vector<1x16xf32>
    %cst_35 = arith.constant 1.250000e-01 : f32
    %80 = vector.broadcast %cst_35 : f32 to vector<1x16xf32>
    %81 = arith.mulf %79, %80 : vector<1x16xf32>
    %cst_36 = arith.constant dense<0.000000e+00> : vector<1x96xf32>
    %82 = tpu.matmul %81, %65, %cst_36 {dimension_numbers = #tpu.dot_dimension_numbers<[1], [0], [0], [1], [0, 0, 1, 1], [], []>} : vector<1x16xf32>, vector<16x96xf32>, vector<1x96xf32> -> vector<1x96xf32>
    %83 = vector.extract_strided_slice %20 {offsets = [0, 288], sizes = [8, 96], strides = [1, 1]} : vector<8x384xf32> to vector<8x96xf32>
    %84 = vector.extract_strided_slice %21 {offsets = [0, 288], sizes = [16, 96], strides = [1, 1]} : vector<16x384xf32> to vector<16x96xf32>
    %85 = vector.extract_strided_slice %22 {offsets = [0, 288], sizes = [16, 96], strides = [1, 1]} : vector<16x384xf32> to vector<16x96xf32>
    %cst_37 = arith.constant dense<0.000000e+00> : vector<8x16xf32>
    %86 = tpu.matmul %83, %84, %cst_37 {dimension_numbers = #tpu.dot_dimension_numbers<[1], [1], [0], [0], [0, 0, 1, 0], [], []>} : vector<8x96xf32>, vector<16x96xf32>, vector<8x16xf32> -> vector<8x16xf32>
    %cst_38 = arith.constant 0.0360843912 : f32
    %87 = vector.broadcast %cst_38 : f32 to vector<8x16xf32>
    %88 = arith.mulf %86, %87 : vector<8x16xf32>
    %cst_39 = arith.constant dense<0xFF800000> : vector<8xf32>
    %89 = vector.multi_reduction <maximumf>, %88, %cst_39 [1] : vector<8x16xf32> to vector<8xf32>
    %90 = vector.shape_cast %89 : vector<8xf32> to vector<8x1xf32>
    %91 = vector.broadcast %90 : vector<8x1xf32> to vector<8x16xf32>
    %92 = arith.subf %88, %91 : vector<8x16xf32>
    %93 = math.exp %92 : vector<8x16xf32>
    %cst_40 = arith.constant dense<0.000000e+00> : vector<8xf32>
    %94 = vector.multi_reduction <add>, %93, %cst_40 [1] : vector<8x16xf32> to vector<8xf32>
    %95 = vector.shape_cast %94 : vector<8xf32> to vector<8x1xf32>
    %96 = vector.broadcast %95 : vector<8x1xf32> to vector<8x16xf32>
    %97 = arith.divf %93, %96 : vector<8x16xf32>
    %cst_41 = arith.constant dense<0.000000e+00> : vector<16xf32>
    %98 = vector.multi_reduction <add>, %97, %cst_41 [0] : vector<8x16xf32> to vector<16xf32>
    %99 = vector.shape_cast %98 : vector<16xf32> to vector<1x16xf32>
    %cst_42 = arith.constant 1.250000e-01 : f32
    %100 = vector.broadcast %cst_42 : f32 to vector<1x16xf32>
    %101 = arith.mulf %99, %100 : vector<1x16xf32>
    %cst_43 = arith.constant dense<0.000000e+00> : vector<1x96xf32>
    %102 = tpu.matmul %101, %85, %cst_43 {dimension_numbers = #tpu.dot_dimension_numbers<[1], [0], [0], [1], [0, 0, 1, 1], [], []>} : vector<1x16xf32>, vector<16x96xf32>, vector<1x96xf32> -> vector<1x96xf32>
    %103 = tpu.concatenate %42, %62, %82, %102 in 1 : vector<1x96xf32>, vector<1x96xf32>, vector<1x96xf32>, vector<1x96xf32> -> vector<1x384xf32>
    %104 = vector.extract_strided_slice %10 {offsets = [8, 0], sizes = [8, 384], strides = [1, 1]} : vector<16x384xf32> to vector<8x384xf32>
    %105 = vector.extract_strided_slice %18 {offsets = [16, 0], sizes = [16, 384], strides = [1, 1]} : vector<32x384xf32> to vector<16x384xf32>
    %106 = vector.extract_strided_slice %19 {offsets = [16, 0], sizes = [16, 384], strides = [1, 1]} : vector<32x384xf32> to vector<16x384xf32>
    %107 = vector.extract_strided_slice %104 {offsets = [0, 0], sizes = [8, 96], strides = [1, 1]} : vector<8x384xf32> to vector<8x96xf32>
    %108 = vector.extract_strided_slice %105 {offsets = [0, 0], sizes = [16, 96], strides = [1, 1]} : vector<16x384xf32> to vector<16x96xf32>
    %109 = vector.extract_strided_slice %106 {offsets = [0, 0], sizes = [16, 96], strides = [1, 1]} : vector<16x384xf32> to vector<16x96xf32>
    %cst_44 = arith.constant dense<0.000000e+00> : vector<8x16xf32>
    %110 = tpu.matmul %107, %108, %cst_44 {dimension_numbers = #tpu.dot_dimension_numbers<[1], [1], [0], [0], [0, 0, 1, 0], [], []>} : vector<8x96xf32>, vector<16x96xf32>, vector<8x16xf32> -> vector<8x16xf32>
    %cst_45 = arith.constant 0.0360843912 : f32
    %111 = vector.broadcast %cst_45 : f32 to vector<8x16xf32>
    %112 = arith.mulf %110, %111 : vector<8x16xf32>
    %cst_46 = arith.constant dense<0xFF800000> : vector<8xf32>
    %113 = vector.multi_reduction <maximumf>, %112, %cst_46 [1] : vector<8x16xf32> to vector<8xf32>
    %114 = vector.shape_cast %113 : vector<8xf32> to vector<8x1xf32>
    %115 = vector.broadcast %114 : vector<8x1xf32> to vector<8x16xf32>
    %116 = arith.subf %112, %115 : vector<8x16xf32>
    %117 = math.exp %116 : vector<8x16xf32>
    %cst_47 = arith.constant dense<0.000000e+00> : vector<8xf32>
    %118 = vector.multi_reduction <add>, %117, %cst_47 [1] : vector<8x16xf32> to vector<8xf32>
    %119 = vector.shape_cast %118 : vector<8xf32> to vector<8x1xf32>
    %120 = vector.broadcast %119 : vector<8x1xf32> to vector<8x16xf32>
    %121 = arith.divf %117, %120 : vector<8x16xf32>
    %cst_48 = arith.constant dense<0.000000e+00> : vector<16xf32>
    %122 = vector.multi_reduction <add>, %121, %cst_48 [0] : vector<8x16xf32> to vector<16xf32>
    %123 = vector.shape_cast %122 : vector<16xf32> to vector<1x16xf32>
    %cst_49 = arith.constant 1.250000e-01 : f32
    %124 = vector.broadcast %cst_49 : f32 to vector<1x16xf32>
    %125 = arith.mulf %123, %124 : vector<1x16xf32>
    %cst_50 = arith.constant dense<0.000000e+00> : vector<1x96xf32>
    %126 = tpu.matmul %125, %109, %cst_50 {dimension_numbers = #tpu.dot_dimension_numbers<[1], [0], [0], [1], [0, 0, 1, 1], [], []>} : vector<1x16xf32>, vector<16x96xf32>, vector<1x96xf32> -> vector<1x96xf32>
    %127 = vector.extract_strided_slice %104 {offsets = [0, 96], sizes = [8, 96], strides = [1, 1]} : vector<8x384xf32> to vector<8x96xf32>
    %128 = vector.extract_strided_slice %105 {offsets = [0, 96], sizes = [16, 96], strides = [1, 1]} : vector<16x384xf32> to vector<16x96xf32>
    %129 = vector.extract_strided_slice %106 {offsets = [0, 96], sizes = [16, 96], strides = [1, 1]} : vector<16x384xf32> to vector<16x96xf32>
    %cst_51 = arith.constant dense<0.000000e+00> : vector<8x16xf32>
    %130 = tpu.matmul %127, %128, %cst_51 {dimension_numbers = #tpu.dot_dimension_numbers<[1], [1], [0], [0], [0, 0, 1, 0], [], []>} : vector<8x96xf32>, vector<16x96xf32>, vector<8x16xf32> -> vector<8x16xf32>
    %cst_52 = arith.constant 0.0360843912 : f32
    %131 = vector.broadcast %cst_52 : f32 to vector<8x16xf32>
    %132 = arith.mulf %130, %131 : vector<8x16xf32>
    %cst_53 = arith.constant dense<0xFF800000> : vector<8xf32>
    %133 = vector.multi_reduction <maximumf>, %132, %cst_53 [1] : vector<8x16xf32> to vector<8xf32>
    %134 = vector.shape_cast %133 : vector<8xf32> to vector<8x1xf32>
    %135 = vector.broadcast %134 : vector<8x1xf32> to vector<8x16xf32>
    %136 = arith.subf %132, %135 : vector<8x16xf32>
    %137 = math.exp %136 : vector<8x16xf32>
    %cst_54 = arith.constant dense<0.000000e+00> : vector<8xf32>
    %138 = vector.multi_reduction <add>, %137, %cst_54 [1] : vector<8x16xf32> to vector<8xf32>
    %139 = vector.shape_cast %138 : vector<8xf32> to vector<8x1xf32>
    %140 = vector.broadcast %139 : vector<8x1xf32> to vector<8x16xf32>
    %141 = arith.divf %137, %140 : vector<8x16xf32>
    %cst_55 = arith.constant dense<0.000000e+00> : vector<16xf32>
    %142 = vector.multi_reduction <add>, %141, %cst_55 [0] : vector<8x16xf32> to vector<16xf32>
    %143 = vector.shape_cast %142 : vector<16xf32> to vector<1x16xf32>
    %cst_56 = arith.constant 1.250000e-01 : f32
    %144 = vector.broadcast %cst_56 : f32 to vector<1x16xf32>
    %145 = arith.mulf %143, %144 : vector<1x16xf32>
    %cst_57 = arith.constant dense<0.000000e+00> : vector<1x96xf32>
    %146 = tpu.matmul %145, %129, %cst_57 {dimension_numbers = #tpu.dot_dimension_numbers<[1], [0], [0], [1], [0, 0, 1, 1], [], []>} : vector<1x16xf32>, vector<16x96xf32>, vector<1x96xf32> -> vector<1x96xf32>
    %147 = vector.extract_strided_slice %104 {offsets = [0, 192], sizes = [8, 96], strides = [1, 1]} : vector<8x384xf32> to vector<8x96xf32>
    %148 = vector.extract_strided_slice %105 {offsets = [0, 192], sizes = [16, 96], strides = [1, 1]} : vector<16x384xf32> to vector<16x96xf32>
    %149 = vector.extract_strided_slice %106 {offsets = [0, 192], sizes = [16, 96], strides = [1, 1]} : vector<16x384xf32> to vector<16x96xf32>
    %cst_58 = arith.constant dense<0.000000e+00> : vector<8x16xf32>
    %150 = tpu.matmul %147, %148, %cst_58 {dimension_numbers = #tpu.dot_dimension_numbers<[1], [1], [0], [0], [0, 0, 1, 0], [], []>} : vector<8x96xf32>, vector<16x96xf32>, vector<8x16xf32> -> vector<8x16xf32>
    %cst_59 = arith.constant 0.0360843912 : f32
    %151 = vector.broadcast %cst_59 : f32 to vector<8x16xf32>
    %152 = arith.mulf %150, %151 : vector<8x16xf32>
    %cst_60 = arith.constant dense<0xFF800000> : vector<8xf32>
    %153 = vector.multi_reduction <maximumf>, %152, %cst_60 [1] : vector<8x16xf32> to vector<8xf32>
    %154 = vector.shape_cast %153 : vector<8xf32> to vector<8x1xf32>
    %155 = vector.broadcast %154 : vector<8x1xf32> to vector<8x16xf32>
    %156 = arith.subf %152, %155 : vector<8x16xf32>
    %157 = math.exp %156 : vector<8x16xf32>
    %cst_61 = arith.constant dense<0.000000e+00> : vector<8xf32>
    %158 = vector.multi_reduction <add>, %157, %cst_61 [1] : vector<8x16xf32> to vector<8xf32>
    %159 = vector.shape_cast %158 : vector<8xf32> to vector<8x1xf32>
    %160 = vector.broadcast %159 : vector<8x1xf32> to vector<8x16xf32>
    %161 = arith.divf %157, %160 : vector<8x16xf32>
    %cst_62 = arith.constant dense<0.000000e+00> : vector<16xf32>
    %162 = vector.multi_reduction <add>, %161, %cst_62 [0] : vector<8x16xf32> to vector<16xf32>
    %163 = vector.shape_cast %162 : vector<16xf32> to vector<1x16xf32>
    %cst_63 = arith.constant 1.250000e-01 : f32
    %164 = vector.broadcast %cst_63 : f32 to vector<1x16xf32>
    %165 = arith.mulf %163, %164 : vector<1x16xf32>
    %cst_64 = arith.constant dense<0.000000e+00> : vector<1x96xf32>
    %166 = tpu.matmul %165, %149, %cst_64 {dimension_numbers = #tpu.dot_dimension_numbers<[1], [0], [0], [1], [0, 0, 1, 1], [], []>} : vector<1x16xf32>, vector<16x96xf32>, vector<1x96xf32> -> vector<1x96xf32>
    %167 = vector.extract_strided_slice %104 {offsets = [0, 288], sizes = [8, 96], strides = [1, 1]} : vector<8x384xf32> to vector<8x96xf32>
    %168 = vector.extract_strided_slice %105 {offsets = [0, 288], sizes = [16, 96], strides = [1, 1]} : vector<16x384xf32> to vector<16x96xf32>
    %169 = vector.extract_strided_slice %106 {offsets = [0, 288], sizes = [16, 96], strides = [1, 1]} : vector<16x384xf32> to vector<16x96xf32>
    %cst_65 = arith.constant dense<0.000000e+00> : vector<8x16xf32>
    %170 = tpu.matmul %167, %168, %cst_65 {dimension_numbers = #tpu.dot_dimension_numbers<[1], [1], [0], [0], [0, 0, 1, 0], [], []>} : vector<8x96xf32>, vector<16x96xf32>, vector<8x16xf32> -> vector<8x16xf32>
    %cst_66 = arith.constant 0.0360843912 : f32
    %171 = vector.broadcast %cst_66 : f32 to vector<8x16xf32>
    %172 = arith.mulf %170, %171 : vector<8x16xf32>
    %cst_67 = arith.constant dense<0xFF800000> : vector<8xf32>
    %173 = vector.multi_reduction <maximumf>, %172, %cst_67 [1] : vector<8x16xf32> to vector<8xf32>
    %174 = vector.shape_cast %173 : vector<8xf32> to vector<8x1xf32>
    %175 = vector.broadcast %174 : vector<8x1xf32> to vector<8x16xf32>
    %176 = arith.subf %172, %175 : vector<8x16xf32>
    %177 = math.exp %176 : vector<8x16xf32>
    %cst_68 = arith.constant dense<0.000000e+00> : vector<8xf32>
    %178 = vector.multi_reduction <add>, %177, %cst_68 [1] : vector<8x16xf32> to vector<8xf32>
    %179 = vector.shape_cast %178 : vector<8xf32> to vector<8x1xf32>
    %180 = vector.broadcast %179 : vector<8x1xf32> to vector<8x16xf32>
    %181 = arith.divf %177, %180 : vector<8x16xf32>
    %cst_69 = arith.constant dense<0.000000e+00> : vector<16xf32>
    %182 = vector.multi_reduction <add>, %181, %cst_69 [0] : vector<8x16xf32> to vector<16xf32>
    %183 = vector.shape_cast %182 : vector<16xf32> to vector<1x16xf32>
    %cst_70 = arith.constant 1.250000e-01 : f32
    %184 = vector.broadcast %cst_70 : f32 to vector<1x16xf32>
    %185 = arith.mulf %183, %184 : vector<1x16xf32>
    %cst_71 = arith.constant dense<0.000000e+00> : vector<1x96xf32>
    %186 = tpu.matmul %185, %169, %cst_71 {dimension_numbers = #tpu.dot_dimension_numbers<[1], [0], [0], [1], [0, 0, 1, 1], [], []>} : vector<1x16xf32>, vector<16x96xf32>, vector<1x96xf32> -> vector<1x96xf32>
    %187 = tpu.concatenate %126, %146, %166, %186 in 1 : vector<1x96xf32>, vector<1x96xf32>, vector<1x96xf32>, vector<1x96xf32> -> vector<1x384xf32>
    %188 = tpu.concatenate %103, %187 in 0 : vector<1x384xf32>, vector<1x384xf32> -> vector<2x384xf32>
    %c0_72 = arith.constant 0 : index
    %c0_73 = arith.constant 0 : index
    %189 = vector.load %arg7[%c0_72, %c0_73] : memref<2x384xf32, #tpu.memory_space<vmem>>, vector<2x384xf32>
    tpu.vector_store %arg7[%c0_72, %c0_73], %188 {strides = array<i32>} : memref<2x384xf32, #tpu.memory_space<vmem>>, vector<2x384xf32>,
    return
  }
  func.func @transform_0(%arg0: i32) -> (i32, i32) {
    %c0_i32 = arith.constant 0 : i32
    %c0_i32_0 = arith.constant 0 : i32
    %c0_i32_1 = arith.constant 0 : i32
    return %c0_i32, %c0_i32_0 : i32, i32
  }
  func.func @transform_1(%arg0: i32) -> (i32, i32) {
    %c0_i32 = arith.constant 0 : i32
    %c0_i32_0 = arith.constant 0 : i32
    %c0_i32_1 = arith.constant 0 : i32
    return %c0_i32, %c0_i32_0 : i32, i32
  }
  func.func @transform_2(%arg0: i32) -> (i32, i32, i32) {
    %c0_i32 = arith.constant 0 : i32
    %c0_i32_0 = arith.constant 0 : i32
    %c0_i32_1 = arith.constant 0 : i32
    return %arg0, %c0_i32, %c0_i32_0 : i32, i32, i32
  }
  func.func @transform_3(%arg0: i32) -> (i32, i32, i32) {
    %c0_i32 = arith.constant 0 : i32
    %c0_i32_0 = arith.constant 0 : i32
    %c0_i32_1 = arith.constant 0 : i32
    return %arg0, %c0_i32, %c0_i32_0 : i32, i32, i32
  }
  func.func @transform_4(%arg0: i32) -> (i32, i32, i32) {
    %c0_i32 = arith.constant 0 : i32
    %c0_i32_0 = arith.constant 0 : i32
    %c0_i32_1 = arith.constant 0 : i32
    return %arg0, %c0_i32, %c0_i32_0 : i32, i32, i32
  }
  func.func @transform_5(%arg0: i32) -> (i32, i32, i32) {
    %c0_i32 = arith.constant 0 : i32
    %c0_i32_0 = arith.constant 0 : i32
    %c0_i32_1 = arith.constant 0 : i32
    return %arg0, %c0_i32, %c0_i32_0 : i32, i32, i32
  }
  func.func @transform_6(%arg0: i32) -> (i32, i32) {
    %c0_i32 = arith.constant 0 : i32
    %c0_i32_0 = arith.constant 0 : i32
    return %c0_i32, %arg0 : i32, i32
  }
}

</mosaic_0001>

<bundles_post_ra>
// kernel: tpu_custom_call.1
= control target key start
LH: loop header
LB: loop body
LE: loop exit
PB: predicated region body
PF: predicated region fallthrough
CT: control target
= control target key end

     0   :  { %s9571_s0 = inlined_call_operand.hbm [shape: f32[16,768], index: 0, kind: input, shape index: {}]   ;;  %s9572_s1 = inlined_call_operand.hbm [shape: f32[32,768], index: 1, kind: input, shape index: {}]   ;;  %s9573_s2 = inlined_call_operand.hbm [shape: bf16[2,768,384], index: 2, kind: input, shape index: {}]   ;;  %s9574_s3 = inlined_call_operand.hbm [shape: f32[2,1,384], index: 3, kind: input, shape index: {}]   ;;  %s9575_s4 = inlined_call_operand.hbm [shape: bf16[2,768,768], index: 4, kind: input, shape index: {}]   ;;  %s9576_s5 = inlined_call_operand.hbm [shape: f32[2,1,768], index: 5, kind: input, shape index: {}]   ;;  %s9577_s6 = inlined_call_operand.hbm [shape: f32[2,768], index: 6, kind: output, shape index: {}]  }
   0x1   :  { %9593 = sst [smem:[#allocation33_spill]] %s9571_s0 }
   0x2   :  { %9594 = sst [smem:[#allocation34_spill]] %s9572_s1 }
   0x3   :  { %9595 = sst [smem:[#allocation35_spill]] %s9573_s2 }
   0x4   :  { %11 = vsyncpa [#allocation3], 0 }
   0x5   :  { %12 = vsyncpa [#allocation6], 0 }
   0x6   :  { %13 = vsyncpa [#allocation4], 0 }
   0x7   :  { %15 = vsyncpa [#allocation4 + $0x1], 0  ;;  %s7851_s21 = smov 0   ;;  %s7853_s22 = smov 0  }
   0x8   :  { %s7855_s23 = smov 0   ;;  %s7857_s24 = smov 0  }
   0x9 LB: > { %9596 = sst [smem:[#allocation16_spill]] %s7791_s21  ;;  %s7872_s25 = sadd.s32 4294967295, %s7803_s24   ;;  %s7803_s24 = sphi %s7857_s24, %s9647_s24   ;;  %s7799_s23 = sphi %s7855_s23, %s9649_s23   ;;  %s7795_s22 = sphi %s7853_s22, %s9651_s22   ;;  %s7791_s21 = sphi %s7851_s21, %s9650_s21  }
   0xa   : > { %9597 = sst [smem:[#allocation17_spill]] %s7799_s23  ;;  %s5157_s26 = sadd.s32 4294967294, %s7803_s24  }
   0xb   : > { %s7876_s27 = sadd.s32 1, %s7803_s24   ;;  %s70_s28 = sadd.s32 1, %s7799_s23 }
   0xc   : > { %9598 = sst [smem:[#allocation18_spill]] %s7876_s27  ;;  %s67_s29 = ssub.s32 %s7803_s24, %s7876_s27 }
   0xd   : > { %p77_p0 = scmp.ne.s32.totalorder %s7799_s23, %s7795_s22  ;;  %p68_p1 = scmp.eq.s32.totalorder %s67_s29, 0 }
   0xe   : > { %p78_p2 = scmp.eq.s32.totalorder %s7803_s24, 0  ;;  %p83_p3 = scmp.ne.s32.totalorder %s7795_s22, %s7791_s21 }
   0xf   : > { %p9581_p4 = scmp.eq.s32.totalorder %s7872_s25, 0  ;;  %p185_p7 = scmp.eq.s32.totalorder %s7872_s25, 1 }
  0x10   : > { %s7888_s30 = scalar_select %p68_p1, %s7799_s23, %s70_s28  }
  0x11   : > { %p7890_p5 = por %p78_p2, %p77_p0  ;;  %p7896_p6 = por %p9581_p4, %p83_p3 }
  0x12   : > { %9599 = sst [smem:[#allocation19_spill]] %s7888_s30  ;;  %p191_p8 = scmp.eq.s32.totalorder %s5157_s26, 1 }
  0x13   : > { %p5158_p9 = scmp.ge.s32.totalorder %s7803_s24, 1  ;;  %p198_p10 = scmp.lt.s32.totalorder %s7803_s24, 3 }
  0x14   : > { %p7903_p11 = por %p185_p7, %p77_p0  ;;  %p7907_p12 = por %p191_p8, %p83_p3 }
  0x15   : > { %p7911_p13 = pnand %p5158_p9, %p198_p10  ;;  %s9606_s0 = sld [smem:[#allocation33_spill]] }
  0x16   : > { %s9603_s10 = scalar_select %p7907_p12, 1, 0 }
  0x17   : > { %p7393_p0 = pneg %p7911_p13  ;;  %s7805_s15 = smov [#allocation2]  }
  0x18   : > { %9604 = sst [smem:[#allocation20_spill]] %s9603_s10  ;;  %s211_s16 = sshll.u32 %s7805_s15, 4  ;;  %s212_s16 = int_to_ptr.vmem [resolvable:$true] %s211_s16 }
  0x19   : > { %p7922_p1 = pnand %p7393_p0, %p9581_p4  ;;  %p7419_p3 = scmp.lt.s32.totalorder %s7803_s24, 2 }
  0x1a   : > { %s9578_s18 = smov 768   ;;  %s9579_s19 = smov 48  }
  0x1b   : > { %s209_s14 = sshll.u32 %s9606_s0, 4  ;;  %s239_s20 = sand.u32 1, %s7803_s24   ;;  %s210_s14 = int_to_ptr.hbm [resolvable:$true] %s209_s14 }
  0x1c   : > { %7396 = dma.hbm_to_vmem [thread:$0]  (!%p7922_p1), %s210_s14, 1536, %s212_s16, [#allocation3], %s9578_s18, %s9578_s18, %s9579_s19  }
  0x1d   : > { %s7935_s26 = sand.u32 1, %s7799_s23   ;;  %s7364_s29 = smul.u32 1152, %s7803_s24 }
  0x1e   : > { %s7363_s28 = smul.u32 1152, %s7935_s26  ;;  %p7941_p7 = pnand %p7419_p3, %p7890_p5 }
  0x1f   : > { %s9609_s2 = sld [smem:[#allocation35_spill]]  ;;  %s7365_s18 = smul.u32 3, %s7935_s26 }
  0x20   : > { %s243_s30 = scalar_lea.vmem [#allocation7], %s7363_s28  ;;  %s7949_s19 = scalar_lea.sflag [#allocation3], %s239_s20 }
  0x21   : > { %s251_s14 = sshll.u32 %s243_s30, 4  ;;  %p7583_p8 = pneg %p7941_p7  ;;  %s252_s14 = int_to_ptr.vmem [resolvable:$true] %s251_s14 }
  0x25   : > { %s248_s0 = scalar_lea.hbm %s9609_s2, %s7364_s29  ;;  %s7586_s30 = scalar_lea.hbm %s9609_s2, 2304 }
  0x26   : > { %s249_s16 = sshll.u32 %s248_s0, 4  ;;  %s250_s16 = int_to_ptr.hbm [resolvable:$true] %s249_s16 }
  0x27   : > { %s7579_s23 = sshra.s32 %s250_s16, 4  ;;  %s7580_s23 = int_to_ptr.hbm [resolvable:$true] %s7579_s23 }
  0x28   : > { %s7581_s7 = scalar_lea.hbm %s7580_s23, 1152  ;;  %p7587_p0 = scmp.lt.s32.totalorder %s7580_s23, %s9609_s2 }
  0x29   : > { %p7582_p5 = scmp.ne.s32.totalorder %s7580_s23, %s7581_s7  ;;  %p7588_p3 = scmp.lt.s32.totalorder %s7586_s30, %s7581_s7 }
  0x2b   : > { %p7584_p9 = pnand %p7583_p8, %p7582_p5  ;;  %p7589_p2 = por %p7588_p3, %p7587_p0 }
  0x2d   : > { %p7585_p10 = pneg %p7584_p9 }
  0x2f   : > { %p7590_p4 = pnand %p7589_p2, %p7585_p10 }
  0x31   : > { %7593 = shalt.err (!%p7590_p4)
}
  0x32   : > { %s7808_s20 = smov 192   ;;  %s7809_s15 = smov 12  }
  0x33   : > { %7403 = dma.hbm_to_vmem [thread:$0]  (!%p7941_p7), %s250_s16, 18432, %s252_s14, %s7949_s19, %s7808_s20, %s7808_s20, %s7809_s15  }
  0x34   : > { %s7366_s13 = smul.u32 3, %s7803_s24  ;;  %s265_s29 = scalar_lea.vmem [#allocation8], %s7365_s18 }
  0x35   : > { %s273_s27 = sshll.u32 %s265_s29, 4  ;;  %s7367_s10 = smul.u32 2304, %s7935_s26  ;;  %s274_s27 = int_to_ptr.vmem [resolvable:$true] %s273_s27 }
  0x36   : > { %s269_s7 = scalar_lea.hbm %s9574_s3, %s7366_s13  ;;  %s7368_s28 = smul.u32 2304, %s7803_s24 }
  0x37   : > { %s271_s30 = sshll.u32 %s269_s7, 4  ;;  %s7616_s16 = scalar_lea.hbm %s9574_s3, 6  ;;  %s272_s30 = int_to_ptr.hbm [resolvable:$true] %s271_s30 }
  0x38   : > { %s7609_s2 = sshra.s32 %s272_s30, 4  ;;  %s7610_s2 = int_to_ptr.hbm [resolvable:$true] %s7609_s2 }
  0x39   : > { %s7611_s21 = scalar_lea.hbm %s7610_s2, 3  ;;  %p7617_p9 = scmp.lt.s32.totalorder %s7610_s2, %s9574_s3 }
  0x3a   : > { %p7612_p4 = scmp.ne.s32.totalorder %s7610_s2, %s7611_s21  ;;  %p7618_p10 = scmp.lt.s32.totalorder %s7616_s16, %s7611_s21 }
  0x3c   : > { %p7614_p2 = pnand %p7612_p4, %p7583_p8  ;;  %p7619_p0 = por %p7618_p10, %p7617_p9 }
  0x3e   : > { %p7615_p5 = pneg %p7614_p2 }
  0x40   : > { %p7620_p3 = pnand %p7619_p0, %p7615_p5 }
  0x42   : > { %7623 = shalt.err (!%p7620_p3)
}
  0x43   : > { %7406 = dma.hbm_to_vmem [thread:$0]  (!%p7941_p7), %s272_s30, 48, %s274_s27, %s7949_s19  }
  0x44   : > { %s289_s0 = scalar_lea.hbm %s9575_s4, %s7368_s28  ;;  %s284_s23 = scalar_lea.vmem [#allocation9], %s7367_s10 }
  0x45   : > { %s292_s7 = sshll.u32 %s284_s23, 4  ;;  %s290_s14 = sshll.u32 %s289_s0, 4  ;;  %s293_s7 = int_to_ptr.vmem [resolvable:$true] %s292_s7  ;;  %s291_s14 = int_to_ptr.hbm [resolvable:$true] %s290_s14 }
  0x46   : > { %s9610_s1 = sld [smem:[#allocation34_spill]]  ;;  %s7639_s16 = sshra.s32 %s291_s14, 4  ;;  %s7640_s16 = int_to_ptr.hbm [resolvable:$true] %s7639_s16 }
  0x47   : > { %s7641_s20 = scalar_lea.hbm %s7640_s16, 2304  ;;  %s7646_s10 = scalar_lea.hbm %s9575_s4, 4608 }
  0x48   : > { %p7642_p4 = scmp.ne.s32.totalorder %s7640_s16, %s7641_s20  ;;  %p7647_p9 = scmp.lt.s32.totalorder %s7640_s16, %s9575_s4 }
  0x49   : > { %p7648_p10 = scmp.lt.s32.totalorder %s7646_s10, %s7641_s20 }
  0x4a   : > { %p7644_p2 = pnand %p7642_p4, %p7583_p8 }
  0x4b   : > { %p7649_p0 = por %p7648_p10, %p7647_p9 }
  0x4c   : > { %s223_s21 = sshll.u32 %s9610_s1, 4  ;;  %p7645_p5 = pneg %p7644_p2  ;;  %s224_s21 = int_to_ptr.hbm [resolvable:$true] %s223_s21 }
  0x4e   : > { %p7650_p3 = pnand %p7649_p0, %p7645_p5 }
  0x50   : > { %7653 = shalt.err (!%p7650_p3)
}
  0x51   : > { %s7810_s13 = smov 384   ;;  %s7811_s29 = smov 24  }
  0x52   : > { %7409 = dma.hbm_to_vmem [thread:$0]  (!%p7941_p7), %s291_s14, 36864, %s293_s7, %s7949_s19, %s7810_s13, %s7810_s13, %s7811_s29  }
  0x53   : > { %s7812_s0 = smov [#allocation5]   ;;  %s7369_s18 = smul.u32 6, %s7935_s26 }
  0x54   : > { %s225_s23 = sshll.u32 %s7812_s0, 4  ;;  %s7370_s2 = smul.u32 6, %s7803_s24  ;;  %s226_s23 = int_to_ptr.vmem [resolvable:$true] %s225_s23 }
  0x55   : > { %s9611_s16 = smov 48   ;;  %s9612_s20 = smov 768  }
  0x56   : > { %7399 = dma.hbm_to_vmem [thread:$0]  (!%p7922_p1), %s224_s21, 3072, %s226_s23, [#allocation6], %s9612_s20, %s9612_s20, %s9611_s16  }
  0x57   : > { %s310_s10 = scalar_lea.hbm %s9576_s5, %s7370_s2  ;;  %s306_s15 = scalar_lea.vmem [#allocation10], %s7369_s18 }
  0x58   : > { %s312_s28 = sshll.u32 %s310_s10, 4  ;;  %s314_s1 = sshll.u32 %s306_s15, 4  ;;  %s313_s28 = int_to_ptr.hbm [resolvable:$true] %s312_s28  ;;  %s315_s1 = int_to_ptr.vmem [resolvable:$true] %s314_s1 }
  0x59   : > { %s7699_s7 = sshra.s32 %s313_s28, 4  ;;  %s7706_s21 = scalar_lea.hbm %s9576_s5, 12  ;;  %s7700_s7 = int_to_ptr.hbm [resolvable:$true] %s7699_s7 }
  0x5a   : > { %s7701_s14 = scalar_lea.hbm %s7700_s7, 6  ;;  %p7707_p1 = scmp.lt.s32.totalorder %s7700_s7, %s9576_s5 }
  0x5b   : > { %p7702_p4 = scmp.ne.s32.totalorder %s7700_s7, %s7701_s14  ;;  %p7708_p9 = scmp.lt.s32.totalorder %s7706_s21, %s7701_s14 }
  0x5d   : > { %p7704_p2 = pnand %p7702_p4, %p7583_p8  ;;  %p7709_p10 = por %p7708_p9, %p7707_p1 }
  0x5f   : > { %p7705_p5 = pneg %p7704_p2 }
  0x61   : > { %p7710_p0 = pnand %p7709_p10, %p7705_p5 }
  0x63   : > { %7713 = shalt.err (!%p7710_p0)
}
  0x64   : > { %7412 = dma.hbm_to_vmem [thread:$0]  (!%p7941_p7), %s313_s28, 96, %s315_s1, %s7949_s19  }
  0x65   : > { %323 = sbr.rel (%p7911_p13) target bundleno = 1409 (0x581), region = 44 }
  0x6a   : > { %p9613_p8 = scmp.eq.s32.totalorder %s7872_s25, 0 }
  0x6c   : > { %7774 = dma.done.wait (%p9613_p8), [#allocation3], 1536   ;;  %p9614_p3 = pmov %p9613_p8 }
  0x6e   : > { %7776 = vsyncadd (%p9614_p3), [#allocation3], 4294965760  ;;  %p9615_p4 = pmov %p9614_p3 }
  0x6f   : > { %p9616_p2 = pmov %p9614_p3 }
  0x70   : > { %7778 = dma.done.wait (%p9615_p4), [#allocation6], 3072  }
  0x71   : > { %7780 = vsyncadd (%p9616_p2), [#allocation6], 4294964224  ;;  %s335_s12 = sand.u32 1, %s7872_s25   ;;  %s8035_s1 = sand.u32 1, %s7795_s22  }
  0x72   : > { %s7371_s11 = smul.u32 1152, %s8035_s1  ;;  %s336_s19 = scalar_lea.sflag [#allocation3], %s335_s12 }
  0x74   : > { %s8038_s0 = scalar_lea.vmem [#allocation7], %s7371_s11 }
  0x75   : > { %7782 = dma.done.wait (%p7896_p6), %s336_s19, 55440  }
  0x76   : > { %7784 = vsyncadd (%p7896_p6), %s336_s19, 4294911856  ;;  %v5253_v0 = vld [vmem:[%s8038_s0 + $0xa8] sm:$0xf]  ;;  %v6952_v1 = vld [vmem:[%s8038_s0 + $0xb0] sm:$0xf0]  ;;  %s7373_s8 = smul.u32 2304, %s8035_s1 }
  0x77   : > { %v5349_v2 = vld [vmem:[%s8038_s0 + $0x168] sm:$0xf]  ;;  %v5254_v3 = vor.u32 %v6952_v1, %v5253_v0  ;;  %v6976_v4 = vld [vmem:[%s8038_s0 + $0x170] sm:$0xf0]  ;;  %v5241_v11 = vld [vmem:[%s8038_s0 + $0x90] sm:$0xf] }
  0x78   : > { %v5445_v5 = vld [vmem:[%s8038_s0 + $0x228] sm:$0xf]  ;;  %v7000_v6 = vld [vmem:[%s8038_s0 + $0x230] sm:$0xf0]  ;;  %v5350_v7 = vor.u32 %v6976_v4, %v5349_v2  ;;  %v6949_v13 = vld [vmem:[%s8038_s0 + $0x98] sm:$0xf0] }
  0x79   : > { %v5446_v8 = vor.u32 %v7000_v6, %v5445_v5  ;;  %v5541_v9 = vld [vmem:[%s8038_s0 + $0x2e8] sm:$0xf]  ;;  %v7024_v10 = vld [vmem:[%s8038_s0 + $0x2f0] sm:$0xf0]  ;;  %1437 = vmatpush.bf16.msra.mxu0 %v5254_v3  ;;  %v5337_v14 = vld [vmem:[%s8038_s0 + $0x150] sm:$0xf]  ;;  %v5242_v16 = vor.u32 %v6949_v13, %v5241_v11 }
  0x7a   : > { %v5542_v12 = vor.u32 %v7024_v10, %v5541_v9  ;;  %v6973_v15 = vld [vmem:[%s8038_s0 + $0x158] sm:$0xf0]  ;;  %1451 = vmatpush.bf16.msra.mxu1 %v5350_v7  ;;  %v5433_v18 = vld [vmem:[%s8038_s0 + $0x210] sm:$0xf]  ;;  %v5229_v23 = vld [vmem:[%s8038_s0 + $0x78] sm:$0xf] }
  0x7b   : > { %1465 = vmatpush.bf16.msra.mxu2 %v5446_v8  ;;  %v5338_v17 = vor.u32 %v6973_v15, %v5337_v14  ;;  %v6997_v19 = vld [vmem:[%s8038_s0 + $0x218] sm:$0xf0]  ;;  %v5529_v20 = vld [vmem:[%s8038_s0 + $0x2d0] sm:$0xf]  ;;  %v6946_v24 = vld [vmem:[%s8038_s0 + $0x80] sm:$0xf0] }
  0x7c   : > { %1479 = vmatpush.bf16.msra.mxu3 %v5542_v12  ;;  %v5434_v21 = vor.u32 %v6997_v19, %v5433_v18  ;;  %v7021_v22 = vld [vmem:[%s8038_s0 + $0x2d8] sm:$0xf0]  ;;  %v5325_v26 = vld [vmem:[%s8038_s0 + $0x138] sm:$0xf]  ;;  %v6970_v27 = vld [vmem:[%s8038_s0 + $0x140] sm:$0xf0]  ;;  %v5230_v29 = vor.u32 %v6946_v24, %v5229_v23 }
  0x7d   : > { %v5530_v25 = vor.u32 %v7021_v22, %v5529_v20  ;;  %v5421_v28 = vld [vmem:[%s8038_s0 + $0x1f8] sm:$0xf]  ;;  %1438 = vmatpush.bf16.msra.mxu0 %v5242_v16  ;;  %v6994_v30 = vld [vmem:[%s8038_s0 + $0x200] sm:$0xf0]  ;;  %v5326_v33 = vor.u32 %v6970_v27, %v5325_v26  ;;  %v5217_v35 = vld [vmem:[%s8038_s0 + $0x60] sm:$0xf] }
  0x7e   : > { %v5517_v31 = vld [vmem:[%s8038_s0 + $0x2b8] sm:$0xf]  ;;  %v7018_v32 = vld [vmem:[%s8038_s0 + $0x2c0] sm:$0xf0]  ;;  %1452 = vmatpush.bf16.msra.mxu1 %v5338_v17  ;;  %v5422_v34 = vor.u32 %v6994_v30, %v5421_v28  ;;  %v6943_v36 = vld [vmem:[%s8038_s0 + $0x68] sm:$0xf0] }
  0x7f   : > { %1466 = vmatpush.bf16.msra.mxu2 %v5434_v21  ;;  %v5313_v37 = vld [vmem:[%s8038_s0 + $0x120] sm:$0xf]  ;;  %v5518_v38 = vor.u32 %v7018_v32, %v5517_v31  ;;  %v6967_v39 = vld [vmem:[%s8038_s0 + $0x128] sm:$0xf0]  ;;  %v5218_v44 = vor.u32 %v6943_v36, %v5217_v35  ;;  %v5205_v47 = vld [vmem:[%s8038_s0 + $0x48] sm:$0xf] }
  0x80   : > { %1480 = vmatpush.bf16.msra.mxu3 %v5530_v25  ;;  %v5409_v40 = vld [vmem:[%s8038_s0 + $0x1e0] sm:$0xf]  ;;  %v6991_v41 = vld [vmem:[%s8038_s0 + $0x1e8] sm:$0xf0]  ;;  %v5314_v45 = vor.u32 %v6967_v39, %v5313_v37  ;;  %v6940_v48 = vld [vmem:[%s8038_s0 + $0x50] sm:$0xf0] }
  0x81   : > { %v5505_v42 = vld [vmem:[%s8038_s0 + $0x2a0] sm:$0xf]  ;;  %v7015_v43 = vld [vmem:[%s8038_s0 + $0x2a8] sm:$0xf0]  ;;  %1439 = vmatpush.bf16.msra.mxu0 %v5230_v29  ;;  %v5410_v46 = vor.u32 %v6991_v41, %v5409_v40  ;;  %v5301_v49 = vld [vmem:[%s8038_s0 + $0x108] sm:$0xf]  ;;  %v5206_v56 = vor.u32 %v6940_v48, %v5205_v47 }
  0x82   : > { %1453 = vmatpush.bf16.msra.mxu1 %v5326_v33  ;;  %v5506_v50 = vor.u32 %v7015_v43, %v5505_v42  ;;  %v6964_v51 = vld [vmem:[%s8038_s0 + $0x110] sm:$0xf0]  ;;  %v5397_v52 = vld [vmem:[%s8038_s0 + $0x1c8] sm:$0xf]  ;;  %v5193_v59 = vld [vmem:[%s8038_s0 + $0x30] sm:$0xf] }
  0x83   : > { %1467 = vmatpush.bf16.msra.mxu2 %v5422_v34  ;;  %v6988_v53 = vld [vmem:[%s8038_s0 + $0x1d0] sm:$0xf0]  ;;  %v5493_v54 = vld [vmem:[%s8038_s0 + $0x288] sm:$0xf]  ;;  %v5302_v57 = vor.u32 %v6964_v51, %v5301_v49  ;;  %v6937_v60 = vld [vmem:[%s8038_s0 + $0x38] sm:$0xf0] }
  0x84   : > { %1481 = vmatpush.bf16.msra.mxu3 %v5518_v38  ;;  %v7012_v55 = vld [vmem:[%s8038_s0 + $0x290] sm:$0xf0]  ;;  %v5398_v58 = vor.u32 %v6988_v53, %v5397_v52  ;;  %v5289_v61 = vld [vmem:[%s8038_s0 + $0xf0] sm:$0xf]  ;;  %v6961_v63 = vld [vmem:[%s8038_s0 + $0xf8] sm:$0xf0]  ;;  %v5194_v4 = vor.u32 %v6937_v60, %v5193_v59 }
  0x85   : > { %1440 = vmatpush.bf16.msra.mxu0 %v5218_v44  ;;  %v5494_v62 = vor.u32 %v7012_v55, %v5493_v54  ;;  %v5385_v0 = vld [vmem:[%s8038_s0 + $0x1b0] sm:$0xf]  ;;  %v6985_v1 = vld [vmem:[%s8038_s0 + $0x1b8] sm:$0xf0]  ;;  %v5290_v5 = vor.u32 %v6961_v63, %v5289_v61  ;;  %v5181_v7 = vld [vmem:[%s8038_s0 + $0x18] sm:$0xf] }
  0x86   : > { %1454 = vmatpush.bf16.msra.mxu1 %v5314_v45  ;;  %v5481_v2 = vld [vmem:[%s8038_s0 + $0x270] sm:$0xf]  ;;  %v7009_v3 = vld [vmem:[%s8038_s0 + $0x278] sm:$0xf0]  ;;  %v5386_v6 = vor.u32 %v6985_v1, %v5385_v0  ;;  %v6934_v8 = vld [vmem:[%s8038_s0 + $0x20] sm:$0xf0] }
  0x87   : > { %1468 = vmatpush.bf16.msra.mxu2 %v5410_v46  ;;  %v5277_v9 = vld [vmem:[%s8038_s0 + $0xd8] sm:$0xf]  ;;  %v5482_v10 = vor.u32 %v7009_v3, %v5481_v2  ;;  %v6958_v11 = vld [vmem:[%s8038_s0 + $0xe0] sm:$0xf0]  ;;  %v5182_v16 = vor.u32 %v6934_v8, %v5181_v7  ;;  %v5169_v17 = vld [vmem:[%s8038_s0] sm:$0xf] }
  0x88   : > { %1482 = vmatpush.bf16.msra.mxu3 %v5506_v50  ;;  %v5373_v12 = vld [vmem:[%s8038_s0 + $0x198] sm:$0xf]  ;;  %v6982_v13 = vld [vmem:[%s8038_s0 + $0x1a0] sm:$0xf0]  ;;  %v6931_v18 = vld [vmem:[%s8038_s0 + $0x8] sm:$0xf0]  ;;  %v5278_v19 = vor.u32 %v6958_v11, %v5277_v9 }
  0x89   : > { %1441 = vmatpush.bf16.msra.mxu0 %v5206_v56  ;;  %v5469_v14 = vld [vmem:[%s8038_s0 + $0x258] sm:$0xf]  ;;  %v7006_v15 = vld [vmem:[%s8038_s0 + $0x260] sm:$0xf0]  ;;  %v5374_v20 = vor.u32 %v6982_v13, %v5373_v12  ;;  %v5265_v21 = vld [vmem:[%s8038_s0 + $0xc0] sm:$0xf]  ;;  %v5170_v31 = vor.u32 %v6931_v18, %v5169_v17 }
  0x8a   : > { %1455 = vmatpush.bf16.msra.mxu1 %v5302_v57  ;;  %v6955_v22 = vld [vmem:[%s8038_s0 + $0xc8] sm:$0xf0]  ;;  %v5361_v23 = vld [vmem:[%s8038_s0 + $0x180] sm:$0xf]  ;;  %v5470_v24 = vor.u32 %v7006_v15, %v5469_v14  ;;  %v5637_v28 = vld [vmem:[%s8038_s0 + $0x3a8] sm:$0xf] }
  0x8b   : > { %1469 = vmatpush.bf16.msra.mxu2 %v5398_v58  ;;  %v6979_v25 = vld [vmem:[%s8038_s0 + $0x188] sm:$0xf0]  ;;  %v5457_v26 = vld [vmem:[%s8038_s0 + $0x240] sm:$0xf]  ;;  %v7048_v29 = vld [vmem:[%s8038_s0 + $0x3b0] sm:$0xf0]  ;;  %v5266_v35 = vor.u32 %v6955_v22, %v5265_v21 }
  0x8c   : > { %1483 = vmatpush.bf16.msra.mxu3 %v5494_v62  ;;  %v7003_v27 = vld [vmem:[%s8038_s0 + $0x248] sm:$0xf0]  ;;  %v5733_v30 = vld [vmem:[%s8038_s0 + $0x468] sm:$0xf]  ;;  %v7072_v32 = vld [vmem:[%s8038_s0 + $0x470] sm:$0xf0]  ;;  %v5362_v36 = vor.u32 %v6979_v25, %v5361_v23  ;;  %v5638_v40 = vor.u32 %v7048_v29, %v5637_v28 }
  0x8d   : > { %1442 = vmatpush.bf16.msra.mxu0 %v5194_v4  ;;  %v6951_v33 = vld [vmem:[%s8038_s0 + $0xac] sm:$0xf]  ;;  %v5255_v34 = vld [vmem:[%s8038_s0 + $0xb4] sm:$0xf0]  ;;  %v5458_v39 = vor.u32 %v7003_v27, %v5457_v26  ;;  %v5625_v41 = vld [vmem:[%s8038_s0 + $0x390] sm:$0xf]  ;;  %v5734_v42 = vor.u32 %v7072_v32, %v5733_v30 }
  0x8e   : > { %1456 = vmatpush.bf16.msra.mxu1 %v5290_v5  ;;  %v6975_v37 = vld [vmem:[%s8038_s0 + $0x16c] sm:$0xf]  ;;  %v5351_v38 = vld [vmem:[%s8038_s0 + $0x174] sm:$0xf0]  ;;  %v5258_v43 = vor.u32 %v6951_v33, %v5255_v34  ;;  %v7045_v44 = vld [vmem:[%s8038_s0 + $0x398] sm:$0xf0] }
  0x8f   : > { %1470 = vmatpush.bf16.msra.mxu2 %v5386_v6  ;;  %v5721_v45 = vld [vmem:[%s8038_s0 + $0x450] sm:$0xf]  ;;  %v7069_v46 = vld [vmem:[%s8038_s0 + $0x458] sm:$0xf0]  ;;  %v5354_v47 = vor.u32 %v6975_v37, %v5351_v38  ;;  %v6948_v48 = vld [vmem:[%s8038_s0 + $0x94] sm:$0xf]  ;;  %v5626_v54 = vor.u32 %v7045_v44, %v5625_v41 }
  0x90   : > { %1484 = vmatpush.bf16.msra.mxu3 %v5482_v10  ;;  %v5243_v49 = vld [vmem:[%s8038_s0 + $0x9c] sm:$0xf0]  ;;  %v6972_v50 = vld [vmem:[%s8038_s0 + $0x154] sm:$0xf]  ;;  %v5613_v55 = vld [vmem:[%s8038_s0 + $0x378] sm:$0xf]  ;;  %v5722_v58 = vor.u32 %v7069_v46, %v5721_v45 }
  0x91   : > { %1443 = vmatpush.bf16.msra.mxu0 %v5182_v16  ;;  %v5339_v51 = vld [vmem:[%s8038_s0 + $0x15c] sm:$0xf0]  ;;  %v421_v53 = vld [vmem:[#allocation2 + $0x30] sm:$0xff]  ;;  %v7042_v56 = vld [vmem:[%s8038_s0 + $0x380] sm:$0xf0]  ;;  %v5246_v59 = vor.u32 %v6948_v48, %v5243_v49  ;;  %s8331_s23 = scalar_lea.vmem [#allocation9], %s7373_s8 }
  0x92   : > { %1457 = vmatpush.bf16.msra.mxu1 %v5278_v19  ;;  %v415_v52 = vld [vmem:[#allocation2] sm:$0xff]  ;;  %v5709_v60 = vld [vmem:[%s8038_s0 + $0x438] sm:$0xf]  ;;  %v6945_v62 = vld [vmem:[%s8038_s0 + $0x7c] sm:$0xf]  ;;  %v5342_v63 = vor.u32 %v6972_v50, %v5339_v51  ;;  %v5614_v7 = vor.u32 %v7042_v56, %v5613_v55  ;;  %s7372_s18 = smul.u32 3, %s8035_s1 }
  0x93   : > { %1471 = vmatpush.bf16.msra.mxu2 %v5374_v20  ;;  %v8126_v57 = vpack.c.bf16 %v421_v53, %v415_v52  ;;  %v7066_v61 = vld [vmem:[%s8038_s0 + $0x440] sm:$0xf0]  ;;  %v5231_v0 = vld [vmem:[%s8038_s0 + $0x84] sm:$0xf0]  ;;  %v422_v2 = vld [vmem:[#allocation2 + $0x38] sm:$0xff]  ;;  %s7813_s16 = smov 32  }
  0x94   : > { %1485 = vmatpush.bf16.msra.mxu3 %v5470_v24  ;;  %v416_v1 = vld [vmem:[#allocation2 + $0x8] sm:$0xff]  ;;  %v6969_v3 = vld [vmem:[%s8038_s0 + $0x13c] sm:$0xf]  ;;  %v5601_v5 = vld [vmem:[%s8038_s0 + $0x360] sm:$0xf]  ;;  %v5710_v11 = vor.u32 %v7066_v61, %v5709_v60  ;;  %v5234_v12 = vor.u32 %v6945_v62, %v5231_v0  ;;  %s349_s2 = scalar_lea.vmem [#allocation8], %s7372_s18 }
  0x95   : > { %1444 = vmatpush.bf16.msra.mxu0 %v5170_v31  ;;  %v5327_v4 = vld [vmem:[%s8038_s0 + $0x144] sm:$0xf0]  ;;  %v8136_v6 = vpack.c.bf16 %v422_v2, %v416_v1  ;;  %v7039_v8 = vld [vmem:[%s8038_s0 + $0x368] sm:$0xf0]  ;;  %v5697_v9 = vld [vmem:[%s8038_s0 + $0x420] sm:$0xf] }
  0x96   : > { %1458 = vmatpush.bf16.msra.mxu1 %v5266_v35  ;;  %v7063_v10 = vld [vmem:[%s8038_s0 + $0x428] sm:$0xf0]  ;;  %v6942_v13 = vld [vmem:[%s8038_s0 + $0x64] sm:$0xf]  ;;  %v5219_v14 = vld [vmem:[%s8038_s0 + $0x6c] sm:$0xf0]  ;;  %v5330_v16 = vor.u32 %v6969_v3, %v5327_v4  ;;  %v5602_v24 = vor.u32 %v7039_v8, %v5601_v5 }
  0x97   : > { %1472 = vmatpush.bf16.msra.mxu2 %v5362_v36  ;;  %v417_v15 = vld [vmem:[#allocation2 + $0x10] sm:$0xff]  ;;  %v423_v17 = vld [vmem:[#allocation2 + $0x40] sm:$0xff]  ;;  %v418_v18 = vld [vmem:[#allocation2 + $0x18] sm:$0xff]  ;;  %v5698_v25 = vor.u32 %v7063_v10, %v5697_v9  ;;  %v5222_v26 = vor.u32 %v6942_v13, %v5219_v14  ;;  %s7814_s20 = smov 64   ;;  %s7374_s27 = smul.u32 6, %s8035_s1  ;;  %vm4115_vm0 = vcmask 785408  }
  0x98   : > { %1486 = vmatpush.bf16.msra.mxu3 %v5458_v39  ;;  %1445 = vmatmul.bf16.vlgmr.msra.gmra.mxu0 %v8126_v57  ;;  %v424_v19 = vld [vmem:[#allocation2 + $0x48] sm:$0xff]  ;;  %v6966_v20 = vld [vmem:[%s8038_s0 + $0x124] sm:$0xf]  ;;  %v5315_v21 = vld [vmem:[%s8038_s0 + $0x12c] sm:$0xf0]  ;;  %v8146_v22 = vpack.c.bf16 %v423_v17, %v417_v15  ;;  %s7815_s10 = smov 96  }
  0x99   : > { %1493 = vmatpush.bf16.msrb.mxu0 %v5638_v40  ;;  %1459 = vmatmul.bf16.vlgmr.msra.gmra.mxu1 %v8136_v6  ;;  %v8148_v23 = vpack.c.bf16 %v424_v19, %v418_v18  ;;  %v5589_v27 = vld [vmem:[%s8038_s0 + $0x348] sm:$0xf]  ;;  %v7036_v28 = vld [vmem:[%s8038_s0 + $0x350] sm:$0xf0]  ;;  %v5318_v30 = vor.u32 %v6966_v20, %v5315_v21  ;;  %v6939_v32 = vld [vmem:[%s8038_s0 + $0x4c] sm:$0xf] }
  0x9a   : > { %1507 = vmatpush.bf16.msrb.mxu1 %v5734_v42  ;;  %v5685_v29 = vld [vmem:[%s8038_s0 + $0x408] sm:$0xf]  ;;  %v7060_v31 = vld [vmem:[%s8038_s0 + $0x410] sm:$0xf0]  ;;  %v5207_v33 = vld [vmem:[%s8038_s0 + $0x54] sm:$0xf0]  ;;  %1473 = vmatmul.bf16.vlgmr.msra.gmra.mxu2 %v8146_v22  ;;  %v5590_v36 = vor.u32 %v7036_v28, %v5589_v27 }
  0x9b   : > { %1521 = vmatpush.bf16.msrb.mxu2 %v5258_v43  ;;  %v6963_v34 = vld [vmem:[%s8038_s0 + $0x10c] sm:$0xf]  ;;  %v5303_v35 = vld [vmem:[%s8038_s0 + $0x114] sm:$0xf0]  ;;  %1487 = vmatmul.bf16.vlgmr.msra.gmra.mxu3 %v8148_v23  ;;  %v5686_v37 = vor.u32 %v7060_v31, %v5685_v29  ;;  %v5210_v38 = vor.u32 %v6939_v32, %v5207_v33  ;;  %v5577_v39 = vld [vmem:[%s8038_s0 + $0x330] sm:$0xf] }
  0x9c   : > { %1535 = vmatpush.bf16.msrb.mxu3 %v5354_v47  ;;  %v7033_v40 = vld [vmem:[%s8038_s0 + $0x338] sm:$0xf0]  ;;  %v5673_v41 = vld [vmem:[%s8038_s0 + $0x3f0] sm:$0xf]  ;;  %v5306_v42 = vor.u32 %v6963_v34, %v5303_v35  ;;  %v6936_v44 = vld [vmem:[%s8038_s0 + $0x34] sm:$0xf] }
  0x9d   : > { %1494 = vmatpush.bf16.msrb.mxu0 %v5626_v54  ;;  %v7057_v43 = vld [vmem:[%s8038_s0 + $0x3f8] sm:$0xf0]  ;;  %v5195_v45 = vld [vmem:[%s8038_s0 + $0x3c] sm:$0xf0]  ;;  %v6960_v46 = vld [vmem:[%s8038_s0 + $0xf4] sm:$0xf]  ;;  %v5578_v48 = vor.u32 %v7033_v40, %v5577_v39 }
  0x9e   : > { %1508 = vmatpush.bf16.msrb.mxu1 %v5722_v58  ;;  %v5291_v47 = vld [vmem:[%s8038_s0 + $0xfc] sm:$0xf0]  ;;  %v5674_v49 = vor.u32 %v7057_v43, %v5673_v41  ;;  %v5198_v50 = vor.u32 %v6936_v44, %v5195_v45  ;;  %v5565_v51 = vld [vmem:[%s8038_s0 + $0x318] sm:$0xf]  ;;  %v7030_v52 = vld [vmem:[%s8038_s0 + $0x320] sm:$0xf0] }
  0x9f   : > { %1522 = vmatpush.bf16.msrb.mxu2 %v5246_v59  ;;  %v5661_v53 = vld [vmem:[%s8038_s0 + $0x3d8] sm:$0xf]  ;;  %v5294_v54 = vor.u32 %v6960_v46, %v5291_v47  ;;  %v7054_v55 = vld [vmem:[%s8038_s0 + $0x3e0] sm:$0xf0]  ;;  %v6933_v56 = vld [vmem:[%s8038_s0 + $0x1c] sm:$0xf]  ;;  %v5566_v61 = vor.u32 %v7030_v52, %v5565_v51 }
  0xa0   : > { %1536 = vmatpush.bf16.msrb.mxu3 %v5342_v63  ;;  %v5183_v58 = vld [vmem:[%s8038_s0 + $0x24] sm:$0xf0]  ;;  %v6957_v59 = vld [vmem:[%s8038_s0 + $0xdc] sm:$0xf]  ;;  %v5553_v62 = vld [vmem:[%s8038_s0 + $0x300] sm:$0xf]  ;;  %v5662_v1 = vor.u32 %v7054_v55, %v5661_v53 }
  0xa1   : > { %1495 = vmatpush.bf16.msrb.mxu0 %v5614_v7  ;;  %v5279_v60 = vld [vmem:[%s8038_s0 + $0xe4] sm:$0xf0]  ;;  %v7027_v63 = vld [vmem:[%s8038_s0 + $0x308] sm:$0xf0]  ;;  %v5649_v0 = vld [vmem:[%s8038_s0 + $0x3c0] sm:$0xf]  ;;  %v5186_v2 = vor.u32 %v6933_v56, %v5183_v58 }
  0xa2   : > { %1509 = vmatpush.bf16.msrb.mxu1 %v5710_v11  ;;  %v7051_v3 = vld [vmem:[%s8038_s0 + $0x3c8] sm:$0xf0]  ;;  %v6930_v4 = vld [vmem:[%s8038_s0 + $0x4] sm:$0xf]  ;;  %v5171_v5 = vld [vmem:[%s8038_s0 + $0xc] sm:$0xf0]  ;;  %v5282_v7 = vor.u32 %v6957_v59, %v5279_v60  ;;  %v5554_v14 = vor.u32 %v7027_v63, %v5553_v62 }
  0xa3   : > { %1523 = vmatpush.bf16.msrb.mxu2 %v5234_v12  ;;  %v6954_v8 = vld [vmem:[%s8038_s0 + $0xc4] sm:$0xf]  ;;  %v5267_v9 = vld [vmem:[%s8038_s0 + $0xcc] sm:$0xf0]  ;;  %v6999_v10 = vld [vmem:[%s8038_s0 + $0x22c] sm:$0xf]  ;;  %v5650_v18 = vor.u32 %v7051_v3, %v5649_v0  ;;  %v5174_v19 = vor.u32 %v6930_v4, %v5171_v5 }
  0xa4   : > { %1537 = vmatpush.bf16.msrb.mxu3 %v5330_v16  ;;  %v5447_v11 = vld [vmem:[%s8038_s0 + $0x234] sm:$0xf0]  ;;  %v7023_v12 = vld [vmem:[%s8038_s0 + $0x2ec] sm:$0xf]  ;;  %v419_v21 = vld [vmem:[#allocation2 + $0x20] sm:$0xff]  ;;  %s8840_s30 = scalar_lea.vmem [#allocation10], %s7374_s27 }
  0xa5   : > { %1496 = vmatpush.bf16.msrb.mxu0 %v5602_v24  ;;  %v5543_v13 = vld [vmem:[%s8038_s0 + $0x2f4] sm:$0xf0]  ;;  %v7047_v15 = vld [vmem:[%s8038_s0 + $0x3ac] sm:$0xf]  ;;  %v425_v24 = vld [vmem:[#allocation2 + $0x50] sm:$0xff]  ;;  %vm4207_vm1 = vcmask 261120  }
  0xa6   : > { %1510 = vmatpush.bf16.msrb.mxu1 %v5698_v25  ;;  %v5639_v16 = vld [vmem:[%s8038_s0 + $0x3b4] sm:$0xf0]  ;;  %v7071_v17 = vld [vmem:[%s8038_s0 + $0x46c] sm:$0xf]  ;;  %v5270_v25 = vor.u32 %v6954_v8, %v5267_v9  ;;  %v5546_v29 = vor.u32 %v7023_v12, %v5543_v13  ;;  %v6996_v31 = vld [vmem:[%s8038_s0 + $0x214] sm:$0xf]  ;;  %v8195_v35 = vpack.c.bf16 %v425_v24, %v419_v21 }
  0xa7   : > { %1524 = vmatpush.bf16.msrb.mxu2 %v5222_v26  ;;  %v5735_v20 = vld [vmem:[%s8038_s0 + $0x474] sm:$0xf0]  ;;  %v5450_v26 = vor.u32 %v6999_v10, %v5447_v11  ;;  %v420_v27 = vld [vmem:[#allocation2 + $0x28] sm:$0xff]  ;;  %v5435_v32 = vld [vmem:[%s8038_s0 + $0x21c] sm:$0xf0]  ;;  %vm4324_vm2 = vcmask 523264  }
  0xa8   : > { %1538 = vmatpush.bf16.msrb.mxu3 %v5318_v30  ;;  %v426_v28 = vld [vmem:[#allocation2 + $0x58] sm:$0xff]  ;;  %v5642_v30 = vor.u32 %v7047_v15, %v5639_v16  ;;  %v7020_v33 = vld [vmem:[%s8038_s0 + $0x2d4] sm:$0xf]  ;;  %v5738_v34 = vor.u32 %v7071_v17, %v5735_v20  ;;  %v5723_v41 = vld [vmem:[%s8038_s0 + $0x45c] sm:$0xf0]  ;;  %vm4146_vm3 = vcmask 130048  }
  0xa9   : > { %1497 = vmatpush.bf16.msrb.mxu0 %v5590_v36  ;;  %v5531_v36 = vld [vmem:[%s8038_s0 + $0x2dc] sm:$0xf0]  ;;  %v8200_v39 = vpack.c.bf16 %v426_v28, %v420_v27  ;;  %v7068_v40 = vld [vmem:[%s8038_s0 + $0x454] sm:$0xf]  ;;  %v6993_v45 = vld [vmem:[%s8038_s0 + $0x1fc] sm:$0xf] }
  0xaa   : > { %1511 = vmatpush.bf16.msrb.mxu1 %v5686_v37  ;;  %v7044_v37 = vld [vmem:[%s8038_s0 + $0x394] sm:$0xf]  ;;  %v5534_v43 = vor.u32 %v7020_v33, %v5531_v36  ;;  %v5423_v46 = vld [vmem:[%s8038_s0 + $0x204] sm:$0xf0]  ;;  %v7017_v47 = vld [vmem:[%s8038_s0 + $0x2bc] sm:$0xf] }
  0xab   : > { %1525 = vmatpush.bf16.msrb.mxu2 %v5210_v38  ;;  %v5627_v38 = vld [vmem:[%s8038_s0 + $0x39c] sm:$0xf0]  ;;  %v5615_v51 = vld [vmem:[%s8038_s0 + $0x384] sm:$0xf0]  ;;  %v7065_v52 = vld [vmem:[%s8038_s0 + $0x43c] sm:$0xf] }
  0xac   : > { %1539 = vmatpush.bf16.msrb.mxu3 %v5306_v42  ;;  %v5438_v42 = vor.u32 %v6996_v31, %v5435_v32  ;;  %v5630_v44 = vor.u32 %v7044_v37, %v5627_v38  ;;  %v5711_v53 = vld [vmem:[%s8038_s0 + $0x444] sm:$0xf0]  ;;  %v6990_v58 = vld [vmem:[%s8038_s0 + $0x1e4] sm:$0xf]  ;;  %v5411_v59 = vld [vmem:[%s8038_s0 + $0x1ec] sm:$0xf0] }
  0xad   : > { %1498 = vmatpush.bf16.msrb.mxu0 %v5578_v48  ;;  %v5726_v48 = vor.u32 %v7068_v40, %v5723_v41  ;;  %v7014_v60 = vld [vmem:[%s8038_s0 + $0x2a4] sm:$0xf]  ;;  %v5507_v62 = vld [vmem:[%s8038_s0 + $0x2ac] sm:$0xf0]  ;;  %v5414_v3 = vor.u32 %v6990_v58, %v5411_v59  ;;  %v5399_v8 = vld [vmem:[%s8038_s0 + $0x1d4] sm:$0xf0] }
  0xae   : > { %1512 = vmatpush.bf16.msrb.mxu1 %v5674_v49  ;;  %v5519_v49 = vld [vmem:[%s8038_s0 + $0x2c4] sm:$0xf0]  ;;  %v7038_v63 = vld [vmem:[%s8038_s0 + $0x364] sm:$0xf]  ;;  %v5603_v0 = vld [vmem:[%s8038_s0 + $0x36c] sm:$0xf0]  ;;  %v5510_v4 = vor.u32 %v7014_v60, %v5507_v62 }
  0xaf   : > { %1526 = vmatpush.bf16.msrb.mxu2 %v5198_v50  ;;  %v7041_v50 = vld [vmem:[%s8038_s0 + $0x37c] sm:$0xf]  ;;  %v5522_v55 = vor.u32 %v7017_v47, %v5519_v49  ;;  %v5606_v5 = vor.u32 %v7038_v63, %v5603_v0  ;;  %v7011_v9 = vld [vmem:[%s8038_s0 + $0x28c] sm:$0xf]  ;;  %v5495_v11 = vld [vmem:[%s8038_s0 + $0x294] sm:$0xf0] }
  0xb0   : > { %1540 = vmatpush.bf16.msrb.mxu3 %v5294_v54  ;;  %v5426_v54 = vor.u32 %v6993_v45, %v5423_v46  ;;  %v5618_v56 = vor.u32 %v7041_v50, %v5615_v51  ;;  %v7035_v12 = vld [vmem:[%s8038_s0 + $0x34c] sm:$0xf]  ;;  %v5591_v13 = vld [vmem:[%s8038_s0 + $0x354] sm:$0xf0]  ;;  %v5498_v17 = vor.u32 %v7011_v9, %v5495_v11  ;;  %v5387_v20 = vld [vmem:[%s8038_s0 + $0x1bc] sm:$0xf0] }
  0xb1   : > { %1499 = vmatpush.bf16.msrb.mxu0 %v5566_v61  ;;  %v5714_v61 = vor.u32 %v7065_v52, %v5711_v53  ;;  %v5687_v15 = vld [vmem:[%s8038_s0 + $0x414] sm:$0xf0]  ;;  %v7008_v21 = vld [vmem:[%s8038_s0 + $0x274] sm:$0xf]  ;;  %v5579_v27 = vld [vmem:[%s8038_s0 + $0x33c] sm:$0xf0] }
  0xb2   : > { %1513 = vmatpush.bf16.msrb.mxu1 %v5662_v1  ;;  %v7062_v1 = vld [vmem:[%s8038_s0 + $0x424] sm:$0xf]  ;;  %v7056_v28 = vld [vmem:[%s8038_s0 + $0x3f4] sm:$0xf]  ;;  %v6981_v33 = vld [vmem:[%s8038_s0 + $0x19c] sm:$0xf] }
  0xb3   : > { %1527 = vmatpush.bf16.msrb.mxu2 %v5186_v2  ;;  %v5699_v2 = vld [vmem:[%s8038_s0 + $0x42c] sm:$0xf0]  ;;  %v7005_v36 = vld [vmem:[%s8038_s0 + $0x25c] sm:$0xf]  ;;  %v5471_v38 = vld [vmem:[%s8038_s0 + $0x264] sm:$0xf0] }
  0xb4   : > { %1541 = vmatpush.bf16.msrb.mxu3 %v5282_v7  ;;  %v6987_v7 = vld [vmem:[%s8038_s0 + $0x1cc] sm:$0xf]  ;;  %v5702_v10 = vor.u32 %v7062_v1, %v5699_v2  ;;  %v7029_v40 = vld [vmem:[%s8038_s0 + $0x31c] sm:$0xf]  ;;  %v5567_v41 = vld [vmem:[%s8038_s0 + $0x324] sm:$0xf0]  ;;  %v5474_v47 = vor.u32 %v7005_v36, %v5471_v38 }
  0xb5   : > { %1500 = vmatpush.bf16.msrb.mxu0 %v5554_v14  ;;  %v7059_v14 = vld [vmem:[%s8038_s0 + $0x40c] sm:$0xf]  ;;  %v5402_v16 = vor.u32 %v6987_v7, %v5399_v8  ;;  %v6978_v45 = vld [vmem:[%s8038_s0 + $0x184] sm:$0xf]  ;;  %v5363_v46 = vld [vmem:[%s8038_s0 + $0x18c] sm:$0xf0] }
  0xb6   : > { %1514 = vmatpush.bf16.msrb.mxu1 %v5650_v18  ;;  %v5594_v18 = vor.u32 %v7035_v12, %v5591_v13  ;;  %v5690_v24 = vor.u32 %v7059_v14, %v5687_v15  ;;  %v7002_v49 = vld [vmem:[%s8038_s0 + $0x244] sm:$0xf]  ;;  %v5459_v50 = vld [vmem:[%s8038_s0 + $0x24c] sm:$0xf0]  ;;  %v6953_v58 = vld [vmem:[%s8038_s0 + $0xb8] sm:$0xf0]  ;;  %v5366_v60 = vor.u32 %v6978_v45, %v5363_v46 }
  0xb7   : > { %1528 = vmatpush.bf16.msrb.mxu2 %v5174_v19  ;;  %v6984_v19 = vld [vmem:[%s8038_s0 + $0x1b4] sm:$0xf]  ;;  %v7026_v51 = vld [vmem:[%s8038_s0 + $0x304] sm:$0xf]  ;;  %v5555_v53 = vld [vmem:[%s8038_s0 + $0x30c] sm:$0xf0]  ;;  %v5462_v0 = vor.u32 %v7002_v49, %v5459_v50 }
  0xb8   : > { %1542 = vmatpush.bf16.msrb.mxu3 %v5270_v25  ;;  %1501 = vmatmul.bf16.vlgmr.msrb.gmra.mxu0 %v8195_v35  ;;  %v5483_v25 = vld [vmem:[%s8038_s0 + $0x27c] sm:$0xf0]  ;;  %v5357_v59 = vld [vmem:[%s8038_s0 + $0x170] sm:$0xf]  ;;  %v7001_v63 = vld [vmem:[%s8038_s0 + $0x238] sm:$0xf0]  ;;  %v5558_v1 = vor.u32 %v7026_v51, %v5555_v53 }
  0xb9   : > { %1549 = vmatpush.bf16.msra.mxu0 %v5450_v26  ;;  %1515 = vmatmul.bf16.vlgmr.msrb.gmra.mxu1 %v8200_v39  ;;  %v7032_v26 = vld [vmem:[%s8038_s0 + $0x334] sm:$0xf]  ;;  %v5486_v31 = vor.u32 %v7008_v21, %v5483_v25  ;;  %v5453_v62 = vld [vmem:[%s8038_s0 + $0x230] sm:$0xf]  ;;  %v5249_v9 = vld [vmem:[%s8038_s0 + $0x98] sm:$0xf] }
  0xba   : > { %1563 = vmatpush.bf16.msra.mxu1 %v5546_v29  ;;  %1529 = vmatmul.bf16.vlgmr.msrb.gmra.mxu2 %v8126_v57  ;;  %v5675_v29 = vld [vmem:[%s8038_s0 + $0x3fc] sm:$0xf0]  ;;  %v5582_v32 = vor.u32 %v7032_v26, %v5579_v27  ;;  %v5549_v2 = vld [vmem:[%s8038_s0 + $0x2f0] sm:$0xf]  ;;  %v5454_v8 = vor.u32 %v7001_v63, %v5453_v62  ;;  %v5345_v11 = vld [vmem:[%s8038_s0 + $0x158] sm:$0xf] }
  0xbb   : > { %1577 = vmatpush.bf16.msra.mxu2 %v5642_v30  ;;  %1543 = vmatmul.bf16.vlgmr.msrb.gmra.mxu3 %v8136_v6  ;;  %v5390_v30 = vor.u32 %v6984_v19, %v5387_v20  ;;  %v5678_v37 = vor.u32 %v7056_v28, %v5675_v29  ;;  %v6974_v13 = vld [vmem:[%s8038_s0 + $0x160] sm:$0xf0]  ;;  %v5441_v14 = vld [vmem:[%s8038_s0 + $0x218] sm:$0xf]  ;;  %v5237_v21 = vld [vmem:[%s8038_s0 + $0x80] sm:$0xf] }
  0xbc   : > { %1591 = vmatpush.bf16.msra.mxu3 %v5738_v34  ;;  %v5375_v34 = vld [vmem:[%s8038_s0 + $0x1a4] sm:$0xf0]  ;;  %v6998_v15 = vld [vmem:[%s8038_s0 + $0x220] sm:$0xf0]  ;;  %v5346_v19 = vor.u32 %v6974_v13, %v5345_v11  ;;  %v5333_v25 = vld [vmem:[%s8038_s0 + $0x140] sm:$0xf] }
  0xbd   : > { %1550 = vmatpush.bf16.msra.mxu0 %v5438_v42  ;;  %v7053_v42 = vld [vmem:[%s8038_s0 + $0x3dc] sm:$0xf]  ;;  %v5442_v20 = vor.u32 %v6998_v15, %v5441_v14  ;;  %v6971_v27 = vld [vmem:[%s8038_s0 + $0x148] sm:$0xf0]  ;;  %v5429_v28 = vld [vmem:[%s8038_s0 + $0x200] sm:$0xf] }
  0xbe   : > { %1564 = vmatpush.bf16.msra.mxu1 %v5534_v43  ;;  %v5663_v43 = vld [vmem:[%s8038_s0 + $0x3e4] sm:$0xf0]  ;;  %v6995_v29 = vld [vmem:[%s8038_s0 + $0x208] sm:$0xf0]  ;;  %v7016_v45 = vld [vmem:[%s8038_s0 + $0x2b0] sm:$0xf0] }
  0xbf   : > { %1578 = vmatpush.bf16.msra.mxu2 %v5630_v44  ;;  %v5378_v44 = vor.u32 %v6981_v33, %v5375_v34  ;;  %v5666_v52 = vor.u32 %v7053_v42, %v5663_v43  ;;  %v5334_v33 = vor.u32 %v6971_v27, %v5333_v25  ;;  %v5430_v34 = vor.u32 %v6995_v29, %v5429_v28  ;;  %v5225_v36 = vld [vmem:[%s8038_s0 + $0x68] sm:$0xf]  ;;  %v6992_v43 = vld [vmem:[%s8038_s0 + $0x1f0] sm:$0xf0]  ;;  %v5213_v49 = vld [vmem:[%s8038_s0 + $0x50] sm:$0xf] }
  0xc0   : > { %1592 = vmatpush.bf16.msra.mxu3 %v5726_v48  ;;  %v5570_v48 = vor.u32 %v7029_v40, %v5567_v41  ;;  %v5321_v38 = vld [vmem:[%s8038_s0 + $0x128] sm:$0xf]  ;;  %v6968_v41 = vld [vmem:[%s8038_s0 + $0x130] sm:$0xf0]  ;;  %v6941_v50 = vld [vmem:[%s8038_s0 + $0x58] sm:$0xf0] }
  0xc1   : > { %1551 = vmatpush.bf16.msra.mxu0 %v5426_v54  ;;  %v7050_v54 = vld [vmem:[%s8038_s0 + $0x3c4] sm:$0xf]  ;;  %v5417_v42 = vld [vmem:[%s8038_s0 + $0x1e8] sm:$0xf]  ;;  %v5309_v51 = vld [vmem:[%s8038_s0 + $0x110] sm:$0xf] }
  0xc2   : > { %1565 = vmatpush.bf16.msra.mxu1 %v5522_v55  ;;  %v5651_v55 = vld [vmem:[%s8038_s0 + $0x3cc] sm:$0xf0]  ;;  %v6965_v53 = vld [vmem:[%s8038_s0 + $0x118] sm:$0xf0]  ;;  %v5201_v62 = vld [vmem:[%s8038_s0 + $0x38] sm:$0xf] }
  0xc3   : > { %1579 = vmatpush.bf16.msra.mxu2 %v5618_v56  ;;  %v5261_v56 = vld [vmem:[%s8038_s0 + $0xb0] sm:$0xf]  ;;  %v6938_v63 = vld [vmem:[%s8038_s0 + $0x40] sm:$0xf0]  ;;  %v5189_v11 = vld [vmem:[%s8038_s0 + $0x20] sm:$0xf] }
  0xc4   : > { %1593 = vmatpush.bf16.msra.mxu3 %v5714_v61  ;;  %v6977_v61 = vld [vmem:[%s8038_s0 + $0x178] sm:$0xf0]  ;;  %v5285_v13 = vld [vmem:[%s8038_s0 + $0xe0] sm:$0xf]  ;;  %v6959_v15 = vld [vmem:[%s8038_s0 + $0xe8] sm:$0xf0] }
  0xc5   : > { %1552 = vmatpush.bf16.msra.mxu0 %v5414_v3  ;;  %v7025_v3 = vld [vmem:[%s8038_s0 + $0x2f8] sm:$0xf0]  ;;  %v5358_v7 = vor.u32 %v6977_v61, %v5357_v59  ;;  %v5214_v59 = vor.u32 %v6941_v50, %v5213_v49  ;;  %v5286_v25 = vor.u32 %v6959_v15, %v5285_v13  ;;  %v5273_v27 = vld [vmem:[%s8038_s0 + $0xc8] sm:$0xf]  ;;  %v6956_v28 = vld [vmem:[%s8038_s0 + $0xd0] sm:$0xf0] }
  0xc6   : > { %1566 = vmatpush.bf16.msra.mxu1 %v5510_v4  ;;  %v5654_v4 = vor.u32 %v7050_v54, %v5651_v55  ;;  %v5550_v12 = vor.u32 %v7025_v3, %v5549_v2  ;;  %v5405_v54 = vld [vmem:[%s8038_s0 + $0x1d0] sm:$0xf]  ;;  %v6989_v55 = vld [vmem:[%s8038_s0 + $0x1d8] sm:$0xf0]  ;;  %v6962_v2 = vld [vmem:[%s8038_s0 + $0x100] sm:$0xf0] }
  0xc7   : > { %1580 = vmatpush.bf16.msra.mxu2 %v5606_v5  ;;  %v5262_v5 = vor.u32 %v6953_v58, %v5261_v56  ;;  %v5501_v56 = vld [vmem:[%s8038_s0 + $0x290] sm:$0xf]  ;;  %v7013_v58 = vld [vmem:[%s8038_s0 + $0x298] sm:$0xf0]  ;;  %v5406_v61 = vor.u32 %v6989_v55, %v5405_v54  ;;  %v5393_v3 = vld [vmem:[%s8038_s0 + $0x1b8] sm:$0xf] }
  0xc8   : > { %1594 = vmatpush.bf16.msra.mxu3 %v5702_v10  ;;  %v6950_v10 = vld [vmem:[%s8038_s0 + $0xa0] sm:$0xf0]  ;;  %v5369_v29 = vld [vmem:[%s8038_s0 + $0x188] sm:$0xf]  ;;  %v7040_v13 = vld [vmem:[%s8038_s0 + $0x370] sm:$0xf0] }
  0xc9   : > { %1553 = vmatpush.bf16.msra.mxu0 %v5402_v16  ;;  %v5537_v16 = vld [vmem:[%s8038_s0 + $0x2d8] sm:$0xf]  ;;  %v7070_v55 = vld [vmem:[%s8038_s0 + $0x460] sm:$0xf0]  ;;  %v7064_v15 = vld [vmem:[%s8038_s0 + $0x430] sm:$0xf0] }
  0xca   : > { %1567 = vmatpush.bf16.msra.mxu1 %v5498_v17  ;;  %v7022_v17 = vld [vmem:[%s8038_s0 + $0x2e0] sm:$0xf0]  ;;  %s7362_s28 = smul.u32 6, %s7872_s25  ;;  %s413_s25 = scalar_lea.vmem [#allocation11], %s7374_s27 }
  0xcb   : > { %1581 = vmatpush.bf16.msra.mxu2 %v5594_v18  ;;  %v5250_v18 = vor.u32 %v6950_v10, %v5249_v9  ;;  %v5538_v26 = vor.u32 %v7022_v17, %v5537_v16  ;;  %v5381_v16 = vld [vmem:[%s8038_s0 + $0x1a0] sm:$0xf]  ;;  %v6983_v17 = vld [vmem:[%s8038_s0 + $0x1a8] sm:$0xf0]  ;;  %s5005_s17 = sshll.u32 %s413_s25, 4  ;;  %s4992_s21 = scalar_lea.sflag [#allocation4], %s8035_s1  ;;  %s5006_s17 = int_to_ptr.vmem [resolvable:$true] %s5005_s17 }
  0xcc   : > { %1595 = vmatpush.bf16.msra.mxu3 %v5690_v24  ;;  %v6947_v24 = vld [vmem:[%s8038_s0 + $0x88] sm:$0xf0]  ;;  %s5003_s14 = scalar_lea.hbm %s9577_s6, %s7362_s28  ;;  %s7749_s19 = scalar_lea.hbm %s9577_s6, 12 }
  0xcd   : > { %1554 = vmatpush.bf16.msra.mxu0 %v5390_v30  ;;  %v5525_v30 = vld [vmem:[%s8038_s0 + $0x2c0] sm:$0xf]  ;;  %s5007_s26 = sshll.u32 %s5003_s14, 4  ;;  %s5008_s26 = int_to_ptr.hbm [resolvable:$true] %s5007_s26 }
  0xce   : > { %1568 = vmatpush.bf16.msra.mxu1 %v5486_v31  ;;  %v7019_v31 = vld [vmem:[%s8038_s0 + $0x2c8] sm:$0xf0]  ;;  %s7743_s13 = sshra.s32 %s5008_s26, 4  ;;  %s7744_s13 = int_to_ptr.hbm [resolvable:$true] %s7743_s13 }
  0xcf   : > { %1582 = vmatpush.bf16.msra.mxu2 %v5582_v32  ;;  %v5238_v32 = vor.u32 %v6947_v24, %v5237_v21  ;;  %v5526_v40 = vor.u32 %v7019_v31, %v5525_v30  ;;  %v5177_v21 = vld [vmem:[%s8038_s0 + $0x8] sm:$0xf]  ;;  %v6932_v24 = vld [vmem:[%s8038_s0 + $0x10] sm:$0xf0]  ;;  %s7745_s29 = scalar_lea.hbm %s7744_s13, 6  ;;  %p7750_p5 = scmp.lt.s32.totalorder %s7744_s13, %s9577_s6 }
  0xd0   : > { %1596 = vmatpush.bf16.msra.mxu3 %v5678_v37  ;;  %v6944_v37 = vld [vmem:[%s8038_s0 + $0x70] sm:$0xf0]  ;;  %p7746_p6 = scmp.ne.s32.totalorder %s7744_s13, %s7745_s29  ;;  %p7751_p1 = scmp.lt.s32.totalorder %s7749_s19, %s7745_s29 }
  0xd1   : > { %1555 = vmatpush.bf16.msra.mxu0 %v5378_v44  ;;  %v5513_v44 = vld [vmem:[%s8038_s0 + $0x2a8] sm:$0xf]  ;;  %v5226_v46 = vor.u32 %v6944_v37, %v5225_v36  ;;  %v6980_v31 = vld [vmem:[%s8038_s0 + $0x190] sm:$0xf0]  ;;  %v7049_v36 = vld [vmem:[%s8038_s0 + $0x3b8] sm:$0xf0] }
  0xd2   : > { %1569 = vmatpush.bf16.msra.mxu1 %v5474_v47  ;;  %v5322_v47 = vor.u32 %v6968_v41, %v5321_v38  ;;  %v5741_v37 = vld [vmem:[%s8038_s0 + $0x470] sm:$0xf]  ;;  %v5178_v38 = vor.u32 %v6932_v24, %v5177_v21  ;;  %v5913_v41 = vld [vmem:[%s8331_s23 + $0x150] sm:$0xf]  ;;  %v7037_v24 = vld [vmem:[%s8038_s0 + $0x358] sm:$0xf0]  ;;  %p7747_p13 = pnand %p7746_p6, %p7903_p11  ;;  %p7752_p9 = por %p7751_p1, %p7750_p5 }
  0xd3   : > { %1583 = vmatpush.bf16.msra.mxu2 %v5570_v48  ;;  %v5418_v48 = vor.u32 %v6992_v43, %v5417_v42  ;;  %v7119_v42 = vld [vmem:[%s8331_s23 + $0x164] sm:$0xf0]  ;;  %v5274_v43 = vor.u32 %v6956_v28, %v5273_v27  ;;  %v7061_v27 = vld [vmem:[%s8038_s0 + $0x418] sm:$0xf0]  ;;  %v5817_v28 = vld [vmem:[%s8331_s23 + $0x90] sm:$0xf] }
  0xd4   : > { %1597 = vmatpush.bf16.msra.mxu3 %v5666_v52  ;;  %v5514_v52 = vor.u32 %v7016_v45, %v5513_v44  ;;  %v5370_v44 = vor.u32 %v6980_v31, %v5369_v29  ;;  %v6105_v45 = vld [vmem:[%s8331_s23 + $0x2d0] sm:$0xf]  ;;  %v5914_v50 = vor.u32 %v7119_v42, %v5913_v41  ;;  %v5597_v21 = vld [vmem:[%s8038_s0 + $0x350] sm:$0xf]  ;;  %v7058_v41 = vld [vmem:[%s8038_s0 + $0x400] sm:$0xf0]  ;;  %p7748_p7 = pneg %p7747_p13 }
  0xd5   : > { %1556 = vmatpush.bf16.msra.mxu0 %v5366_v60  ;;  %v5310_v60 = vor.u32 %v6965_v53, %v5309_v51  ;;  %v5633_v51 = vld [vmem:[%s8038_s0 + $0x398] sm:$0xf]  ;;  %v7095_v29 = vld [vmem:[%s8331_s23 + $0xa4] sm:$0xf0]  ;;  %v5793_v42 = vld [vmem:[%s8331_s23 + $0x60] sm:$0xf] }
  0xd6   : > { %1570 = vmatpush.bf16.msra.mxu1 %v5462_v0  ;;  %v5297_v0 = vld [vmem:[%s8038_s0 + $0xf8] sm:$0xf]  ;;  %v7143_v31 = vld [vmem:[%s8331_s23 + $0x224] sm:$0xf0]  ;;  %p7753_p10 = pnand %p7752_p9, %p7748_p7 }
  0xd7   : > { %1584 = vmatpush.bf16.msra.mxu2 %v5558_v1  ;;  %v5502_v1 = vor.u32 %v7013_v58, %v5501_v56  ;;  %v5298_v9 = vor.u32 %v6962_v2, %v5297_v0  ;;  %v5729_v53 = vld [vmem:[%s8038_s0 + $0x458] sm:$0xf]  ;;  %v5889_v56 = vld [vmem:[%s8331_s23 + $0x120] sm:$0xf]  ;;  %v7113_v58 = vld [vmem:[%s8331_s23 + $0x134] sm:$0xf0] }
  0xd8   : > { %1598 = vmatpush.bf16.msra.mxu3 %v5654_v4  ;;  %1557 = vmatmul.bf16.vlgmr.msra.gmra.mxu0 %v8146_v22  ;;  %v6986_v4 = vld [vmem:[%s8038_s0 + $0x1c0] sm:$0xf0]  ;;  %v5621_v0 = vld [vmem:[%s8038_s0 + $0x380] sm:$0xf] }
  0xd9   : > { %1605 = vmatpush.bf16.msrb.mxu0 %v5262_v5  ;;  %1571 = vmatmul.bf16.vlgmr.msra.gmra.mxu1 %v8148_v23  ;;  %v5489_v5 = vld [vmem:[%s8038_s0 + $0x278] sm:$0xf]  ;;  %v5394_v10 = vor.u32 %v6986_v4, %v5393_v3  ;;  %v5717_v2 = vld [vmem:[%s8038_s0 + $0x440] sm:$0xf]  ;;  %v7067_v4 = vld [vmem:[%s8038_s0 + $0x448] sm:$0xf0] }
  0xda   : > { %1619 = vmatpush.bf16.msrb.mxu1 %v5358_v7  ;;  %1585 = vmatmul.bf16.vlgmr.msra.gmra.mxu2 %v8195_v35  ;;  %v7010_v7 = vld [vmem:[%s8038_s0 + $0x280] sm:$0xf0] }
  0xdb   : > { %1633 = vmatpush.bf16.msrb.mxu2 %v5454_v8  ;;  %1599 = vmatmul.bf16.vlgmr.msra.gmra.mxu3 %v8200_v39  ;;  %v5202_v8 = vor.u32 %v6938_v63, %v5201_v62  ;;  %v5490_v14 = vor.u32 %v7010_v7, %v5489_v5  ;;  %v5730_v62 = vor.u32 %v7070_v55, %v5729_v53  ;;  %v5865_v5 = vld [vmem:[%s8331_s23 + $0xf0] sm:$0xf]  ;;  %v7107_v7 = vld [vmem:[%s8331_s23 + $0x104] sm:$0xf0] }
  0xdc   : > { %1647 = vmatpush.bf16.msrb.mxu3 %v5550_v12  ;;  %v6935_v12 = vld [vmem:[%s8038_s0 + $0x28] sm:$0xf0]  ;;  %v5890_v63 = vor.u32 %v7113_v58, %v5889_v56  ;;  %v5961_v56 = vld [vmem:[%s8331_s23 + $0x1b0] sm:$0xf] }
  0xdd   : > { %1606 = vmatpush.bf16.msrb.mxu0 %v5250_v18  ;;  %v5477_v18 = vld [vmem:[%s8038_s0 + $0x260] sm:$0xf]  ;;  %v7055_v53 = vld [vmem:[%s8038_s0 + $0x3e8] sm:$0xf0] }
  0xde   : > { %1620 = vmatpush.bf16.msrb.mxu1 %v5346_v19  ;;  %v7007_v19 = vld [vmem:[%s8038_s0 + $0x268] sm:$0xf0] }
  0xdf   : > { %1634 = vmatpush.bf16.msrb.mxu2 %v5442_v20  ;;  %v5190_v20 = vor.u32 %v6935_v12, %v5189_v11  ;;  %v5478_v30 = vor.u32 %v7007_v19, %v5477_v18  ;;  %v5866_v11 = vor.u32 %v7107_v7, %v5865_v5  ;;  %v5609_v12 = vld [vmem:[%s8038_s0 + $0x368] sm:$0xf]  ;;  %v7083_v55 = vld [vmem:[%s8331_s23 + $0x44] sm:$0xf0]  ;;  %v7125_v7 = vld [vmem:[%s8331_s23 + $0x194] sm:$0xf0] }
  0xe0   : > { %1648 = vmatpush.bf16.msrb.mxu3 %v5538_v26  ;;  %v5382_v26 = vor.u32 %v6983_v17, %v5381_v16  ;;  %v7101_v16 = vld [vmem:[%s8331_s23 + $0xd4] sm:$0xf0]  ;;  %v6033_v17 = vld [vmem:[%s8331_s23 + $0x240] sm:$0xf]  ;;  %v5610_v18 = vor.u32 %v7040_v13, %v5609_v12  ;;  %v7131_v58 = vld [vmem:[%s8331_s23 + $0x1c4] sm:$0xf0] }
  0xe1   : > { %1607 = vmatpush.bf16.msrb.mxu0 %v5238_v32  ;;  %v5465_v32 = vld [vmem:[%s8038_s0 + $0x248] sm:$0xf]  ;;  %v6681_v12 = vld [vmem:[%s8331_s23 + $0x750] sm:$0xf]  ;;  %v7311_v13 = vld [vmem:[%s8331_s23 + $0x764] sm:$0xf0] }
  0xe2   : > { %1621 = vmatpush.bf16.msrb.mxu1 %v5334_v33  ;;  %v7004_v33 = vld [vmem:[%s8038_s0 + $0x250] sm:$0xf0]  ;;  %v5937_v5 = vld [vmem:[%s8331_s23 + $0x180] sm:$0xf] }
  0xe3   : > { %1635 = vmatpush.bf16.msrb.mxu2 %v5430_v34  ;;  %v5645_v34 = vld [vmem:[%s8038_s0 + $0x3b0] sm:$0xf] }
  0xe4   : > { %1649 = vmatpush.bf16.msrb.mxu3 %v5526_v40  ;;  %v7073_v40 = vld [vmem:[%s8038_s0 + $0x478] sm:$0xf0] }
  0xe5   : > { %1608 = vmatpush.bf16.msrb.mxu0 %v5226_v46  ;;  %v7167_v46 = vld [vmem:[%s8331_s23 + $0x2e4] sm:$0xf0]  ;;  %v5742_v49 = vor.u32 %v7073_v40, %v5741_v37  ;;  %v7034_v37 = vld [vmem:[%s8038_s0 + $0x340] sm:$0xf0] }
  0xe6   : > { %1622 = vmatpush.bf16.msrb.mxu1 %v5322_v47  ;;  %v5466_v47 = vor.u32 %v7004_v33, %v5465_v32  ;;  %v6106_v54 = vor.u32 %v7167_v46, %v6105_v45  ;;  %v5598_v32 = vor.u32 %v7037_v24, %v5597_v21  ;;  %v7137_v45 = vld [vmem:[%s8331_s23 + $0x1f4] sm:$0xf0]  ;;  %v6682_v24 = vor.u32 %v7311_v13, %v6681_v12  ;;  %v6777_v12 = vld [vmem:[%s8331_s23 + $0x810] sm:$0xf]  ;;  %v7335_v13 = vld [vmem:[%s8331_s23 + $0x824] sm:$0xf0] }
  0xe7   : > { %1636 = vmatpush.bf16.msrb.mxu2 %v5418_v48  ;;  %v5646_v48 = vor.u32 %v7049_v36, %v5645_v34  ;;  %v5818_v34 = vor.u32 %v7095_v29, %v5817_v28  ;;  %v5585_v36 = vld [vmem:[%s8038_s0 + $0x338] sm:$0xf]  ;;  %v7257_v29 = vld [vmem:[%s8331_s23 + $0x5b4] sm:$0xf0] }
  0xe8   : > { %1650 = vmatpush.bf16.msrb.mxu3 %v5514_v52  ;;  %v7046_v52 = vld [vmem:[%s8038_s0 + $0x3a0] sm:$0xf0]  ;;  %v5586_v46 = vor.u32 %v7034_v37, %v5585_v36  ;;  %v7353_v37 = vld [vmem:[%s8331_s23 + $0x8b4] sm:$0xf0] }
  0xe9   : > { %1609 = vmatpush.bf16.msrb.mxu0 %v5214_v59  ;;  %v6081_v59 = vld [vmem:[%s8331_s23 + $0x2a0] sm:$0xf] }
  0xea   : > { %1623 = vmatpush.bf16.msrb.mxu1 %v5310_v60  ;;  %v7161_v60 = vld [vmem:[%s8331_s23 + $0x2b4] sm:$0xf0]  ;;  %v6849_v36 = vld [vmem:[%s8331_s23 + $0x8a0] sm:$0xf] }
  0xeb   : > { %1637 = vmatpush.bf16.msrb.mxu2 %v5406_v61  ;;  %v5634_v61 = vor.u32 %v7046_v52, %v5633_v51  ;;  %v6082_v3 = vor.u32 %v7161_v60, %v6081_v59  ;;  %v5669_v51 = vld [vmem:[%s8038_s0 + $0x3e0] sm:$0xf]  ;;  %v5561_v60 = vld [vmem:[%s8038_s0 + $0x308] sm:$0xf] }
  0xec   : > { %1651 = vmatpush.bf16.msrb.mxu3 %v5502_v1  ;;  %v7043_v1 = vld [vmem:[%s8038_s0 + $0x388] sm:$0xf0] }
  0xed   : > { %1610 = vmatpush.bf16.msrb.mxu0 %v5202_v8  ;;  %v6057_v8 = vld [vmem:[%s8331_s23 + $0x270] sm:$0xf] }
  0xee   : > { %1624 = vmatpush.bf16.msrb.mxu1 %v5298_v9  ;;  %v7155_v9 = vld [vmem:[%s8331_s23 + $0x284] sm:$0xf0] }
  0xef   : > { %1638 = vmatpush.bf16.msrb.mxu2 %v5394_v10  ;;  %v5622_v10 = vor.u32 %v7043_v1, %v5621_v0  ;;  %v5657_v0 = vld [vmem:[%s8038_s0 + $0x3c8] sm:$0xf]  ;;  %v7052_v1 = vld [vmem:[%s8038_s0 + $0x3d0] sm:$0xf0] }
  0xf0   : > { %1652 = vmatpush.bf16.msrb.mxu3 %v5490_v14  ;;  %v5705_v14 = vld [vmem:[%s8038_s0 + $0x428] sm:$0xf] }
  0xf1   : > { %1611 = vmatpush.bf16.msrb.mxu0 %v5190_v20  ;;  %v5706_v19 = vor.u32 %v7064_v15, %v5705_v14  ;;  %v5658_v14 = vor.u32 %v7052_v1, %v5657_v0  ;;  %v433_v15 = vld [vmem:[#allocation5] sm:$0xff]  ;;  %v6201_v0 = vld [vmem:[%s8331_s23 + $0x390] sm:$0xf]  ;;  %v7191_v1 = vld [vmem:[%s8331_s23 + $0x3a4] sm:$0xf0] }
  0xf2   : > { %1625 = vmatpush.bf16.msrb.mxu1 %v5286_v25  ;;  %v5693_v25 = vld [vmem:[%s8038_s0 + $0x410] sm:$0xf] }
  0xf3   : > { %1639 = vmatpush.bf16.msrb.mxu2 %v5382_v26  ;;  %v5694_v33 = vor.u32 %v7061_v27, %v5693_v25  ;;  %v6273_v25 = vld [vmem:[%s8331_s23 + $0x420] sm:$0xf] }
  0xf4   : > { %1653 = vmatpush.bf16.msrb.mxu3 %v5478_v30  ;;  %v6009_v30 = vld [vmem:[%s8331_s23 + $0x210] sm:$0xf]  ;;  %v6465_v27 = vld [vmem:[%s8331_s23 + $0x5a0] sm:$0xf] }
  0xf5   : > { %1612 = vmatpush.bf16.msrb.mxu0 %v5178_v38  ;;  %v5681_v38 = vld [vmem:[%s8038_s0 + $0x3f8] sm:$0xf]  ;;  %v6010_v40 = vor.u32 %v7143_v31, %v6009_v30  ;;  %v6657_v30 = vld [vmem:[%s8331_s23 + $0x720] sm:$0xf]  ;;  %v7305_v31 = vld [vmem:[%s8331_s23 + $0x734] sm:$0xf0] }
  0xf6   : > { %1626 = vmatpush.bf16.msrb.mxu1 %v5274_v43  ;;  %v7089_v43 = vld [vmem:[%s8331_s23 + $0x74] sm:$0xf0] }
  0xf7   : > { %1640 = vmatpush.bf16.msrb.mxu2 %v5370_v44  ;;  %v5985_v44 = vld [vmem:[%s8331_s23 + $0x1e0] sm:$0xf] }
  0xf8   : > { %1654 = vmatpush.bf16.msrb.mxu3 %v5466_v47  ;;  %1613 = vmatmul.bf16.vlgmr.msrb.gmra.mxu0 %v8126_v57  ;;  %v6058_v57 = vor.u32 %v7155_v9, %v6057_v8  ;;  %v5682_v47 = vor.u32 %v7058_v41, %v5681_v38  ;;  %v5986_v52 = vor.u32 %v7137_v45, %v5985_v44  ;;  %v6297_v8 = vld [vmem:[%s8331_s23 + $0x450] sm:$0xf]  ;;  %v7215_v9 = vld [vmem:[%s8331_s23 + $0x464] sm:$0xf0] }
  0xf9   : > { %1661 = vmatpush.bf16.msra.mxu0 %v5646_v48  ;;  %1627 = vmatmul.bf16.vlgmr.msrb.gmra.mxu1 %v8136_v6  ;;  %v7149_v6 = vld [vmem:[%s8331_s23 + $0x254] sm:$0xf0]  ;;  %v5794_v48 = vor.u32 %v7089_v43, %v5793_v42  ;;  %v6466_v38 = vor.u32 %v7257_v29, %v6465_v27  ;;  %v6249_v41 = vld [vmem:[%s8331_s23 + $0x3f0] sm:$0xf]  ;;  %v7203_v42 = vld [vmem:[%s8331_s23 + $0x404] sm:$0xf0] }
  0xfa   : > { %1675 = vmatpush.bf16.msra.mxu1 %v5742_v49  ;;  %1641 = vmatmul.bf16.vlgmr.msrb.gmra.mxu2 %v8146_v22  ;;  %v5718_v22 = vor.u32 %v7067_v4, %v5717_v2  ;;  %v6034_v26 = vor.u32 %v7149_v6, %v6033_v17  ;;  %v5573_v49 = vld [vmem:[%s8038_s0 + $0x320] sm:$0xf]  ;;  %v5745_v2 = vld [vmem:[%s8331_s23] sm:$0xf]  ;;  %v5938_v17 = vor.u32 %v7125_v7, %v5937_v5  ;;  %v6441_v43 = vld [vmem:[%s8331_s23 + $0x570] sm:$0xf] }
  0xfb   : > { %3431 = vmatpush.bf16.msra.mxu2 %v5914_v50  ;;  %1655 = vmatmul.bf16.vlgmr.msrb.gmra.mxu3 %v8148_v23  ;;  %v5841_v23 = vld [vmem:[%s8331_s23 + $0xc0] sm:$0xf]  ;;  %v7031_v50 = vld [vmem:[%s8038_s0 + $0x328] sm:$0xf0]  ;;  %v7077_v4 = vld [vmem:[%s8331_s23 + $0x14] sm:$0xf0]  ;;  %v6298_v6 = vor.u32 %v7215_v9, %v6297_v8 }
  0xfc   : > { %3450 = vmatpush.bf16.msra.mxu3 %v6106_v54  ;;  %v5842_v20 = vor.u32 %v7101_v16, %v5841_v23  ;;  %v5769_v54 = vld [vmem:[%s8331_s23 + $0x30] sm:$0xf]  ;;  %v5574_v59 = vor.u32 %v7031_v50, %v5573_v49  ;;  %v434_v16 = vld [vmem:[#allocation5 + $0x8] sm:$0xff]  ;;  %v445_v7 = vld [vmem:[#allocation5 + $0x60] sm:$0xff] }
  0xfd   : > { %1662 = vmatpush.bf16.msra.mxu0 %v5634_v61  ;;  %v7028_v61 = vld [vmem:[%s8038_s0 + $0x310] sm:$0xf0]  ;;  %v7251_v44 = vld [vmem:[%s8331_s23 + $0x584] sm:$0xf0]  ;;  %v7329_v27 = vld [vmem:[%s8331_s23 + $0x7f4] sm:$0xf0] }
  0xfe   : > { %1676 = vmatpush.bf16.msra.mxu1 %v5730_v62  ;;  %v5670_v62 = vor.u32 %v7055_v53, %v5669_v51  ;;  %v439_v23 = vld [vmem:[#allocation5 + $0x30] sm:$0xff]  ;;  %v6442_v50 = vor.u32 %v7251_v44, %v6441_v43  ;;  %v7197_v53 = vld [vmem:[%s8331_s23 + $0x3d4] sm:$0xf0]  ;;  %v446_v9 = vld [vmem:[#allocation5 + $0x68] sm:$0xff] }
  0xff   : > { %3432 = vmatpush.bf16.msra.mxu2 %v5890_v63  ;;  %v5770_v63 = vor.u32 %v7083_v55, %v5769_v54  ;;  %v8408_v28 = vpack.c.bf16 %v439_v23, %v433_v15  ;;  %v6633_v45 = vld [vmem:[%s8331_s23 + $0x6f0] sm:$0xf]  ;;  %v7347_v49 = vld [vmem:[%s8331_s23 + $0x884] sm:$0xf0]  ;;  %v6417_v54 = vld [vmem:[%s8331_s23 + $0x540] sm:$0xf] }
 0x100   : > { %3451 = vmatpush.bf16.msra.mxu3 %v6082_v3  ;;  %v5962_v3 = vor.u32 %v7131_v58, %v5961_v56  ;;  %v6609_v55 = vld [vmem:[%s8331_s23 + $0x6c0] sm:$0xf]  ;;  %v7293_v56 = vld [vmem:[%s8331_s23 + $0x6d4] sm:$0xf0]  ;;  %v7287_v5 = vld [vmem:[%s8331_s23 + $0x6a4] sm:$0xf0] }
 0x101   : > { %1663 = vmatpush.bf16.msra.mxu0 %v5622_v10  ;;  %v6489_v10 = vld [vmem:[%s8331_s23 + $0x5d0] sm:$0xf]  ;;  %9617 = vst [vmem:[#allocation21_spill] sm:$0xff] %v8408_v28  ;;  %v6177_v15 = vld [vmem:[%s8331_s23 + $0x360] sm:$0xf] }
 0x102   : > { %1677 = vmatpush.bf16.msra.mxu1 %v5718_v22  ;;  %v5562_v22 = vor.u32 %v7028_v61, %v5561_v60  ;;  %v6801_v60 = vld [vmem:[%s8331_s23 + $0x840] sm:$0xf]  ;;  %v7341_v61 = vld [vmem:[%s8331_s23 + $0x854] sm:$0xf0]  ;;  %v451_v8 = vld [vmem:[#allocation5 + $0x90] sm:$0xff] }
 0x103   : > { %3433 = vmatpush.bf16.msra.mxu2 %v5866_v11  ;;  %v7263_v11 = vld [vmem:[%s8331_s23 + $0x5e4] sm:$0xf0]  ;;  %v7185_v23 = vld [vmem:[%s8331_s23 + $0x374] sm:$0xf0]  ;;  %v6153_v29 = vld [vmem:[%s8331_s23 + $0x330] sm:$0xf] }
 0x104   : > { %3452 = vmatpush.bf16.msra.mxu3 %v6058_v57  ;;  %v5746_v57 = vor.u32 %v7077_v4, %v5745_v2  ;;  %v6490_v21 = vor.u32 %v7263_v11, %v6489_v10  ;;  %v6393_v2 = vld [vmem:[%s8331_s23 + $0x510] sm:$0xf]  ;;  %v6802_v10 = vor.u32 %v7341_v61, %v6801_v60  ;;  %v7323_v44 = vld [vmem:[%s8331_s23 + $0x7c4] sm:$0xf0]  ;;  %v441_v60 = vld [vmem:[#allocation5 + $0x40] sm:$0xff] }
 0x105   : > { %1664 = vmatpush.bf16.msra.mxu0 %v5610_v18  ;;  %v440_v18 = vld [vmem:[#allocation5 + $0x38] sm:$0xff] }
 0x106   : > { %1678 = vmatpush.bf16.msra.mxu1 %v5706_v19  ;;  %v6873_v19 = vld [vmem:[%s8331_s23 + $0x8d0] sm:$0xf] }
 0x107   : > { %3434 = vmatpush.bf16.msra.mxu2 %v5842_v20  ;;  %v7359_v20 = vld [vmem:[%s8331_s23 + $0x8e4] sm:$0xf0]  ;;  %v6585_v4 = vld [vmem:[%s8331_s23 + $0x690] sm:$0xf] }
 0x108   : > { %3453 = vmatpush.bf16.msra.mxu3 %v6034_v26  ;;  %v7209_v26 = vld [vmem:[%s8331_s23 + $0x434] sm:$0xf0]  ;;  %v6729_v43 = vld [vmem:[%s8331_s23 + $0x7b0] sm:$0xf] }
 0x109   : > { %1665 = vmatpush.bf16.msra.mxu0 %v5598_v32  ;;  %v8413_v32 = vpack.c.bf16 %v440_v18, %v434_v16  ;;  %v452_v11 = vld [vmem:[#allocation5 + $0x98] sm:$0xff]  ;;  %v6369_v16 = vld [vmem:[%s8331_s23 + $0x4e0] sm:$0xf] }
 0x10a   : > { %1679 = vmatpush.bf16.msra.mxu1 %v5694_v33  ;;  %v6874_v33 = vor.u32 %v7359_v20, %v6873_v19  ;;  %v6561_v18 = vld [vmem:[%s8331_s23 + $0x660] sm:$0xf]  ;;  %v7281_v19 = vld [vmem:[%s8331_s23 + $0x674] sm:$0xf0]  ;;  %v8454_v20 = vpack.c.bf16 %v452_v11, %v446_v9  ;;  %v5891_v11 = vld [vmem:[%s8331_s23 + $0x138] sm:$0xf0] }
 0x10b   : > { %3435 = vmatpush.bf16.msra.mxu2 %v5818_v34  ;;  %9618 = vst [vmem:[#allocation22_spill] sm:$0xff] %v8413_v32  ;;  %v6274_v34 = vor.u32 %v7209_v26, %v6273_v25  ;;  %v6178_v25 = vor.u32 %v7185_v23, %v6177_v15  ;;  %v6753_v26 = vld [vmem:[%s8331_s23 + $0x7e0] sm:$0xf]  ;;  %v436_v61 = vld [vmem:[#allocation5 + $0x18] sm:$0xff]  ;;  %v7206_v23 = vld [vmem:[%s8331_s23 + $0x424] sm:$0xf] }
 0x10c   : > { %3454 = vmatpush.bf16.msra.mxu3 %v6010_v40  ;;  %v6658_v40 = vor.u32 %v7305_v31, %v6657_v30  ;;  %v6562_v31 = vor.u32 %v7281_v19, %v6561_v18 }
 0x10d   : > { %1666 = vmatpush.bf16.msra.mxu0 %v5586_v46  ;;  %v7299_v46 = vld [vmem:[%s8331_s23 + $0x704] sm:$0xf0] }
 0x10e   : > { %1680 = vmatpush.bf16.msra.mxu1 %v5682_v47  ;;  %v6850_v47 = vor.u32 %v7353_v37, %v6849_v36  ;;  %v6634_v51 = vor.u32 %v7299_v46, %v6633_v45  ;;  %v6345_v36 = vld [vmem:[%s8331_s23 + $0x4b0] sm:$0xf]  ;;  %v7227_v37 = vld [vmem:[%s8331_s23 + $0x4c4] sm:$0xf0]  ;;  %v6129_v45 = vld [vmem:[%s8331_s23 + $0x300] sm:$0xf]  ;;  %v6754_v46 = vor.u32 %v7329_v27, %v6753_v26 }
 0x10f   : > { %3436 = vmatpush.bf16.msra.mxu2 %v5794_v48  ;;  %v6250_v48 = vor.u32 %v7203_v42, %v6249_v41  ;;  %v7275_v41 = vld [vmem:[%s8331_s23 + $0x644] sm:$0xf0]  ;;  %v444_v26 = vld [vmem:[#allocation5 + $0x58] sm:$0xff] }
 0x110   : > { %3455 = vmatpush.bf16.msra.mxu3 %v5986_v52  ;;  %v6225_v52 = vld [vmem:[%s8331_s23 + $0x3c0] sm:$0xf] }
 0x111   : > { %1667 = vmatpush.bf16.msra.mxu0 %v5574_v59  ;;  %v6226_v59 = vor.u32 %v7197_v53, %v6225_v52  ;;  %v6513_v52 = vld [vmem:[%s8331_s23 + $0x600] sm:$0xf]  ;;  %v7269_v53 = vld [vmem:[%s8331_s23 + $0x614] sm:$0xf0] }
 0x112   : > { %1681 = vmatpush.bf16.msra.mxu1 %v5670_v62 }
 0x113   : > { %3437 = vmatpush.bf16.msra.mxu2 %v5770_v63  ;;  %v6610_v63 = vor.u32 %v7293_v56, %v6609_v55  ;;  %v5915_v55 = vld [vmem:[%s8331_s23 + $0x168] sm:$0xf0]  ;;  %v7212_v56 = vld [vmem:[%s8331_s23 + $0x454] sm:$0xf] }
 0x114   : > { %3456 = vmatpush.bf16.msra.mxu3 %v5962_v3  ;;  %v7239_v3 = vld [vmem:[%s8331_s23 + $0x524] sm:$0xf0] }
 0x115   : > { %1668 = vmatpush.bf16.msra.mxu0 %v5562_v22  ;;  %v6202_v22 = vor.u32 %v7191_v1, %v6201_v0  ;;  %v442_v0 = vld [vmem:[#allocation5 + $0x48] sm:$0xff]  ;;  %v7164_v1 = vld [vmem:[%s8331_s23 + $0x2d4] sm:$0xf] }
 0x116   : > { %1682 = vmatpush.bf16.msra.mxu1 %v5658_v14  ;;  %v6394_v14 = vor.u32 %v7239_v3, %v6393_v2  ;;  %v1460_v42 = vpop.f32.mrf.mxu1  ;;  %v6107_v2 = vld [vmem:[%s8331_s23 + $0x2e8] sm:$0xf0]  ;;  %v8499_v18 = vpack.c.bf16 %v442_v0, %v436_v61  ;;  %v7146_v0 = vld [vmem:[%s8331_s23 + $0x244] sm:$0xf] }
 0x117   : > { %3438 = vmatpush.bf16.msra.mxu2 %v5746_v57  ;;  %v6586_v57 = vor.u32 %v7287_v5, %v6585_v4  ;;  %v6514_v4 = vor.u32 %v7269_v53, %v6513_v52  ;;  %v6705_v5 = vld [vmem:[%s8331_s23 + $0x780] sm:$0xf]  ;;  %v6110_v15 = vor.u32 %v7164_v1, %v6107_v2  ;;  %v6035_v1 = vld [vmem:[%s8331_s23 + $0x258] sm:$0xf0]  ;;  %v7092_v2 = vld [vmem:[%s8331_s23 + $0x94] sm:$0xf] }
 0x118   : > { %3457 = vmatpush.bf16.msra.mxu3 %v5938_v17  ;;  %1669 = vmatmul.bf16.vlgmr.msra.gmra.mxu0 %v8195_v35  ;;  %v6825_v35 = vld [vmem:[%s8331_s23 + $0x870] sm:$0xf]  ;;  %v8449_v17 = vpack.c.bf16 %v451_v8, %v445_v7  ;;  %v7317_v7 = vld [vmem:[%s8331_s23 + $0x794] sm:$0xf0]  ;;  %v7110_v8 = vld [vmem:[%s8331_s23 + $0x124] sm:$0xf] }
 0x119   : > { %3469 = vmatpush.bf16.msrb.mxu0 %v6298_v6  ;;  %1683 = vmatmul.bf16.vlgmr.msra.gmra.mxu1 %v8200_v39  ;;  %v7245_v39 = vld [vmem:[%s8331_s23 + $0x554] sm:$0xf0]  ;;  %v6826_v58 = vor.u32 %v7347_v49, %v6825_v35  ;;  %v6321_v35 = vld [vmem:[%s8331_s23 + $0x480] sm:$0xf]  ;;  %v6706_v19 = vor.u32 %v7317_v7, %v6705_v5  ;;  %v5819_v7 = vld [vmem:[%s8331_s23 + $0xa8] sm:$0xf0] }
 0x11a   : > { %3488 = vmatpush.bf16.msrb.mxu1 %v6490_v21  ;;  %3439 = vmatmul.bf16.vlgmr.msra.gmra.mxu2 %v8408_v28  ;;  %v6418_v62 = vor.u32 %v7245_v39, %v6417_v54  ;;  %v7233_v6 = vld [vmem:[%s8331_s23 + $0x4f4] sm:$0xf0]  ;;  %v7116_v54 = vld [vmem:[%s8331_s23 + $0x154] sm:$0xf] }
 0x11b   : > { %3507 = vmatpush.bf16.msrb.mxu2 %v6682_v24  ;;  %3458 = vmatmul.bf16.vlgmr.msra.gmra.mxu3 %v8413_v32  ;;  %v8458_v21 = vld [vmem:[%s349_s2] sm:$0x7]  ;;  %v6778_v24 = vor.u32 %v7335_v13, %v6777_v12  ;;  %v6370_v30 = vor.u32 %v7233_v6, %v6369_v16  ;;  %v7260_v12 = vld [vmem:[%s8331_s23 + $0x5d4] sm:$0xf]  ;;  %v6491_v13 = vld [vmem:[%s8331_s23 + $0x5e8] sm:$0xf0] }
 0x11c   : > { %3526 = vmatpush.bf16.msrb.mxu3 %v6874_v33  ;;  %v1446_v33 = vpop.f32.mrf.mxu0  ;;  %v7221_v49 = vld [vmem:[%s8331_s23 + $0x494] sm:$0xf0]  ;;  %v6275_v16 = vld [vmem:[%s8331_s23 + $0x438] sm:$0xf0] }
 0x11d   : > { %3470 = vmatpush.bf16.msrb.mxu0 %v6274_v34  ;;  %v7179_v34 = vld [vmem:[%s8331_s23 + $0x344] sm:$0xf0]  ;;  %v6322_v3 = vor.u32 %v7221_v49, %v6321_v35  ;;  %v437_v6 = vld [vmem:[#allocation5 + $0x20] sm:$0xff] }
 0x11e   : > { %3489 = vmatpush.bf16.msrb.mxu1 %v6466_v38  ;;  %v9586_v38 = vperm.slane %v8458_v21, 0  ;;  %v8501_v27 = vpop.f32.mrf.mxu1  ;;  %v1488_v35 = vpop.f32.mrf.mxu3 }
 0x11f   : > { %3508 = vmatpush.bf16.msrb.mxu2 %v6658_v40  ;;  %v6537_v40 = vld [vmem:[%s8331_s23 + $0x630] sm:$0xf]  ;;  %9620 = vst [vmem:[#allocation24_spill] sm:$0xff] %v8501_v27  ;;  %v6745_v27 = vld [vmem:[%s8331_s23 + $0x7c0] sm:$0xf] }
 0x120   : > { %3527 = vmatpush.bf16.msrb.mxu3 %v6850_v47  ;;  %v6154_v47 = vor.u32 %v7179_v34, %v6153_v29  ;;  %v1447_v39 = vadd.f32 %v1446_v33, %v9586_v38  ;;  %v6494_v29 = vor.u32 %v7260_v12, %v6491_v13  ;;  %v6083_v33 = vld [vmem:[%s8331_s23 + $0x2b8] sm:$0xf0]  ;;  %v5894_v34 = vor.u32 %v7110_v8, %v5891_v11  ;;  %v7242_v8 = vld [vmem:[%s8331_s23 + $0x544] sm:$0xf]  ;;  %v6203_v11 = vld [vmem:[%s8331_s23 + $0x3a8] sm:$0xf0] }
 0x121   : > { %3471 = vmatpush.bf16.msrb.mxu0 %v6250_v48  ;;  %v7173_v48 = vld [vmem:[%s8331_s23 + $0x314] sm:$0xf0]  ;;  %v447_v12 = vld [vmem:[#allocation5 + $0x70] sm:$0xff]  ;;  %v7357_v38 = vld [vmem:[%s8331_s23 + $0x8dc] sm:$0xf] }
 0x122   : > { %3490 = vmatpush.bf16.msrb.mxu1 %v6442_v50  ;;  %v6346_v50 = vor.u32 %v7227_v37, %v6345_v36  ;;  %v1461_v9 = vadd.f32 %v1460_v42, %v1447_v39  ;;  %v6278_v36 = vor.u32 %v7206_v23, %v6275_v16  ;;  %v6467_v42 = vld [vmem:[%s8331_s23 + $0x5b8] sm:$0xf0]  ;;  %v7098_v39 = vld [vmem:[%s8331_s23 + $0xc4] sm:$0xf]  ;;  %v448_v16 = vld [vmem:[#allocation5 + $0x78] sm:$0xff] }
 0x123   : > { %3509 = vmatpush.bf16.msrb.mxu2 %v6634_v51  ;;  %v6538_v51 = vor.u32 %v7275_v41, %v6537_v40  ;;  %v7104_v40 = vld [vmem:[%s8331_s23 + $0xf4] sm:$0xf]  ;;  %v7254_v41 = vld [vmem:[%s8331_s23 + $0x5a4] sm:$0xf]  ;;  %v453_v23 = vld [vmem:[#allocation5 + $0xa0] sm:$0xff] }
 0x124   : > { %3528 = vmatpush.bf16.msrb.mxu3 %v6826_v58  ;;  %v6299_v58 = vld [vmem:[%s8331_s23 + $0x468] sm:$0xf0]  ;;  %v6470_v49 = vor.u32 %v7254_v41, %v6467_v42  ;;  %v449_v41 = vld [vmem:[#allocation5 + $0x80] sm:$0xff] }
 0x125   : > { %3472 = vmatpush.bf16.msrb.mxu0 %v6226_v59  ;;  %v435_v59 = vld [vmem:[#allocation5 + $0x10] sm:$0xff] }
 0x126   : > { %3491 = vmatpush.bf16.msrb.mxu1 %v6418_v62  ;;  %v6730_v62 = vor.u32 %v7323_v44, %v6729_v43 }
 0x127   : > { %3510 = vmatpush.bf16.msrb.mxu2 %v6610_v63  ;;  %v6130_v63 = vor.u32 %v7173_v48, %v6129_v45  ;;  %v5867_v45 = vld [vmem:[%s8331_s23 + $0x108] sm:$0xf0] }
 0x128   : > { %3529 = vmatpush.bf16.msrb.mxu3 %v6802_v10  ;;  %v5918_v10 = vor.u32 %v7116_v54, %v5915_v55  ;;  %v5870_v52 = vor.u32 %v7104_v40, %v5867_v45  ;;  %v7248_v55 = vld [vmem:[%s8331_s23 + $0x574] sm:$0xf]  ;;  %v6179_v40 = vld [vmem:[%s8331_s23 + $0x378] sm:$0xf0]  ;;  %v455_v45 = vld [vmem:[#allocation5 + $0xb0] sm:$0xff] }
 0x129   : > { %3473 = vmatpush.bf16.msrb.mxu0 %v6202_v22  ;;  %v6302_v22 = vor.u32 %v7212_v56, %v6299_v58  ;;  %v6443_v56 = vld [vmem:[%s8331_s23 + $0x588] sm:$0xf0]  ;;  %v5843_v58 = vld [vmem:[%s8331_s23 + $0xd8] sm:$0xf0] }
 0x12a   : > { %3492 = vmatpush.bf16.msrb.mxu1 %v6394_v14  ;;  %3444 = vmatmul.bf16.gmra.mxu2 %v8449_v17  ;;  %v8493_v14 = vpack.c.bf16 %v441_v60, %v435_v59  ;;  %v7194_v59 = vld [vmem:[%s8331_s23 + $0x3c4] sm:$0xf]  ;;  %v6227_v60 = vld [vmem:[%s8331_s23 + $0x3d8] sm:$0xf0] }
 0x12b   : > { %3511 = vmatpush.bf16.msrb.mxu2 %v6586_v57  ;;  %3463 = vmatmul.bf16.gmra.mxu3 %v8454_v20  ;;  %v8495_v57 = vpop.f32.mrf.mxu0  ;;  %v6230_v5 = vor.u32 %v7194_v59, %v6227_v60  ;;  %v5771_v60 = vld [vmem:[%s8331_s23 + $0x48] sm:$0xf0] }
 0x12c   : > { %3530 = vmatpush.bf16.msrb.mxu3 %v6778_v24  ;;  %9619 = vst [vmem:[#allocation23_spill] sm:$0xff] %v8495_v57  ;;  %v443_v24 = vld [vmem:[#allocation5 + $0x50] sm:$0xff]  ;;  %v7325_v57 = vld [vmem:[%s8331_s23 + $0x7d4] sm:$0xf0] }
 0x12d   : > { %3474 = vmatpush.bf16.msrb.mxu0 %v6178_v25  ;;  %v438_v25 = vld [vmem:[#allocation5 + $0x28] sm:$0xff]  ;;  %v8509_v43 = vpack.c.bf16 %v443_v24, %v437_v6  ;;  %v7140_v24 = vld [vmem:[%s8331_s23 + $0x214] sm:$0xf] }
 0x12e   : > { %3493 = vmatpush.bf16.msrb.mxu1 %v6370_v30  ;;  %v1474_v30 = vpop.f32.mrf.mxu2  ;;  %v8511_v44 = vpack.c.bf16 %v444_v26, %v438_v25  ;;  %v454_v6 = vld [vmem:[#allocation5 + $0xa8] sm:$0xff]  ;;  %v6011_v25 = vld [vmem:[%s8331_s23 + $0x228] sm:$0xf0] }
 0x12f   : > { %3512 = vmatpush.bf16.msrb.mxu2 %v6562_v31  ;;  %v7158_v31 = vld [vmem:[%s8331_s23 + $0x2a4] sm:$0xf]  ;;  %v1475_v37 = vadd.f32 %v1474_v30, %v1461_v9  ;;  %v6419_v9 = vld [vmem:[%s8331_s23 + $0x558] sm:$0xf0]  ;;  %v8549_v42 = vpack.c.bf16 %v454_v6, %v448_v16  ;;  %v9588_v6 = vperm.slane %v8458_v21, 1 }
 0x130   : > { %3531 = vmatpush.bf16.msrb.mxu3 %v6754_v46  ;;  %v7200_v46 = vld [vmem:[%s8331_s23 + $0x3f4] sm:$0xf]  ;;  %v6086_v48 = vor.u32 %v7158_v31, %v6083_v33  ;;  %v7086_v26 = vld [vmem:[%s8331_s23 + $0x64] sm:$0xf]  ;;  %v5795_v31 = vld [vmem:[%s8331_s23 + $0x78] sm:$0xf0] }
 0x131   : > { %3475 = vmatpush.bf16.msrb.mxu0 %v6154_v47  ;;  %v6251_v47 = vld [vmem:[%s8331_s23 + $0x408] sm:$0xf0]  ;;  %v1489_v54 = vadd.f32 %v1488_v35, %v1475_v37  ;;  %v7236_v33 = vld [vmem:[%s8331_s23 + $0x514] sm:$0xf]  ;;  %v7182_v37 = vld [vmem:[%s8331_s23 + $0x364] sm:$0xf] }
 0x132   : > { %3494 = vmatpush.bf16.msrb.mxu1 %v6346_v50  ;;  %v7152_v50 = vld [vmem:[%s8331_s23 + $0x274] sm:$0xf]  ;;  %v6254_v53 = vor.u32 %v7200_v46, %v6251_v47  ;;  %v450_v46 = vld [vmem:[#allocation5 + $0x88] sm:$0xff] }
 0x133   : > { %3513 = vmatpush.bf16.msrb.mxu2 %v6538_v51  ;;  %v6059_v51 = vld [vmem:[%s8331_s23 + $0x288] sm:$0xf0]  ;;  %v456_v47 = vld [vmem:[#allocation5 + $0xb8] sm:$0xff] }
 0x134   : > { %3532 = vmatpush.bf16.msrb.mxu3 %v6730_v62  ;;  %v6062_v61 = vor.u32 %v7152_v50, %v6059_v51  ;;  %v5987_v50 = vld [vmem:[%s8331_s23 + $0x1f8] sm:$0xf0]  ;;  %v8563_v59 = vpack.c.bf16 %v456_v47, %v450_v46  ;;  %v6875_v46 = vld [vmem:[%s8331_s23 + $0x8e8] sm:$0xf0]  ;;  %v6113_v47 = vld [vmem:[%s8331_s23 + $0x2d8] sm:$0xf] }
 0x135   : > { %3476 = vmatpush.bf16.msrb.mxu0 %v6130_v63  ;;  %v1502_v62 = vpop.f32.mrf.mxu0  ;;  %v6446_v63 = vor.u32 %v7248_v55, %v6443_v56  ;;  %v6371_v55 = vld [vmem:[%s8331_s23 + $0x4f8] sm:$0xf0]  ;;  %v8558_v56 = vpop.f32.mrf.mxu3 }
 0x136   : > { %3495 = vmatpush.bf16.msrb.mxu1 %v6322_v3  ;;  %v1503_v3 = vadd.f32 %v1502_v62, %v1489_v54  ;;  %v8553_v51 = vpop.f32.mrf.mxu2  ;;  %v7080_v54 = vld [vmem:[%s8331_s23 + $0x34] sm:$0xf]  ;;  %9623 = vst [vmem:[#allocation27_spill] sm:$0xff] %v8558_v56  ;;  %v6155_v62 = vld [vmem:[%s8331_s23 + $0x348] sm:$0xf0] }
 0x137   : > { %3514 = vmatpush.bf16.msrb.mxu2 %v6514_v4  ;;  %v5846_v4 = vor.u32 %v7098_v39, %v5843_v58  ;;  %9622 = vst [vmem:[#allocation26_spill] sm:$0xff] %v8553_v51  ;;  %v7230_v39 = vld [vmem:[%s8331_s23 + $0x4e4] sm:$0xf]  ;;  %v8561_v58 = vpack.c.bf16 %v455_v45, %v449_v41  ;;  %v7229_v51 = vld [vmem:[%s8331_s23 + $0x4d4] sm:$0xf0] }
 0x138   : > { %3477 = vmatmul.bf16.vlgmr.msrb.gmra.mxu0 %v8493_v14  ;;  %3533 = vmatpush.bf16.msrb.mxu3 %v6706_v19  ;;  %v6422_v19 = vor.u32 %v7242_v8, %v6419_v9  ;;  %v7224_v8 = vld [vmem:[%s8331_s23 + $0x4b4] sm:$0xf]  ;;  %v6347_v9 = vld [vmem:[%s8331_s23 + $0x4c8] sm:$0xf0] }
 0x139   : > { %3545 = vmatpush.bf16.msra.mxu0 %v5918_v10  ;;  %3496 = vmatmul.bf16.vlgmr.msrb.gmra.mxu1 %v8499_v18  ;;  %v1516_v10 = vpop.f32.mrf.mxu1 }
 0x13a   : > { %3564 = vmatpush.bf16.msra.mxu1 %v6110_v15  ;;  %3515 = vmatmul.bf16.vlgmr.msrb.gmra.mxu2 %v8509_v43  ;;  %v8535_v13 = vadd.f32 %v1516_v10, %v1503_v3  ;;  %v6038_v15 = vor.u32 %v7146_v0, %v6035_v1  ;;  %v6374_v0 = vor.u32 %v7230_v39, %v6371_v55  ;;  %v7128_v1 = vld [vmem:[%s8331_s23 + $0x1b4] sm:$0xf]  ;;  %v7074_v3 = vld [vmem:[%s8331_s23 + $0x4] sm:$0xf] }
 0x13b   : > { %3583 = vmatpush.bf16.msra.mxu2 %v6302_v22  ;;  %3534 = vmatmul.bf16.vlgmr.msrb.gmra.mxu3 %v8511_v44  ;;  %v7188_v22 = vld [vmem:[%s8331_s23 + $0x394] sm:$0xf]  ;;  %v7170_v10 = vld [vmem:[%s8331_s23 + $0x304] sm:$0xf] }
 0x13c   : > { %3602 = vmatpush.bf16.msra.mxu3 %v6494_v29  ;;  %9621 = vst [vmem:[#allocation25_spill] sm:$0xff] %v8535_v13  ;;  %v5822_v29 = vor.u32 %v7092_v2, %v5819_v7  ;;  %v6206_v30 = vor.u32 %v7188_v22, %v6203_v11  ;;  %4203 = vrot.lane.b32.xlu2 %v8535_v13, %s7813_s16  ;;  %v5963_v2 = vld [vmem:[%s8331_s23 + $0x1c8] sm:$0xf0]  ;;  %v5747_v7 = vld [vmem:[%s8331_s23 + $0x18] sm:$0xf0] }
 0x13d   : > { %3546 = vmatpush.bf16.msra.mxu0 %v5894_v34  ;;  %v6395_v34 = vld [vmem:[%s8331_s23 + $0x528] sm:$0xf0]  ;;  %v6131_v22 = vld [vmem:[%s8331_s23 + $0x318] sm:$0xf0]  ;;  %v7308_v11 = vld [vmem:[%s8331_s23 + $0x754] sm:$0xf]  ;;  %v5966_v16 = vor.u32 %v7128_v1, %v5963_v2 }
 0x13e   : > { %3565 = vmatpush.bf16.msra.mxu1 %v6086_v48  ;;  %v6014_v48 = vor.u32 %v7140_v24, %v6011_v25  ;;  %v6398_v35 = vor.u32 %v7236_v33, %v6395_v34  ;;  %v7122_v24 = vld [vmem:[%s8331_s23 + $0x184] sm:$0xf]  ;;  %v5939_v25 = vld [vmem:[%s8331_s23 + $0x198] sm:$0xf0]  ;;  %v1544_v45 = vpop.f32.mrf.mxu3  ;;  %v7162_v1 = vld [vmem:[%s8331_s23 + $0x2bc] sm:$0xf0] }
 0x13f   : > { %3584 = vmatpush.bf16.msra.mxu2 %v6278_v36  ;;  %v8543_v36 = vpack.c.bf16 %v453_v23, %v447_v12  ;;  %v6683_v12 = vld [vmem:[%s8331_s23 + $0x768] sm:$0xf0]  ;;  %v7120_v23 = vld [vmem:[%s8331_s23 + $0x16c] sm:$0xf0]  ;;  %v7218_v33 = vld [vmem:[%s8331_s23 + $0x484] sm:$0xf] }
 0x140   : > { %3603 = vmatpush.bf16.msra.mxu3 %v6470_v49  ;;  %v7134_v49 = vld [vmem:[%s8331_s23 + $0x1e4] sm:$0xf]  ;;  %v6323_v34 = vld [vmem:[%s8331_s23 + $0x498] sm:$0xf0]  ;;  %v7145_v13 = vld [vmem:[%s8331_s23 + $0x234] sm:$0xf0] }
 0x141   : > { %3547 = vmatpush.bf16.msra.mxu0 %v5870_v52  ;;  %v5798_v52 = vor.u32 %v7086_v26, %v5795_v31  ;;  %v5750_v26 = vor.u32 %v7074_v3, %v5747_v7  ;;  %v7302_v31 = vld [vmem:[%s8331_s23 + $0x724] sm:$0xf]  ;;  %v7296_v3 = vld [vmem:[%s8331_s23 + $0x6f4] sm:$0xf]  ;;  %v7108_v7 = vld [vmem:[%s8331_s23 + $0x10c] sm:$0xf0] }
 0x142   : > { %3566 = vmatpush.bf16.msra.mxu1 %v6062_v61  ;;  %v7176_v61 = vld [vmem:[%s8331_s23 + $0x334] sm:$0xf]  ;;  %v7350_v55 = vld [vmem:[%s8331_s23 + $0x8a4] sm:$0xf] }
 0x143   : > { %3585 = vmatpush.bf16.msra.mxu2 %v6254_v53  ;;  %v6182_v53 = vor.u32 %v7182_v37, %v6179_v40  ;;  %v7356_v37 = vld [vmem:[%s8331_s23 + $0x8d4] sm:$0xf]  ;;  %v6686_v40 = vor.u32 %v7308_v11, %v6683_v12  ;;  %v6827_v11 = vld [vmem:[%s8331_s23 + $0x888] sm:$0xf0]  ;;  %v6065_v12 = vld [vmem:[%s8331_s23 + $0x278] sm:$0xf] }
 0x144   : > { %3604 = vmatpush.bf16.msra.mxu3 %v6446_v63  ;;  %v5990_v63 = vor.u32 %v7134_v49, %v5987_v50  ;;  %v5897_v49 = vld [vmem:[%s8331_s23 + $0x128] sm:$0xf]  ;;  %v7114_v50 = vld [vmem:[%s8331_s23 + $0x13c] sm:$0xf0] }
 0x145   : > { %3548 = vmatpush.bf16.msra.mxu0 %v5846_v4  ;;  %v5774_v4 = vor.u32 %v7080_v54, %v5771_v60  ;;  %v6878_v54 = vor.u32 %v7356_v37, %v6875_v46  ;;  %v8597_v60 = vpop.f32.mrf.mxu0  ;;  %v7338_v37 = vld [vmem:[%s8331_s23 + $0x844] sm:$0xf]  ;;  %v7150_v46 = vld [vmem:[%s8331_s23 + $0x25c] sm:$0xf0] }
 0x146   : > { %3567 = vmatpush.bf16.msra.mxu1 %v6038_v15  ;;  %v5921_v15 = vld [vmem:[%s8331_s23 + $0x158] sm:$0xf]  ;;  %9624 = vst [vmem:[#allocation28_spill] sm:$0xff] %v8597_v60  ;;  %v6025_v60 = vld [vmem:[%s8331_s23 + $0x220] sm:$0xf] }
 0x147   : > { %3586 = vmatpush.bf16.msra.mxu2 %v6230_v5  ;;  %v6158_v5 = vor.u32 %v7176_v61, %v6155_v62  ;;  %v5922_v41 = vor.u32 %v7120_v23, %v5921_v15  ;;  %v5898_v62 = vor.u32 %v7114_v50, %v5897_v49  ;;  %v7156_v15 = vld [vmem:[%s8331_s23 + $0x28c] sm:$0xf0]  ;;  %v7284_v49 = vld [vmem:[%s8331_s23 + $0x694] sm:$0xf]  ;;  %v6587_v50 = vld [vmem:[%s8331_s23 + $0x6a8] sm:$0xf0] }
 0x148   : > { %3605 = vmatpush.bf16.msra.mxu3 %v6422_v19  ;;  %3482 = vmatmul.bf16.gmra.mxu0 %v8543_v36  ;;  %v6350_v19 = vor.u32 %v7224_v8, %v6347_v9  ;;  %v8608_v8 = vpop.f32.mrf.mxu1 }
 0x149   : > { %3549 = vmatpush.bf16.msra.mxu0 %v5822_v29  ;;  %3501 = vmatmul.bf16.gmra.mxu1 %v8549_v42  ;;  %v6134_v29 = vor.u32 %v7170_v10, %v6131_v22  ;;  %9625 = vst [vmem:[#allocation29_spill] sm:$0xff] %v8608_v8  ;;  %v7344_v22 = vld [vmem:[%s8331_s23 + $0x874] sm:$0xf]  ;;  %v5857_v8 = vld [vmem:[%s8331_s23 + $0xd0] sm:$0xf] }
 0x14a   : > { %3568 = vmatpush.bf16.msra.mxu1 %v6014_v48  ;;  %3520 = vmatmul.bf16.gmra.mxu2 %v8561_v58  ;;  %v7168_v48 = vld [vmem:[%s8331_s23 + $0x2ec] sm:$0xf0] }
 0x14b   : > { %3587 = vmatpush.bf16.msra.mxu2 %v6206_v30  ;;  %3539 = vmatmul.bf16.gmra.mxu3 %v8563_v59  ;;  %v1530_v30 = vpop.f32.mrf.mxu2  ;;  %v6114_v39 = vor.u32 %v7168_v48, %v6113_v47 }
 0x14c   : > { %3606 = vmatpush.bf16.msra.mxu3 %v6398_v35  ;;  %v6659_v35 = vld [vmem:[%s8331_s23 + $0x738] sm:$0xf0]  ;;  %v1531_v2 = vadd.f32 %v1530_v30, %v9588_v6  ;;  %v5849_v30 = vld [vmem:[%s8331_s23 + $0xc8] sm:$0xf]  ;;  %v7157_v6 = vld [vmem:[%s8331_s23 + $0x294] sm:$0xf0] }
 0x14d   : > { %3550 = vmatpush.bf16.msra.mxu0 %v5798_v52  ;;  %v5942_v52 = vor.u32 %v7122_v24, %v5939_v25  ;;  %v6662_v61 = vor.u32 %v7302_v31, %v6659_v35  ;;  %v7290_v25 = vld [vmem:[%s8331_s23 + $0x6c4] sm:$0xf]  ;;  %v7102_v31 = vld [vmem:[%s8331_s23 + $0xdc] sm:$0xf0] }
 0x14e   : > { %3569 = vmatpush.bf16.msra.mxu1 %v5990_v63  ;;  %v6851_v63 = vld [vmem:[%s8331_s23 + $0x8b8] sm:$0xf0]  ;;  %v1545_v23 = vadd.f32 %v1544_v45, %v1531_v2  ;;  %v6041_v45 = vld [vmem:[%s8331_s23 + $0x248] sm:$0xf]  ;;  %v5850_v35 = vor.u32 %v7102_v31, %v5849_v30  ;;  %v6590_v2 = vor.u32 %v7284_v49, %v6587_v50  ;;  %v7272_v31 = vld [vmem:[%s8331_s23 + $0x634] sm:$0xf] }
 0x14f   : > { %3588 = vmatpush.bf16.msra.mxu2 %v6182_v53  ;;  %v6326_v53 = vor.u32 %v7218_v33, %v6323_v34  ;;  %v6854_v9 = vor.u32 %v7350_v55, %v6851_v63  ;;  %v6830_v33 = vor.u32 %v7344_v22, %v6827_v11  ;;  %v6066_v34 = vor.u32 %v7156_v15, %v6065_v12  ;;  %v6779_v63 = vld [vmem:[%s8331_s23 + $0x828] sm:$0xf0]  ;;  %v7326_v12 = vld [vmem:[%s8331_s23 + $0x7e4] sm:$0xf]  ;;  %v7132_v49 = vld [vmem:[%s8331_s23 + $0x1cc] sm:$0xf0] }
 0x150   : > { %3607 = vmatpush.bf16.msra.mxu3 %v6374_v0  ;;  %v6089_v0 = vld [vmem:[%s8331_s23 + $0x2a8] sm:$0xf]  ;;  %v6042_v55 = vor.u32 %v7150_v46, %v6041_v45  ;;  %v7320_v46 = vld [vmem:[%s8331_s23 + $0x7b4] sm:$0xf] }
 0x151   : > { %3551 = vmatpush.bf16.msra.mxu0 %v5774_v4  ;;  %v6635_v4 = vld [vmem:[%s8331_s23 + $0x708] sm:$0xf0]  ;;  %v6090_v10 = vor.u32 %v7162_v1, %v6089_v0  ;;  %v6017_v0 = vld [vmem:[%s8331_s23 + $0x218] sm:$0xf]  ;;  %v7144_v1 = vld [vmem:[%s8331_s23 + $0x22c] sm:$0xf0] }
 0x152   : > { %3570 = vmatpush.bf16.msra.mxu1 %v5966_v16  ;;  %v6638_v16 = vor.u32 %v7296_v3, %v6635_v4  ;;  %v7278_v4 = vld [vmem:[%s8331_s23 + $0x664] sm:$0xf]  ;;  %v6018_v11 = vor.u32 %v7144_v1, %v6017_v0 }
 0x153   : > { %3589 = vmatpush.bf16.msra.mxu2 %v6158_v5  ;;  %v5873_v5 = vld [vmem:[%s8331_s23 + $0xf8] sm:$0xf]  ;;  %v8616_v24 = vpop.f32.mrf.mxu2 }
 0x154   : > { %3608 = vmatpush.bf16.msra.mxu3 %v6350_v19  ;;  %v5874_v19 = vor.u32 %v7108_v7, %v5873_v5  ;;  %v6563_v5 = vld [vmem:[%s8331_s23 + $0x678] sm:$0xf0]  ;;  %v5801_v7 = vld [vmem:[%s8331_s23 + $0x68] sm:$0xf] }
 0x155   : > { %3552 = vmatpush.bf16.msra.mxu0 %v5750_v26  ;;  %v8619_v26 = vpop.f32.mrf.mxu3 }
 0x156   : > { %3571 = vmatpush.bf16.msra.mxu1 %v5942_v52  ;;  %v5825_v52 = vld [vmem:[%s8331_s23 + $0x98] sm:$0xf] }
 0x157   : > { %3590 = vmatpush.bf16.msra.mxu2 %v6134_v29  ;;  %v6611_v29 = vld [vmem:[%s8331_s23 + $0x6d8] sm:$0xf0] }
 0x158   : > { %3609 = vmatpush.bf16.msra.mxu3 %v6326_v53  ;;  %3553 = vmatmul.bf16.vlgmr.msra.gmra.mxu0 %v8408_v28  ;;  %v6614_v48 = vor.u32 %v7290_v25, %v6611_v29  ;;  %v7096_v53 = vld [vmem:[%s8331_s23 + $0xac] sm:$0xf0]  ;;  %v7138_v25 = vld [vmem:[%s8331_s23 + $0x1fc] sm:$0xf0]  ;;  %v6566_v29 = vor.u32 %v7278_v4, %v6563_v5  ;;  %v5945_v4 = vld [vmem:[%s8331_s23 + $0x188] sm:$0xf] }
 0x159   : > { %3621 = vmatpush.bf16.msrb.mxu0 %v6686_v40  ;;  %3572 = vmatmul.bf16.vlgmr.msra.gmra.mxu1 %v8413_v32  ;;  %v1558_v40 = vpop.f32.mrf.mxu0  ;;  %v5826_v3 = vor.u32 %v7096_v53, %v5825_v52  ;;  %v6515_v53 = vld [vmem:[%s8331_s23 + $0x618] sm:$0xf0]  ;;  %v7126_v5 = vld [vmem:[%s8331_s23 + $0x19c] sm:$0xf0] }
 0x15a   : > { %3640 = vmatpush.bf16.msrb.mxu1 %v6878_v54  ;;  %3591 = vmatmul.bf16.vlgmr.msra.gmra.mxu2 %v8493_v14  ;;  %v1559_v47 = vadd.f32 %v1558_v40, %v1545_v23  ;;  %v1572_v54 = vpop.f32.mrf.mxu1  ;;  %v7084_v40 = vld [vmem:[%s8331_s23 + $0x4c] sm:$0xf0] }
 0x15b   : > { %3659 = vmatpush.bf16.msrb.mxu2 %v5922_v41  ;;  %3610 = vmatmul.bf16.vlgmr.msra.gmra.mxu3 %v8499_v18  ;;  %v6803_v41 = vld [vmem:[%s8331_s23 + $0x858] sm:$0xf0] }
 0x15c   : > { %3678 = vmatpush.bf16.msrb.mxu3 %v6114_v39  ;;  %v6806_v39 = vor.u32 %v7338_v37, %v6803_v41  ;;  %v5777_v37 = vld [vmem:[%s8331_s23 + $0x38] sm:$0xf] }
 0x15d   : > { %3622 = vmatpush.bf16.msrb.mxu0 %v6662_v61  ;;  %v7332_v61 = vld [vmem:[%s8331_s23 + $0x814] sm:$0xf]  ;;  %v5778_v52 = vor.u32 %v7084_v40, %v5777_v37  ;;  %v6473_v37 = vld [vmem:[%s8331_s23 + $0x5a8] sm:$0xf]  ;;  %v7258_v40 = vld [vmem:[%s8331_s23 + $0x5bc] sm:$0xf0] }
 0x15e   : > { %3641 = vmatpush.bf16.msrb.mxu1 %v6854_v9  ;;  %v7090_v9 = vld [vmem:[%s8331_s23 + $0x7c] sm:$0xf0]  ;;  %v6782_v22 = vor.u32 %v7332_v61, %v6779_v63  ;;  %v1600_v23 = vpop.f32.mrf.mxu3  ;;  %v7216_v61 = vld [vmem:[%s8331_s23 + $0x46c] sm:$0xf0] }
 0x15f   : > { %3660 = vmatpush.bf16.msrb.mxu2 %v5898_v62  ;;  %v1573_v62 = vadd.f32 %v1572_v54, %v1559_v47  ;;  %v5802_v30 = vor.u32 %v7090_v9, %v5801_v7  ;;  %v6731_v47 = vld [vmem:[%s8331_s23 + $0x7c8] sm:$0xf0]  ;;  %v5753_v54 = vld [vmem:[%s8331_s23 + $0x8] sm:$0xf]  ;;  %v7312_v63 = vld [vmem:[%s8331_s23 + $0x76c] sm:$0xf0] }
 0x160   : > { %3679 = vmatpush.bf16.msrb.mxu3 %v6090_v10  ;;  %v1586_v10 = vpop.f32.mrf.mxu2  ;;  %v6734_v0 = vor.u32 %v7320_v46, %v6731_v47  ;;  %v6497_v7 = vld [vmem:[%s8331_s23 + $0x5d8] sm:$0xf] }
 0x161   : > { %3623 = vmatpush.bf16.msrb.mxu0 %v6638_v16  ;;  %v1587_v15 = vadd.f32 %v1586_v10, %v1573_v62  ;;  %v6755_v16 = vld [vmem:[%s8331_s23 + $0x7f8] sm:$0xf0]  ;;  %v6689_v62 = vld [vmem:[%s8331_s23 + $0x758] sm:$0xf] }
 0x162   : > { %3642 = vmatpush.bf16.msrb.mxu1 %v6830_v33  ;;  %v6758_v41 = vor.u32 %v7326_v12, %v6755_v16  ;;  %v7360_v12 = vld [vmem:[%s8331_s23 + $0x8ec] sm:$0xf0]  ;;  %v6281_v16 = vld [vmem:[%s8331_s23 + $0x428] sm:$0xf] }
 0x163   : > { %3661 = vmatpush.bf16.msrb.mxu2 %v5874_v19  ;;  %v5993_v19 = vld [vmem:[%s8331_s23 + $0x1e8] sm:$0xf]  ;;  %v1601_v33 = vadd.f32 %v1600_v23, %v1587_v15  ;;  %v6690_v23 = vor.u32 %v7312_v63, %v6689_v62 }
 0x164   : > { %3680 = vmatpush.bf16.msrb.mxu3 %v6066_v34  ;;  %v6539_v34 = vld [vmem:[%s8331_s23 + $0x648] sm:$0xf0]  ;;  %v5994_v45 = vor.u32 %v7138_v25, %v5993_v19  ;;  %v7210_v19 = vld [vmem:[%s8331_s23 + $0x43c] sm:$0xf0]  ;;  %v6665_v25 = vld [vmem:[%s8331_s23 + $0x728] sm:$0xf] }
 0x165   : > { %3624 = vmatpush.bf16.msrb.mxu0 %v6614_v48  ;;  %4205 = vrot.lane.b32.xlu2 %v1601_v33, %s7813_s16  ;;  %v7266_v48 = vld [vmem:[%s8331_s23 + $0x604] sm:$0xf]  ;;  %v6542_v50 = vor.u32 %v7272_v31, %v6539_v34  ;;  %v5946_v31 = vor.u32 %v7126_v5, %v5945_v4  ;;  %v6282_v46 = vor.u32 %v7210_v19, %v6281_v16  ;;  %v6593_v16 = vld [vmem:[%s8331_s23 + $0x698] sm:$0xf]  ;;  %v7288_v19 = vld [vmem:[%s8331_s23 + $0x6ac] sm:$0xf0] }
 0x166   : > { %3643 = vmatpush.bf16.msrb.mxu1 %v6806_v39  ;;  %4320 = vrot.lane.b32.xlu1 %v1601_v33, %s7814_s20  ;;  %v7078_v39 = vld [vmem:[%s8331_s23 + $0x1c] sm:$0xf0]  ;;  %v6518_v9 = vor.u32 %v7266_v48, %v6515_v53  ;;  %v6257_v48 = vld [vmem:[%s8331_s23 + $0x3f8] sm:$0xf] }
 0x167   : > { %3662 = vmatpush.bf16.msrb.mxu2 %v5850_v35  ;;  %v5969_v35 = vld [vmem:[%s8331_s23 + $0x1b8] sm:$0xf]  ;;  %v5754_v10 = vor.u32 %v7078_v39, %v5753_v54  ;;  %v7252_v39 = vld [vmem:[%s8331_s23 + $0x58c] sm:$0xf0] }
 0x168   : > { %3681 = vmatpush.bf16.msrb.mxu3 %v6042_v55  ;;  %3558 = vmatmul.bf16.gmra.mxu0 %v8449_v17  ;;  %v6305_v55 = vld [vmem:[%s8331_s23 + $0x458] sm:$0xf]  ;;  %v5970_v1 = vor.u32 %v7132_v49, %v5969_v35  ;;  %v7204_v35 = vld [vmem:[%s8331_s23 + $0x40c] sm:$0xf0] }
 0x169   : > { %3625 = vmatpush.bf16.msrb.mxu0 %v6590_v2  ;;  %3577 = vmatmul.bf16.gmra.mxu1 %v8454_v20  ;;  %v7314_v2 = vld [vmem:[%s8331_s23 + $0x784] sm:$0xf]  ;;  %v6306_v15 = vor.u32 %v7216_v61, %v6305_v55  ;;  %v6641_v49 = vld [vmem:[%s8331_s23 + $0x6f8] sm:$0xf]  ;;  %v7348_v61 = vld [vmem:[%s8331_s23 + $0x88c] sm:$0xf0]  ;;  %v6258_v62 = vor.u32 %v7204_v35, %v6257_v48 }
 0x16a   : > { %3644 = vmatpush.bf16.msrb.mxu1 %v6782_v22  ;;  %3596 = vmatmul.bf16.gmra.mxu2 %v8543_v36  ;;  %v7264_v22 = vld [vmem:[%s8331_s23 + $0x5ec] sm:$0xf0]  ;;  %v6449_v54 = vld [vmem:[%s8331_s23 + $0x578] sm:$0xf]  ;;  %v6569_v48 = vld [vmem:[%s8331_s23 + $0x668] sm:$0xf] }
 0x16b   : > { %3663 = vmatpush.bf16.msrb.mxu2 %v5826_v3  ;;  %v6707_v3 = vld [vmem:[%s8331_s23 + $0x798] sm:$0xf0]  ;;  %3615 = vmatmul.bf16.gmra.mxu3 %v8549_v42  ;;  %v6498_v33 = vor.u32 %v7264_v22, %v6497_v7  ;;  %v6833_v55 = vld [vmem:[%s8331_s23 + $0x878] sm:$0xf]  ;;  %v6450_v4 = vor.u32 %v7252_v39, %v6449_v54  ;;  %v6425_v7 = vld [vmem:[%s8331_s23 + $0x548] sm:$0xf] }
 0x16c   : > { %3682 = vmatpush.bf16.msrb.mxu3 %v6018_v11  ;;  %v6881_v11 = vld [vmem:[%s8331_s23 + $0x8d8] sm:$0xf]  ;;  %v6834_v5 = vor.u32 %v7348_v61, %v6833_v55  ;;  %v7342_v22 = vld [vmem:[%s8331_s23 + $0x85c] sm:$0xf0]  ;;  %v6761_v54 = vld [vmem:[%s8331_s23 + $0x7e8] sm:$0xf] }
 0x16d   : > { %3626 = vmatpush.bf16.msrb.mxu0 %v6566_v29  ;;  %v7306_v29 = vld [vmem:[%s8331_s23 + $0x73c] sm:$0xf0]  ;;  %v6882_v34 = vor.u32 %v7360_v12, %v6881_v11 }
 0x16e   : > { %3645 = vmatpush.bf16.msrb.mxu1 %v6758_v41  ;;  %v6857_v41 = vld [vmem:[%s8331_s23 + $0x8a8] sm:$0xf]  ;;  %v6666_v47 = vor.u32 %v7306_v29, %v6665_v25  ;;  %v7282_v35 = vld [vmem:[%s8331_s23 + $0x67c] sm:$0xf0] }
 0x16f   : > { %3664 = vmatpush.bf16.msrb.mxu2 %v5802_v30  ;;  %v6710_v30 = vor.u32 %v7314_v2, %v6707_v3  ;;  %v6617_v2 = vld [vmem:[%s8331_s23 + $0x6c8] sm:$0xf]  ;;  %v7294_v3 = vld [vmem:[%s8331_s23 + $0x6dc] sm:$0xf0]  ;;  %v6570_v61 = vor.u32 %v7282_v35, %v6569_v48 }
 0x170   : > { %3683 = vmatpush.bf16.msrb.mxu3 %v5994_v45  ;;  %v7354_v45 = vld [vmem:[%s8331_s23 + $0x8bc] sm:$0xf0]  ;;  %v6618_v12 = vor.u32 %v7294_v3, %v6617_v2  ;;  %v7276_v2 = vld [vmem:[%s8331_s23 + $0x64c] sm:$0xf0]  ;;  %v8730_v3 = vpop.f32.mrf.mxu3  ;;  %v6713_v35 = vld [vmem:[%s8331_s23 + $0x788] sm:$0xf] }
 0x171   : > { %3627 = vmatpush.bf16.msrb.mxu0 %v6542_v50  ;;  %v7300_v50 = vld [vmem:[%s8331_s23 + $0x70c] sm:$0xf0]  ;;  %v6858_v53 = vor.u32 %v7354_v45, %v6857_v41  ;;  %v6594_v45 = vor.u32 %v7288_v19, %v6593_v16  ;;  %v7330_v39 = vld [vmem:[%s8331_s23 + $0x7fc] sm:$0xf0] }
 0x172   : > { %3646 = vmatpush.bf16.msrb.mxu1 %v6734_v0  ;;  %v6642_v63 = vor.u32 %v7300_v50, %v6641_v49  ;;  %v6233_v0 = vld [vmem:[%s8331_s23 + $0x3c8] sm:$0xf]  ;;  %v7222_v48 = vld [vmem:[%s8331_s23 + $0x49c] sm:$0xf0] }
 0x173   : > { %3665 = vmatpush.bf16.msrb.mxu2 %v5778_v52  ;;  %v6474_v52 = vor.u32 %v7258_v40, %v6473_v37  ;;  %v7336_v37 = vld [vmem:[%s8331_s23 + $0x82c] sm:$0xf0]  ;;  %v8714_v40 = vpop.f32.mrf.mxu1 }
 0x174   : > { %3684 = vmatpush.bf16.msrb.mxu3 %v5970_v1  ;;  %v7198_v1 = vld [vmem:[%s8331_s23 + $0x3dc] sm:$0xf0] }
 0x175   : > { %3628 = vmatpush.bf16.msrb.mxu0 %v6518_v9  ;;  %v7246_v9 = vld [vmem:[%s8331_s23 + $0x55c] sm:$0xf0]  ;;  %v6234_v11 = vor.u32 %v7198_v1, %v6233_v0  ;;  %v7180_v0 = vld [vmem:[%s8331_s23 + $0x34c] sm:$0xf0]  ;;  %v6545_v1 = vld [vmem:[%s8331_s23 + $0x638] sm:$0xf] }
 0x176   : > { %3647 = vmatpush.bf16.msrb.mxu1 %v6710_v30  ;;  %v6426_v25 = vor.u32 %v7246_v9, %v6425_v7  ;;  %v6401_v30 = vld [vmem:[%s8331_s23 + $0x518] sm:$0xf]  ;;  %v6762_v7 = vor.u32 %v7330_v39, %v6761_v54  ;;  %v6546_v19 = vor.u32 %v7276_v2, %v6545_v1  ;;  %v6115_v39 = vld [vmem:[%s8331_s23 + $0x2f0] sm:$0xf0]  ;;  %v7111_v2 = vld [vmem:[%s8331_s23 + $0x12c] sm:$0xf] }
 0x177   : > { %3666 = vmatpush.bf16.msrb.mxu2 %v5754_v10  ;;  %v6809_v10 = vld [vmem:[%s8331_s23 + $0x848] sm:$0xf]  ;;  %v6353_v9 = vld [vmem:[%s8331_s23 + $0x4b8] sm:$0xf] }
 0x178   : > { %3685 = vmatpush.bf16.msrb.mxu3 %v5946_v31  ;;  %3629 = vmatmul.bf16.vlgmr.msrb.gmra.mxu0 %v8509_v43  ;;  %v6810_v29 = vor.u32 %v7342_v22, %v6809_v10  ;;  %v8709_v31 = vpop.f32.mrf.mxu0  ;;  %v6137_v22 = vld [vmem:[%s8331_s23 + $0x308] sm:$0xf] }
 0x179   : > { %3697 = vmatpush.bf16.msra.mxu0 %v6306_v15  ;;  %3648 = vmatmul.bf16.vlgmr.msrb.gmra.mxu1 %v8511_v44  ;;  %v6209_v15 = vld [vmem:[%s8331_s23 + $0x398] sm:$0xf] }
 0x17a   : > { %3716 = vmatpush.bf16.msra.mxu1 %v6498_v33  ;;  %3667 = vmatmul.bf16.vlgmr.msrb.gmra.mxu2 %v8408_v28  ;;  %v7240_v33 = vld [vmem:[%s8331_s23 + $0x52c] sm:$0xf0] }
 0x17b   : > { %3735 = vmatpush.bf16.msra.mxu2 %v6690_v23  ;;  %3686 = vmatmul.bf16.vlgmr.msrb.gmra.mxu3 %v8413_v32  ;;  %v7192_v23 = vld [vmem:[%s8331_s23 + $0x3ac] sm:$0xf0]  ;;  %v6402_v49 = vor.u32 %v7240_v33, %v6401_v30  ;;  %v7270_v30 = vld [vmem:[%s8331_s23 + $0x61c] sm:$0xf0]  ;;  %v7117_v33 = vld [vmem:[%s8331_s23 + $0x15c] sm:$0xf] }
 0x17c   : > { %3754 = vmatpush.bf16.msra.mxu3 %v6882_v34  ;;  %v6785_v34 = vld [vmem:[%s8331_s23 + $0x818] sm:$0xf]  ;;  %v6210_v41 = vor.u32 %v7192_v23, %v6209_v15  ;;  %v7324_v15 = vld [vmem:[%s8331_s23 + $0x7cc] sm:$0xf0]  ;;  %v1628_v23 = vpop.f32.mrf.mxu1 }
 0x17d   : > { %3698 = vmatpush.bf16.msra.mxu0 %v6282_v46  ;;  %v6185_v46 = vld [vmem:[%s8331_s23 + $0x368] sm:$0xf]  ;;  %v6786_v50 = vor.u32 %v7336_v37, %v6785_v34  ;;  %v5923_v34 = vld [vmem:[%s8331_s23 + $0x170] sm:$0xf0]  ;;  %v7213_v37 = vld [vmem:[%s8331_s23 + $0x45c] sm:$0xf] }
 0x17e   : > { %3717 = vmatpush.bf16.msra.mxu1 %v6474_v52  ;;  %v6377_v52 = vld [vmem:[%s8331_s23 + $0x4e8] sm:$0xf] }
 0x17f   : > { %3736 = vmatpush.bf16.msra.mxu2 %v6666_v47  ;;  %v7186_v47 = vld [vmem:[%s8331_s23 + $0x37c] sm:$0xf0] }
 0x180   : > { %3755 = vmatpush.bf16.msra.mxu3 %v6858_v53  ;;  %v7234_v53 = vld [vmem:[%s8331_s23 + $0x4fc] sm:$0xf0]  ;;  %v6186_v55 = vor.u32 %v7186_v47, %v6185_v46  ;;  %v1614_v10 = vpop.f32.mrf.mxu0  ;;  %v6329_v47 = vld [vmem:[%s8331_s23 + $0x488] sm:$0xf] }
 0x181   : > { %3699 = vmatpush.bf16.msra.mxu0 %v6258_v62  ;;  %v6161_v62 = vld [vmem:[%s8331_s23 + $0x338] sm:$0xf] }
 0x182   : > { %3718 = vmatpush.bf16.msra.mxu1 %v6450_v4  ;;  %v9587_v4 = vperm.slane %v8458_v21, 2  ;;  %v6162_v16 = vor.u32 %v7180_v0, %v6161_v62  ;;  %v5926_v0 = vor.u32 %v7117_v33, %v5923_v34 }
 0x183   : > { %3737 = vmatpush.bf16.msra.mxu2 %v6642_v63  ;;  %v8725_v63 = vpop.f32.mrf.mxu2 }
 0x184   : > { %3756 = vmatpush.bf16.msra.mxu3 %v6834_v5  ;;  %v6378_v5 = vor.u32 %v7234_v53, %v6377_v52  ;;  %v1615_v52 = vadd.f32 %v1614_v10, %v9587_v4  ;;  %v6283_v10 = vld [vmem:[%s8331_s23 + $0x440] sm:$0xf0] }
 0x185   : > { %3700 = vmatpush.bf16.msra.mxu0 %v6234_v11  ;;  %v7228_v11 = vld [vmem:[%s8331_s23 + $0x4cc] sm:$0xf0] }
 0x186   : > { %3719 = vmatpush.bf16.msra.mxu1 %v6426_v25  ;;  %v7174_v25 = vld [vmem:[%s8331_s23 + $0x31c] sm:$0xf0] }
 0x187   : > { %3738 = vmatpush.bf16.msra.mxu2 %v6618_v12  ;;  %v6737_v12 = vld [vmem:[%s8331_s23 + $0x7b8] sm:$0xf]  ;;  %v6138_v53 = vor.u32 %v7174_v25, %v6137_v22  ;;  %v6330_v22 = vor.u32 %v7222_v48, %v6329_v47  ;;  %v6091_v25 = vld [vmem:[%s8331_s23 + $0x2c0] sm:$0xf0]  ;;  %v6259_v47 = vld [vmem:[%s8331_s23 + $0x410] sm:$0xf0] }
 0x188   : > { %3757 = vmatpush.bf16.msra.mxu3 %v6810_v29  ;;  %v6521_v29 = vld [vmem:[%s8331_s23 + $0x608] sm:$0xf]  ;;  %v6738_v46 = vor.u32 %v7324_v15, %v6737_v12  ;;  %3634 = vmatmul.bf16.gmra.mxu0 %v8561_v58  ;;  %v8767_v33 = vpop.f32.mrf.mxu0 }
 0x189   : > { %3701 = vmatpush.bf16.msra.mxu0 %v6210_v41  ;;  %v6307_v41 = vld [vmem:[%s8331_s23 + $0x470] sm:$0xf0]  ;;  %3653 = vmatmul.bf16.gmra.mxu1 %v8563_v59  ;;  %v6522_v54 = vor.u32 %v7270_v30, %v6521_v29  ;;  %v7255_v29 = vld [vmem:[%s8331_s23 + $0x5ac] sm:$0xf]  ;;  %v6475_v30 = vld [vmem:[%s8331_s23 + $0x5c0] sm:$0xf0] }
 0x18a   : > { %3720 = vmatpush.bf16.msra.mxu1 %v6402_v49  ;;  %v7318_v49 = vld [vmem:[%s8331_s23 + $0x79c] sm:$0xf0]  ;;  %3672 = vmatmul.bf16.gmra.mxu2 %v8449_v17  ;;  %v6310_v1 = vor.u32 %v7213_v37, %v6307_v41  ;;  %v7105_v41 = vld [vmem:[%s8331_s23 + $0xfc] sm:$0xf] }
 0x18b   : > { %3739 = vmatpush.bf16.msra.mxu2 %v6594_v45  ;;  %v6354_v45 = vor.u32 %v7228_v11, %v6353_v9  ;;  %v1642_v62 = vpop.f32.mrf.mxu2  ;;  %3691 = vmatmul.bf16.gmra.mxu3 %v8454_v20  ;;  %v7207_v9 = vld [vmem:[%s8331_s23 + $0x42c] sm:$0xf]  ;;  %v6714_v11 = vor.u32 %v7318_v49, %v6713_v35  ;;  %v6478_v35 = vor.u32 %v7255_v29, %v6475_v30  ;;  %v6427_v30 = vld [vmem:[%s8331_s23 + $0x560] sm:$0xf0] }
 0x18c   : > { %3758 = vmatpush.bf16.msra.mxu3 %v6786_v50  ;;  %v7165_v50 = vld [vmem:[%s8331_s23 + $0x2dc] sm:$0xf]  ;;  %v6286_v37 = vor.u32 %v7207_v9, %v6283_v10  ;;  %v7243_v29 = vld [vmem:[%s8331_s23 + $0x54c] sm:$0xf] }
 0x18d   : > { %3702 = vmatpush.bf16.msra.mxu0 %v6186_v55  ;;  %v7261_v55 = vld [vmem:[%s8331_s23 + $0x5dc] sm:$0xf]  ;;  %v6118_v12 = vor.u32 %v7165_v50, %v6115_v39  ;;  %v7099_v50 = vld [vmem:[%s8331_s23 + $0xcc] sm:$0xf]  ;;  %v6067_v39 = vld [vmem:[%s8331_s23 + $0x290] sm:$0xf0] }
 0x18e   : > { %3721 = vmatpush.bf16.msra.mxu1 %v6378_v5  ;;  %v1656_v5 = vpop.f32.mrf.mxu3  ;;  %v7093_v10 = vld [vmem:[%s8331_s23 + $0x9c] sm:$0xf] }
 0x18f   : > { %3740 = vmatpush.bf16.msra.mxu2 %v6570_v61  ;;  %v6499_v61 = vld [vmem:[%s8331_s23 + $0x5f0] sm:$0xf0] }
 0x190   : > { %3759 = vmatpush.bf16.msra.mxu3 %v6762_v7  ;;  %v5899_v7 = vld [vmem:[%s8331_s23 + $0x140] sm:$0xf0]  ;;  %v6502_v15 = vor.u32 %v7261_v55, %v6499_v61  ;;  %v7249_v55 = vld [vmem:[%s8331_s23 + $0x57c] sm:$0xf]  ;;  %v6451_v61 = vld [vmem:[%s8331_s23 + $0x590] sm:$0xf0] }
 0x191   : > { %3703 = vmatpush.bf16.msra.mxu0 %v6162_v16  ;;  %v7159_v16 = vld [vmem:[%s8331_s23 + $0x2ac] sm:$0xf]  ;;  %v5902_v34 = vor.u32 %v7111_v2, %v5899_v7  ;;  %v6235_v2 = vld [vmem:[%s8331_s23 + $0x3e0] sm:$0xf0] }
 0x192   : > { %3722 = vmatpush.bf16.msra.mxu1 %v6354_v45  ;;  %v8770_v45 = vpop.f32.mrf.mxu1  ;;  %v6094_v48 = vor.u32 %v7159_v16, %v6091_v25  ;;  %v6043_v25 = vld [vmem:[%s8331_s23 + $0x260] sm:$0xf0] }
 0x193   : > { %3741 = vmatpush.bf16.msra.mxu2 %v6546_v19  ;;  %v1629_v19 = vadd.f32 %v1628_v23, %v1615_v52  ;;  %v5875_v23 = vld [vmem:[%s8331_s23 + $0x110] sm:$0xf0]  ;;  %v7153_v52 = vld [vmem:[%s8331_s23 + $0x27c] sm:$0xf]  ;;  %v8783_v7 = vpop.f32.mrf.mxu2 }
 0x194   : > { %3760 = vmatpush.bf16.msra.mxu3 %v6738_v46  ;;  %v7201_v46 = vld [vmem:[%s8331_s23 + $0x3fc] sm:$0xf] }
 0x195   : > { %3704 = vmatpush.bf16.msra.mxu0 %v6138_v53  ;;  %v1643_v49 = vadd.f32 %v1642_v62, %v1629_v19  ;;  %v5878_v53 = vor.u32 %v7105_v41, %v5875_v23  ;;  %v7189_v41 = vld [vmem:[%s8331_s23 + $0x39c] sm:$0xf]  ;;  %v6211_v23 = vld [vmem:[%s8331_s23 + $0x3b0] sm:$0xf0] }
 0x196   : > { %3723 = vmatpush.bf16.msra.mxu1 %v6330_v22  ;;  %v8785_v9 = vpop.f32.mrf.mxu3  ;;  %v6070_v22 = vor.u32 %v7153_v52, %v6067_v39  ;;  %v6214_v52 = vor.u32 %v7189_v41, %v6211_v23  ;;  %v6403_v39 = vld [vmem:[%s8331_s23 + $0x530] sm:$0xf0] }
 0x197   : > { %3742 = vmatpush.bf16.msra.mxu2 %v6522_v54  ;;  %v6262_v54 = vor.u32 %v7201_v46, %v6259_v47  ;;  %v1657_v62 = vadd.f32 %v1656_v5, %v1643_v49  ;;  %v7087_v47 = vld [vmem:[%s8331_s23 + $0x6c] sm:$0xf]  ;;  %v7141_v49 = vld [vmem:[%s8331_s23 + $0x21c] sm:$0xf] }
 0x198   : > { %3761 = vmatpush.bf16.msra.mxu3 %v6714_v11  ;;  %v6454_v11 = vor.u32 %v7249_v55, %v6451_v61  ;;  %3705 = vmatmul.bf16.vlgmr.msra.gmra.mxu0 %v8493_v14  ;;  %v5803_v55 = vld [vmem:[%s8331_s23 + $0x80] sm:$0xf0]  ;;  %v7183_v61 = vld [vmem:[%s8331_s23 + $0x36c] sm:$0xf] }
 0x199   : > { %3773 = vmatpush.bf16.msrb.mxu0 %v5926_v0  ;;  %v5851_v0 = vld [vmem:[%s8331_s23 + $0xe0] sm:$0xf0]  ;;  %3724 = vmatmul.bf16.vlgmr.msra.gmra.mxu1 %v8499_v18 }
 0x19a   : > { %3792 = vmatpush.bf16.msrb.mxu1 %v6118_v12  ;;  %v7147_v12 = vld [vmem:[%s8331_s23 + $0x24c] sm:$0xf]  ;;  %v5854_v16 = vor.u32 %v7099_v50, %v5851_v0  ;;  %3743 = vmatmul.bf16.vlgmr.msra.gmra.mxu2 %v8509_v43  ;;  %v6187_v0 = vld [vmem:[%s8331_s23 + $0x380] sm:$0xf0] }
 0x19b   : > { %3811 = vmatpush.bf16.msrb.mxu2 %v6310_v1  ;;  %v7195_v1 = vld [vmem:[%s8331_s23 + $0x3cc] sm:$0xf]  ;;  %3762 = vmatmul.bf16.vlgmr.msra.gmra.mxu3 %v8511_v44 }
 0x19c   : > { %3830 = vmatpush.bf16.msrb.mxu3 %v6502_v15  ;;  %v1670_v15 = vpop.f32.mrf.mxu0  ;;  %v6238_v19 = vor.u32 %v7195_v1, %v6235_v2 }
 0x19d   : > { %3774 = vmatpush.bf16.msrb.mxu0 %v5902_v34  ;;  %v1671_v5 = vadd.f32 %v1670_v15, %v1657_v62  ;;  %v1684_v34 = vpop.f32.mrf.mxu1  ;;  %v8812_v1 = vpop.f32.mrf.mxu2  ;;  %v7081_v62 = vld [vmem:[%s8331_s23 + $0x3c] sm:$0xf]  ;;  %v6190_v15 = vor.u32 %v7183_v61, %v6187_v0  ;;  %v6691_v61 = vld [vmem:[%s8331_s23 + $0x770] sm:$0xf0]  ;;  %v5929_v0 = vld [vmem:[%s8331_s23 + $0x160] sm:$0xf] }
 0x19e   : > { %3793 = vmatpush.bf16.msrb.mxu1 %v6094_v48  ;;  %v6046_v48 = vor.u32 %v7147_v12, %v6043_v25  ;;  %v8814_v2 = vpop.f32.mrf.mxu3  ;;  %v5806_v12 = vor.u32 %v7087_v47, %v5803_v55  ;;  %v6379_v25 = vld [vmem:[%s8331_s23 + $0x500] sm:$0xf0]  ;;  %v7129_v47 = vld [vmem:[%s8331_s23 + $0x1bc] sm:$0xf] }
 0x19f   : > { %3812 = vmatpush.bf16.msrb.mxu2 %v6286_v37  ;;  %v5827_v37 = vld [vmem:[%s8331_s23 + $0xb0] sm:$0xf0]  ;;  %v8797_v46 = vadd.f32 %v1684_v34, %v1671_v5  ;;  %v7075_v34 = vld [vmem:[%s8331_s23 + $0xc] sm:$0xf] }
 0x1a0   : > { %3831 = vmatpush.bf16.msrb.mxu3 %v6478_v35  ;;  %v6430_v35 = vor.u32 %v7243_v29, %v6427_v30  ;;  %v5830_v50 = vor.u32 %v7093_v10, %v5827_v37  ;;  %v5779_v29 = vld [vmem:[%s8331_s23 + $0x50] sm:$0xf0]  ;;  %v7177_v30 = vld [vmem:[%s8331_s23 + $0x33c] sm:$0xf]  ;;  %v5755_v37 = vld [vmem:[%s8331_s23 + $0x20] sm:$0xf0] }
 0x1a1   : > { %3775 = vmatpush.bf16.msrb.mxu0 %v5878_v53  ;;  %v6019_v53 = vld [vmem:[%s8331_s23 + $0x230] sm:$0xf0]  ;;  %4322 = vrot.lane.b32.xlu2 %v8797_v46, %s7814_s20 }
 0x1a2   : > { %3794 = vmatpush.bf16.msrb.mxu1 %v6070_v22  ;;  %v6022_v10 = vor.u32 %v7141_v49, %v6019_v53  ;;  %v6163_v5 = vld [vmem:[%s8331_s23 + $0x350] sm:$0xf0]  ;;  %v7171_v53 = vld [vmem:[%s8331_s23 + $0x30c] sm:$0xf] }
 0x1a3   : > { %3813 = vmatpush.bf16.msrb.mxu2 %v6262_v54  ;;  %v7237_v54 = vld [vmem:[%s8331_s23 + $0x51c] sm:$0xf]  ;;  %v5971_v49 = vld [vmem:[%s8331_s23 + $0x1d0] sm:$0xf0] }
 0x1a4   : > { %3832 = vmatpush.bf16.msrb.mxu3 %v6454_v11  ;;  %v6406_v22 = vor.u32 %v7237_v54, %v6403_v39  ;;  %v7135_v11 = vld [vmem:[%s8331_s23 + $0x1ec] sm:$0xf]  ;;  %v6139_v54 = vld [vmem:[%s8331_s23 + $0x320] sm:$0xf0]  ;;  %v7309_v39 = vld [vmem:[%s8331_s23 + $0x75c] sm:$0xf] }
 0x1a5   : > { %3776 = vmatpush.bf16.msrb.mxu0 %v5854_v16  ;;  %v5995_v16 = vld [vmem:[%s8331_s23 + $0x200] sm:$0xf0]  ;;  %v8833_v55 = vpop.f32.mrf.mxu2 }
 0x1a6   : > { %3795 = vmatpush.bf16.msrb.mxu1 %v6046_v48  ;;  %v5998_v41 = vor.u32 %v7135_v11, %v5995_v16  ;;  %v5782_v48 = vor.u32 %v7081_v62, %v5779_v29  ;;  %v8843_v62 = vld [vmem:[%s8840_s30] sm:$0x3f]  ;;  %v5974_v11 = vor.u32 %v7129_v47, %v5971_v49  ;;  %v7303_v29 = vld [vmem:[%s8331_s23 + $0x72c] sm:$0xf]  ;;  %v7169_v49 = vld [vmem:[%s8331_s23 + $0x2f4] sm:$0xf0] }
 0x1a7   : > { %3814 = vmatpush.bf16.msrb.mxu2 %v6238_v19  ;;  %v7231_v19 = vld [vmem:[%s8331_s23 + $0x4ec] sm:$0xf]  ;;  %v5947_v16 = vld [vmem:[%s8331_s23 + $0x1a0] sm:$0xf0]  ;;  %v6121_v47 = vld [vmem:[%s8331_s23 + $0x2e0] sm:$0xf] }
 0x1a8   : > { %3833 = vmatpush.bf16.msrb.mxu3 %v6430_v35  ;;  %v6382_v23 = vor.u32 %v7231_v19, %v6379_v25  ;;  %v6166_v35 = vor.u32 %v7177_v30, %v6163_v5  ;;  %v5758_v19 = vor.u32 %v7075_v34, %v5755_v37  ;;  %v6142_v25 = vor.u32 %v7171_v53, %v6139_v54  ;;  %v7219_v30 = vld [vmem:[%s8331_s23 + $0x48c] sm:$0xf]  ;;  %v6331_v5 = vld [vmem:[%s8331_s23 + $0x4a0] sm:$0xf0]  ;;  %v7297_v53 = vld [vmem:[%s8331_s23 + $0x6fc] sm:$0xf] }
 0x1a9   : > { %3777 = vmatpush.bf16.msrb.mxu0 %v5830_v50  ;;  %v7225_v50 = vld [vmem:[%s8331_s23 + $0x4bc] sm:$0xf]  ;;  %3729 = vmatmul.bf16.gmra.mxu1 %v8549_v42  ;;  %v6334_v37 = vor.u32 %v7219_v30, %v6331_v5  ;;  %v8871_v30 = vpop.f32.mrf.mxu1  ;;  %v7109_v5 = vld [vmem:[%s8331_s23 + $0x114] sm:$0xf0] }
 0x1aa   : > { %3796 = vmatpush.bf16.msrb.mxu1 %v6022_v10  ;;  %v7121_v10 = vld [vmem:[%s8331_s23 + $0x174] sm:$0xf0]  ;;  %3710 = vmatmul.bf16.gmra.mxu0 %v8543_v36  ;;  %9627 = vst [vmem:[#allocation31_spill] sm:$0xff] %v8871_v30 }
 0x1ab   : > { %3815 = vmatpush.bf16.msrb.mxu2 %v6214_v52  ;;  %v6355_v52 = vld [vmem:[%s8331_s23 + $0x4d0] sm:$0xf0]  ;;  %v5930_v4 = vor.u32 %v7121_v10, %v5929_v0  ;;  %v8866_v0 = vpop.f32.mrf.mxu0  ;;  %3767 = vmatmul.bf16.gmra.mxu3 %v8563_v59 }
 0x1ac   : > { %3834 = vmatpush.bf16.msrb.mxu3 %v6406_v22  ;;  %v8845_v22 = vpop.f32.mrf.mxu3  ;;  %9626 = vst [vmem:[#allocation30_spill] sm:$0xff] %v8866_v0  ;;  %3748 = vmatmul.bf16.gmra.mxu2 %v8561_v58  ;;  %v6291_v0 = vld [vmem:[%s8331_s23 + $0x448] sm:$0xf0] }
 0x1ad   : > { %3778 = vmatpush.bf16.msrb.mxu0 %v5806_v12  ;;  %v6358_v12 = vor.u32 %v7225_v50, %v6355_v52  ;;  %v7115_v50 = vld [vmem:[%s8331_s23 + $0x144] sm:$0xf0]  ;;  %v8862_v52 = vperm.slane %v8843_v62, 0 }
 0x1ae   : > { %3797 = vmatpush.bf16.msrb.mxu1 %v5998_v41  ;;  %v6694_v41 = vor.u32 %v7309_v39, %v6691_v61  ;;  %v6122_v39 = vor.u32 %v7169_v49, %v6121_v47  ;;  %v7351_v61 = vld [vmem:[%s8331_s23 + $0x8ac] sm:$0xf]  ;;  %v7345_v49 = vld [vmem:[%s8331_s23 + $0x87c] sm:$0xf] }
 0x1af   : > { %3816 = vmatpush.bf16.msrb.mxu2 %v6190_v15  ;;  %v7123_v15 = vld [vmem:[%s8331_s23 + $0x18c] sm:$0xf] }
 0x1b0   : > { %3835 = vmatpush.bf16.msrb.mxu3 %v6382_v23  ;;  %v6883_v23 = vld [vmem:[%s8331_s23 + $0x8f0] sm:$0xf0]  ;;  %v5950_v34 = vor.u32 %v7123_v15, %v5947_v16  ;;  %v6097_v15 = vld [vmem:[%s8331_s23 + $0x2b0] sm:$0xf]  ;;  %v7163_v16 = vld [vmem:[%s8331_s23 + $0x2c4] sm:$0xf0] }
 0x1b1   : > { %3779 = vmatpush.bf16.msrb.mxu0 %v5782_v48  ;;  %v6667_v48 = vld [vmem:[%s8331_s23 + $0x740] sm:$0xf0]  ;;  %v6886_v54 = vor.u32 %v7357_v38, %v6883_v23  ;;  %v3445_v38 = vpop.f32.mrf.mxu2  ;;  %v6098_v47 = vor.u32 %v7163_v16, %v6097_v15 }
 0x1b2   : > { %3798 = vmatpush.bf16.msrb.mxu1 %v5974_v11  ;;  %v6670_v10 = vor.u32 %v7303_v29, %v6667_v48 }
 0x1b3   : > { %3817 = vmatpush.bf16.msrb.mxu2 %v6166_v35  ;;  %v5905_v35 = vld [vmem:[%s8331_s23 + $0x130] sm:$0xf] }
 0x1b4   : > { %3836 = vmatpush.bf16.msrb.mxu3 %v6358_v12  ;;  %v5906_v11 = vor.u32 %v7115_v50, %v5905_v35  ;;  %v6859_v12 = vld [vmem:[%s8331_s23 + $0x8c0] sm:$0xf0]  ;;  %v3464_v29 = vpop.f32.mrf.mxu3 }
 0x1b5   : > { %3780 = vmatpush.bf16.msrb.mxu0 %v5758_v19  ;;  %v6643_v19 = vld [vmem:[%s8331_s23 + $0x710] sm:$0xf0]  ;;  %v6862_v23 = vor.u32 %v7351_v61, %v6859_v12  ;;  %v7285_v61 = vld [vmem:[%s8331_s23 + $0x69c] sm:$0xf]  ;;  %v3478_v12 = vpop.f32.mrf.mxu0 }
 0x1b6   : > { %3799 = vmatpush.bf16.msrb.mxu1 %v5950_v34  ;;  %v6646_v35 = vor.u32 %v7297_v53, %v6643_v19  ;;  %v6073_v34 = vld [vmem:[%s8331_s23 + $0x280] sm:$0xf]  ;;  %v6811_v19 = vld [vmem:[%s8331_s23 + $0x860] sm:$0xf0] }
 0x1b7   : > { %3818 = vmatpush.bf16.msrb.mxu2 %v6142_v25  ;;  %v5881_v25 = vld [vmem:[%s8331_s23 + $0x100] sm:$0xf] }
 0x1b8   : > { %3837 = vmatpush.bf16.msrb.mxu3 %v6334_v37  ;;  %v5882_v50 = vor.u32 %v7109_v5, %v5881_v25  ;;  %v6619_v37 = vld [vmem:[%s8331_s23 + $0x6e0] sm:$0xf0]  ;;  %v6049_v25 = vld [vmem:[%s8331_s23 + $0x250] sm:$0xf]  ;;  %v7151_v5 = vld [vmem:[%s8331_s23 + $0x264] sm:$0xf0] }
 0x1b9   : > { %3849 = vmatpush.bf16.msra.mxu0 %v6694_v41  ;;  %v7291_v41 = vld [vmem:[%s8331_s23 + $0x6cc] sm:$0xf]  ;;  %3800 = vmatmul.bf16.vlgmr.msrb.gmra.mxu1 %v8413_v32 }
 0x1ba   : > { %3868 = vmatpush.bf16.msra.mxu1 %v6886_v54  ;;  %v7103_v54 = vld [vmem:[%s8331_s23 + $0xe4] sm:$0xf0]  ;;  %v6622_v15 = vor.u32 %v7291_v41, %v6619_v37  ;;  %v6050_v41 = vor.u32 %v7151_v5, %v6049_v25  ;;  %3781 = vmatmul.bf16.vlgmr.msrb.gmra.mxu0 %v8408_v28  ;;  %v7327_v25 = vld [vmem:[%s8331_s23 + $0x7ec] sm:$0xf]  ;;  %v6763_v5 = vld [vmem:[%s8331_s23 + $0x800] sm:$0xf0] }
 0x1bb   : > { %3887 = vmatpush.bf16.msra.mxu2 %v5930_v4  ;;  %v3446_v4 = vadd.f32 %v3445_v38, %v8862_v52  ;;  %v6835_v38 = vld [vmem:[%s8331_s23 + $0x890] sm:$0xf0]  ;;  %v5858_v16 = vor.u32 %v7103_v54, %v5857_v8  ;;  %3838 = vmatmul.bf16.vlgmr.msrb.gmra.mxu3 %v8499_v18 }
 0x1bc   : > { %3906 = vmatpush.bf16.msra.mxu3 %v6122_v39  ;;  %v3441_v39 = vadd.f32 %v8812_v1, %v8862_v52  ;;  %v6838_v53 = vor.u32 %v7345_v49, %v6835_v38  ;;  %v3497_v1 = vpop.f32.mrf.mxu1  ;;  %v3466_v49 = vpop.f32.mrf.mxu3  ;;  %v7333_v38 = vld [vmem:[%s8331_s23 + $0x81c] sm:$0xf]  ;;  %3819 = vmatmul.bf16.vlgmr.msrb.gmra.mxu2 %v8493_v14 }
 0x1bd   : > { %v8881_v48 = vadd.f32 %v3464_v29, %v3446_v4  ;;  %3850 = vmatpush.bf16.msra.mxu0 %v6670_v10  ;;  %v6074_v10 = vor.u32 %v7157_v6, %v6073_v34  ;;  %v3447_v4 = vpop.f32.mrf.mxu2  ;;  %v6595_v29 = vld [vmem:[%s8331_s23 + $0x6b0] sm:$0xf0] }
 0x1be   : > { %3869 = vmatpush.bf16.msra.mxu1 %v6862_v23  ;;  %v5833_v23 = vld [vmem:[%s8331_s23 + $0xa0] sm:$0xf]  ;;  %v3448_v6 = vadd.f32 %v3447_v4, %v8862_v52  ;;  %v6598_v37 = vor.u32 %v7285_v61, %v6595_v29  ;;  %v6787_v4 = vld [vmem:[%s8331_s23 + $0x830] sm:$0xf0] }
 0x1bf   : > { %3888 = vmatpush.bf16.msra.mxu2 %v5906_v11  ;;  %v7339_v11 = vld [vmem:[%s8331_s23 + $0x84c] sm:$0xf]  ;;  %v6790_v61 = vor.u32 %v7333_v38, %v6787_v4  ;;  %v6523_v38 = vld [vmem:[%s8331_s23 + $0x620] sm:$0xf0] }
 0x1c0   : > { %3907 = vmatpush.bf16.msra.mxu3 %v6098_v47  ;;  %v7097_v47 = vld [vmem:[%s8331_s23 + $0xb4] sm:$0xf0]  ;;  %v6814_v8 = vor.u32 %v7339_v11, %v6811_v19  ;;  %v8903_v34 = vadd.f32 %v3466_v49, %v3448_v6  ;;  %v6026_v11 = vor.u32 %v7145_v13, %v6025_v60  ;;  %v7273_v19 = vld [vmem:[%s8331_s23 + $0x63c] sm:$0xf]  ;;  %v6001_v6 = vld [vmem:[%s8331_s23 + $0x1f0] sm:$0xf] }
 0x1c1   : > { %3851 = vmatpush.bf16.msra.mxu0 %v6646_v35  ;;  %v3460_v35 = vadd.f32 %v8814_v2, %v3441_v39  ;;  %v5834_v54 = vor.u32 %v7097_v47, %v5833_v23  ;;  %v6571_v2 = vld [vmem:[%s8331_s23 + $0x680] sm:$0xf0]  ;;  %v5809_v39 = vld [vmem:[%s8331_s23 + $0x70] sm:$0xf]  ;;  %v5785_v23 = vld [vmem:[%s8331_s23 + $0x40] sm:$0xf] }
 0x1c2   : > { %3870 = vmatpush.bf16.msra.mxu1 %v6838_v53  ;;  %v7091_v53 = vld [vmem:[%s8331_s23 + $0x84] sm:$0xf0]  ;;  %v7085_v13 = vld [vmem:[%s8331_s23 + $0x54] sm:$0xf0] }
 0x1c3   : > { %3889 = vmatpush.bf16.msra.mxu2 %v5882_v50  ;;  %v7279_v50 = vld [vmem:[%s8331_s23 + $0x66c] sm:$0xf]  ;;  %v3479_v56 = vadd.f32 %v3478_v12, %v3460_v35  ;;  %v3480_v12 = vpop.f32.mrf.mxu0  ;;  %v7139_v49 = vld [vmem:[%s8331_s23 + $0x204] sm:$0xf0] }
 0x1c4   : > { %3908 = vmatpush.bf16.msra.mxu3 %v6074_v10  ;;  %v3443_v10 = vadd.f32 %v8833_v55, %v8862_v52  ;;  %v3499_v55 = vpop.f32.mrf.mxu1  ;;  %v6547_v52 = vld [vmem:[%s8331_s23 + $0x650] sm:$0xf0]  ;;  %v3535_v47 = vpop.f32.mrf.mxu3 }
 0x1c5   : > { %3852 = vmatpush.bf16.msra.mxu0 %v6622_v15  ;;  %v6574_v15 = vor.u32 %v7279_v50, %v6571_v2  ;;  %v3498_v29 = vadd.f32 %v3497_v1, %v3479_v56  ;;  %v3516_v60 = vpop.f32.mrf.mxu2  ;;  %v7267_v1 = vld [vmem:[%s8331_s23 + $0x60c] sm:$0xf]  ;;  %v6766_v50 = vor.u32 %v7327_v25, %v6763_v5  ;;  %v7313_v25 = vld [vmem:[%s8331_s23 + $0x774] sm:$0xf0]  ;;  %v5977_v5 = vld [vmem:[%s8331_s23 + $0x1c0] sm:$0xf] }
 0x1c6   : > { %3871 = vmatpush.bf16.msra.mxu1 %v6814_v8  ;;  %v3462_v35 = vadd.f32 %v8845_v22, %v3443_v10  ;;  %v6550_v8 = vor.u32 %v7273_v19, %v6547_v52  ;;  %v5761_v22 = vld [vmem:[%s8331_s23 + $0x10] sm:$0xf]  ;;  %v6002_v10 = vor.u32 %v7139_v49, %v6001_v6  ;;  %v6715_v6 = vld [vmem:[%s8331_s23 + $0x7a0] sm:$0xf0] }
 0x1c7   : > { %3890 = vmatpush.bf16.msra.mxu2 %v5858_v16  ;;  %v5810_v16 = vor.u32 %v7091_v53, %v5809_v39  ;;  %v3517_v56 = vadd.f32 %v3516_v60, %v3498_v29  ;;  %v7079_v39 = vld [vmem:[%s8331_s23 + $0x24] sm:$0xf0]  ;;  %v6313_v53 = vld [vmem:[%s8331_s23 + $0x460] sm:$0xf]  ;;  %v7133_v29 = vld [vmem:[%s8331_s23 + $0x1d4] sm:$0xf0] }
 0x1c8   : > { %3909 = vmatpush.bf16.msra.mxu3 %v6050_v41  ;;  %v5786_v41 = vor.u32 %v7085_v13, %v5785_v23  ;;  %v3481_v4 = vadd.f32 %v3480_v12, %v3462_v35  ;;  %v5762_v19 = vor.u32 %v7079_v39, %v5761_v22  ;;  %v7265_v22 = vld [vmem:[%s8331_s23 + $0x5f4] sm:$0xf0] }
 0x1c9   : > { %3853 = vmatpush.bf16.msra.mxu0 %v6598_v37  ;;  %v7321_v37 = vld [vmem:[%s8331_s23 + $0x7bc] sm:$0xf]  ;;  %v8930_v2 = vadd.f32 %v3535_v47, %v3517_v56  ;;  %v7315_v47 = vld [vmem:[%s8331_s23 + $0x78c] sm:$0xf]  ;;  %v6289_v56 = vld [vmem:[%s8331_s23 + $0x430] sm:$0xf]  ;;  %3805 = vmatmul.bf16.gmra.mxu1 %v8454_v20 }
 0x1ca   : > { %3872 = vmatpush.bf16.msra.mxu1 %v6790_v61  ;;  %v7217_v61 = vld [vmem:[%s8331_s23 + $0x474] sm:$0xf0]  ;;  %v3500_v52 = vadd.f32 %v3499_v55, %v3481_v4  ;;  %v7307_v55 = vld [vmem:[%s8331_s23 + $0x744] sm:$0xf0]  ;;  %v6505_v4 = vld [vmem:[%s8331_s23 + $0x5e0] sm:$0xf]  ;;  %3786 = vmatmul.bf16.gmra.mxu0 %v8449_v17 }
 0x1cb   : > { %3891 = vmatpush.bf16.msra.mxu2 %v5834_v54  ;;  %v6739_v54 = vld [vmem:[%s8331_s23 + $0x7d0] sm:$0xf0]  ;;  %4211 = vrot.lane.b32.xlu1 %v8930_v2, %s7813_s16  ;;  %v8940_v12 = vpop.f32.mrf.mxu0  ;;  %v6314_v13 = vor.u32 %v7217_v61, %v6313_v53  ;;  %v7361_v61 = vld [vmem:[%s8331_s23 + $0x8f4] sm:$0xf0] }
 0x1cc   : > { %3910 = vmatpush.bf16.msra.mxu3 %v6026_v11  ;;  %v6697_v11 = vld [vmem:[%s8331_s23 + $0x760] sm:$0xf]  ;;  %v8944_v23 = vpop.f32.mrf.mxu1  ;;  %v3537_v35 = vpop.f32.mrf.mxu3  ;;  %3824 = vmatmul.bf16.gmra.mxu2 %v8543_v36 }
 0x1cd   : > { %3854 = vmatpush.bf16.msra.mxu0 %v6574_v15  ;;  %v6742_v15 = vor.u32 %v7321_v37, %v6739_v54  ;;  %v6698_v60 = vor.u32 %v7313_v25, %v6697_v11  ;;  %v3518_v49 = vpop.f32.mrf.mxu2  ;;  %v6718_v37 = vor.u32 %v7315_v47, %v6715_v6  ;;  %v7127_v54 = vld [vmem:[%s8331_s23 + $0x1a4] sm:$0xf0]  ;;  %v6265_v25 = vld [vmem:[%s8331_s23 + $0x400] sm:$0xf]  ;;  %3843 = vmatmul.bf16.gmra.mxu3 %v8549_v42 }
 0x1ce   : > { %3873 = vmatpush.bf16.msra.mxu1 %v6766_v50  ;;  %v3519_v50 = vadd.f32 %v3518_v49, %v3500_v52  ;;  %v7259_v47 = vld [vmem:[%s8331_s23 + $0x5c4] sm:$0xf0] }
 0x1cf   : > { %3892 = vmatpush.bf16.msra.mxu2 %v5810_v16  ;;  %v6526_v16 = vor.u32 %v7267_v1, %v6523_v38  ;;  %v7211_v1 = vld [vmem:[%s8331_s23 + $0x444] sm:$0xf0]  ;;  %v5953_v38 = vld [vmem:[%s8331_s23 + $0x190] sm:$0xf] }
 0x1d0   : > { %3911 = vmatpush.bf16.msra.mxu3 %v6002_v10  ;;  %v6290_v39 = vor.u32 %v7211_v1, %v6289_v56  ;;  %v8956_v53 = vadd.f32 %v3537_v35, %v3519_v50  ;;  %v6889_v10 = vld [vmem:[%s8331_s23 + $0x8e0] sm:$0xf]  ;;  %v6865_v56 = vld [vmem:[%s8331_s23 + $0x8b0] sm:$0xf]  ;;  %v7355_v1 = vld [vmem:[%s8331_s23 + $0x8c4] sm:$0xf0] }
 0x1d1   : > { %3855 = vmatpush.bf16.msra.mxu0 %v6550_v8  ;;  %v6673_v8 = vld [vmem:[%s8331_s23 + $0x730] sm:$0xf] }
 0x1d2   : > { %3874 = vmatpush.bf16.msra.mxu1 %v6742_v15  ;;  %v6674_v11 = vor.u32 %v7307_v55, %v6673_v8  ;;  %v7205_v15 = vld [vmem:[%s8331_s23 + $0x414] sm:$0xf0]  ;;  %4215 = vrot.lane.b32.xlu0 %v8956_v53, %s7813_s16 }
 0x1d3   : > { %3893 = vmatpush.bf16.msra.mxu2 %v5786_v41  ;;  %v5978_v41 = vor.u32 %v7133_v29, %v5977_v5  ;;  %v5954_v5 = vor.u32 %v7127_v54, %v5953_v38  ;;  %v6506_v29 = vor.u32 %v7265_v22, %v6505_v4  ;;  %v3485_v52 = vpop.f32.mrf.mxu0  ;;  %v6266_v35 = vor.u32 %v7205_v15, %v6265_v25  ;;  %v7199_v38 = vld [vmem:[%s8331_s23 + $0x3e4] sm:$0xf0]  ;;  %v7349_v25 = vld [vmem:[%s8331_s23 + $0x894] sm:$0xf0] }
 0x1d4   : > { %v3486_v6 = vadd.f32 %v3485_v52, %v8903_v34  ;;  %v3504_v49 = vpop.f32.mrf.mxu1  ;;  %v8977_v8 = vpop.f32.mrf.mxu3  ;;  %v6625_v34 = vld [vmem:[%s8331_s23 + $0x6d0] sm:$0xf]  ;;  %v7295_v54 = vld [vmem:[%s8331_s23 + $0x6e4] sm:$0xf0]  ;;  %v6866_v22 = vor.u32 %v7355_v1, %v6865_v56  ;;  %v7289_v52 = vld [vmem:[%s8331_s23 + $0x6b4] sm:$0xf0] }
 0x1d5   : > { %3856 = vmatpush.bf16.msra.mxu0 %v6526_v16  ;;  %v6649_v16 = vld [vmem:[%s8331_s23 + $0x700] sm:$0xf]  ;;  %3912 = vmatpush.bf16.msra.mxu3 %v5978_v41  ;;  %v8975_v50 = vpop.f32.mrf.mxu2  ;;  %v6241_v41 = vld [vmem:[%s8331_s23 + $0x3d0] sm:$0xf]  ;;  %v6626_v15 = vor.u32 %v7295_v54, %v6625_v34  ;;  %v7343_v1 = vld [vmem:[%s8331_s23 + $0x864] sm:$0xf0] }
 0x1d6   : > { %3875 = vmatpush.bf16.msra.mxu1 %v6718_v37  ;;  %v3505_v37 = vadd.f32 %v3504_v49, %v3486_v6  ;;  %v6817_v56 = vld [vmem:[%s8331_s23 + $0x850] sm:$0xf]  ;;  %v7187_v54 = vld [vmem:[%s8331_s23 + $0x384] sm:$0xf0] }
 0x1d7   : > { %3894 = vmatpush.bf16.msra.mxu2 %v5762_v19  ;;  %v7301_v19 = vld [vmem:[%s8331_s23 + $0x714] sm:$0xf0]  ;;  %v6193_v34 = vld [vmem:[%s8331_s23 + $0x370] sm:$0xf] }
 0x1d8   : > { %v6650_v55 = vor.u32 %v7301_v19, %v6649_v16  ;;  %v6217_v16 = vld [vmem:[%s8331_s23 + $0x3a0] sm:$0xf]  ;;  %v7193_v19 = vld [vmem:[%s8331_s23 + $0x3b4] sm:$0xf0] }
 0x1d9   : > { %3925 = vmatpush.bf16.msrb.mxu0 %v6314_v13  ;;  %v6890_v13 = vor.u32 %v7361_v61, %v6889_v10  ;;  %3913 = vmatpush.bf16.msra.mxu3 %v5954_v5  ;;  %v7253_v10 = vld [vmem:[%s8331_s23 + $0x594] sm:$0xf0]  ;;  %v6242_v61 = vor.u32 %v7199_v38, %v6241_v41  ;;  %v6601_v5 = vld [vmem:[%s8331_s23 + $0x6a0] sm:$0xf]  ;;  %v6218_v49 = vor.u32 %v7193_v19, %v6217_v16 }
 0x1da   : > { %3944 = vmatpush.bf16.msrb.mxu1 %v6506_v29  ;;  %v6602_v38 = vor.u32 %v7289_v52, %v6601_v5  ;;  %v7241_v16 = vld [vmem:[%s8331_s23 + $0x534] sm:$0xf0]  ;;  %v6793_v19 = vld [vmem:[%s8331_s23 + $0x820] sm:$0xf]  ;;  %3857 = vmatmul.bf16.vlgmr.msra.gmra.mxu0 %v8509_v43 }
 0x1db   : > { %3963 = vmatpush.bf16.msrb.mxu2 %v6698_v60  ;;  %v6481_v60 = vld [vmem:[%s8331_s23 + $0x5b0] sm:$0xf]  ;;  %v7337_v5 = vld [vmem:[%s8331_s23 + $0x834] sm:$0xf0]  ;;  %v6169_v52 = vld [vmem:[%s8331_s23 + $0x340] sm:$0xf]  ;;  %3876 = vmatmul.bf16.vlgmr.msra.gmra.mxu1 %v8511_v44 }
 0x1dc   : > { %v6482_v4 = vor.u32 %v7259_v47, %v6481_v60  ;;  %v6433_v60 = vld [vmem:[%s8331_s23 + $0x550] sm:$0xf]  ;;  %v8992_v47 = vpop.f32.mrf.mxu0  ;;  %v8994_v6 = vpop.f32.mrf.mxu1  ;;  %3895 = vmatmul.bf16.vlgmr.msra.gmra.mxu2 %v8408_v28  ;;  %v7112_v28 = vld [vmem:[%s8331_s23 + $0x134] sm:$0xf] }
 0x1dd   : > { %3926 = vmatpush.bf16.msrb.mxu0 %v6290_v39  ;;  %3982 = vmatpush.bf16.msrb.mxu3 %v6890_v13  ;;  %v6457_v39 = vld [vmem:[%s8331_s23 + $0x580] sm:$0xf]  ;;  %v3542_v41 = vpop.f32.mrf.mxu3 }
 0x1de   : > { %3945 = vmatpush.bf16.msrb.mxu1 %v6482_v4  ;;  %v6458_v29 = vor.u32 %v7253_v10, %v6457_v39  ;;  %v7283_v39 = vld [vmem:[%s8331_s23 + $0x684] sm:$0xf0]  ;;  %3914 = vmatmul.bf16.vlgmr.msra.gmra.mxu3 %v8413_v32 }
 0x1df   : > { %3964 = vmatpush.bf16.msrb.mxu2 %v6674_v11  ;;  %v6841_v11 = vld [vmem:[%s8331_s23 + $0x880] sm:$0xf] }
 0x1e0   : > { %v6842_v13 = vor.u32 %v7349_v25, %v6841_v11  ;;  %v6409_v11 = vld [vmem:[%s8331_s23 + $0x520] sm:$0xf] }
 0x1e1   : > { %3927 = vmatpush.bf16.msrb.mxu0 %v6266_v35  ;;  %3983 = vmatpush.bf16.msrb.mxu3 %v6866_v22  ;;  %v7247_v35 = vld [vmem:[%s8331_s23 + $0x564] sm:$0xf0]  ;;  %v6577_v22 = vld [vmem:[%s8331_s23 + $0x670] sm:$0xf] }
 0x1e2   : > { %3946 = vmatpush.bf16.msrb.mxu1 %v6458_v29  ;;  %v6434_v10 = vor.u32 %v7247_v35, %v6433_v60  ;;  %v7181_v29 = vld [vmem:[%s8331_s23 + $0x354] sm:$0xf0]  ;;  %v6794_v35 = vor.u32 %v7337_v5, %v6793_v19  ;;  %v5931_v19 = vld [vmem:[%s8331_s23 + $0x178] sm:$0xf0]  ;;  %v7214_v5 = vld [vmem:[%s8331_s23 + $0x464] sm:$0xf] }
 0x1e3   : > { %3965 = vmatpush.bf16.msrb.mxu2 %v6650_v55  ;;  %v3523_v55 = vpop.f32.mrf.mxu2  ;;  %v7277_v60 = vld [vmem:[%s8331_s23 + $0x654] sm:$0xf0] }
 0x1e4   : > { %v3524_v4 = vadd.f32 %v3523_v55, %v3505_v37  ;;  %v6578_v37 = vor.u32 %v7283_v39, %v6577_v22  ;;  %v9019_v55 = vpop.f32.mrf.mxu1 }
 0x1e5   : > { %3928 = vmatpush.bf16.msrb.mxu0 %v6242_v61  ;;  %3984 = vmatpush.bf16.msrb.mxu3 %v6842_v13  ;;  %v6818_v61 = vor.u32 %v7343_v1, %v6817_v56  ;;  %v6553_v13 = vld [vmem:[%s8331_s23 + $0x640] sm:$0xf]  ;;  %v6385_v56 = vld [vmem:[%s8331_s23 + $0x4f0] sm:$0xf]  ;;  %v9017_v1 = vpop.f32.mrf.mxu0  ;;  %v9027_v22 = vpop.f32.mrf.mxu3 }
 0x1e6   : > { %v9004_v25 = vadd.f32 %v3542_v41, %v3524_v4  ;;  %3947 = vmatpush.bf16.msrb.mxu1 %v6434_v10  ;;  %v6170_v41 = vor.u32 %v7181_v29, %v6169_v52  ;;  %v6554_v39 = vor.u32 %v7277_v60, %v6553_v13  ;;  %v6145_v10 = vld [vmem:[%s8331_s23 + $0x310] sm:$0xf]  ;;  %v6361_v13 = vld [vmem:[%s8331_s23 + $0x4c0] sm:$0xf] }
 0x1e7   : > { %3966 = vmatpush.bf16.msrb.mxu2 %v6626_v15  ;;  %v6194_v15 = vor.u32 %v7187_v54, %v6193_v34  ;;  %v6769_v34 = vld [vmem:[%s8331_s23 + $0x7f0] sm:$0xf]  ;;  %v7331_v54 = vld [vmem:[%s8331_s23 + $0x804] sm:$0xf0] }
 0x1e8   : > { %9628 = vst [vmem:[#allocation32_spill] sm:$0xff] %v9004_v25  ;;  %v6770_v29 = vor.u32 %v7331_v54, %v6769_v34  ;;  %v6721_v34 = vld [vmem:[%s8331_s23 + $0x790] sm:$0xf]  ;;  %v7319_v54 = vld [vmem:[%s8331_s23 + $0x7a4] sm:$0xf0] }
 0x1e9   : > { %3929 = vmatpush.bf16.msrb.mxu0 %v6218_v49  ;;  %3985 = vmatpush.bf16.msrb.mxu3 %v6818_v61  ;;  %v6410_v49 = vor.u32 %v7241_v16, %v6409_v11  ;;  %v7175_v61 = vld [vmem:[%s8331_s23 + $0x324] sm:$0xf0]  ;;  %v6529_v11 = vld [vmem:[%s8331_s23 + $0x610] sm:$0xf]  ;;  %v7118_v16 = vld [vmem:[%s8331_s23 + $0x164] sm:$0xf] }
 0x1ea   : > { %v6146_v60 = vor.u32 %v7175_v61, %v6145_v10  ;;  %v5934_v32 = vor.u32 %v7118_v16, %v5931_v19  ;;  %v7166_v16 = vld [vmem:[%s8331_s23 + $0x2e4] sm:$0xf]  ;;  %v6123_v19 = vld [vmem:[%s8331_s23 + $0x2f8] sm:$0xf0]  ;;  %3862 = vmatmul.bf16.gmra.mxu0 %v8561_v58 }
 0x1eb   : > { %3967 = vmatpush.bf16.msrb.mxu2 %v6602_v38  ;;  %v7235_v38 = vld [vmem:[%s8331_s23 + $0x504] sm:$0xf0]  ;;  %v9025_v4 = vpop.f32.mrf.mxu2  ;;  %3948 = vmatpush.bf16.msrb.mxu1 %v6410_v49  ;;  %v5907_v49 = vld [vmem:[%s8331_s23 + $0x148] sm:$0xf0] }
 0x1ec   : > { %v6386_v52 = vor.u32 %v7235_v38, %v6385_v56  ;;  %v6362_v56 = vor.u32 %v7229_v51, %v6361_v13  ;;  %v9046_v38 = vperm.slane %v8843_v62, 1  ;;  %v9052_v10 = vpop.f32.mrf.mxu1  ;;  %v6337_v51 = vld [vmem:[%s8331_s23 + $0x490] sm:$0xf]  ;;  %v5910_v61 = vor.u32 %v7112_v28, %v5907_v49  ;;  %v7100_v13 = vld [vmem:[%s8331_s23 + $0xd4] sm:$0xf]  ;;  %3881 = vmatmul.bf16.gmra.mxu1 %v8563_v59  ;;  %3900 = vmatmul.bf16.gmra.mxu2 %v8449_v17 }
 0x1ed   : > { %3930 = vmatpush.bf16.msrb.mxu0 %v6194_v15  ;;  %v7271_v15 = vld [vmem:[%s8331_s23 + $0x624] sm:$0xf0]  ;;  %3986 = vmatpush.bf16.msrb.mxu3 %v6794_v35  ;;  %v7208_v35 = vld [vmem:[%s8331_s23 + $0x434] sm:$0xf]  ;;  %v9058_v62 = vpop.f32.mrf.mxu3  ;;  %v6099_v49 = vld [vmem:[%s8331_s23 + $0x2c8] sm:$0xf0] }
 0x1ee   : > { %v6530_v25 = vor.u32 %v7271_v15, %v6529_v11  ;;  %v6294_v11 = vor.u32 %v7208_v35, %v6291_v0  ;;  %v7106_v15 = vld [vmem:[%s8331_s23 + $0x104] sm:$0xf]  ;;  %v6126_v0 = vor.u32 %v7166_v16, %v6123_v19  ;;  %v5859_v35 = vld [vmem:[%s8331_s23 + $0xe8] sm:$0xf0]  ;;  %3919 = vmatmul.bf16.gmra.mxu3 %v8454_v20 }
 0x1ef   : > { %3968 = vmatpush.bf16.msrb.mxu2 %v6578_v37  ;;  %v6315_v37 = vld [vmem:[%s8331_s23 + $0x478] sm:$0xf0]  ;;  %3949 = vmatpush.bf16.msrb.mxu1 %v6386_v52  ;;  %v7094_v16 = vld [vmem:[%s8331_s23 + $0xa4] sm:$0xf] }
 0x1f0   : > { %v6318_v30 = vor.u32 %v7214_v5, %v6315_v37  ;;  %v6267_v5 = vld [vmem:[%s8331_s23 + $0x418] sm:$0xf0]  ;;  %v3555_v37 = vadd.f32 %v8992_v47, %v9046_v38  ;;  %v7154_v19 = vld [vmem:[%s8331_s23 + $0x284] sm:$0xf] }
 0x1f1   : > { %3931 = vmatpush.bf16.msrb.mxu0 %v6170_v41  ;;  %3987 = vmatpush.bf16.msrb.mxu3 %v6770_v29  ;;  %v6746_v41 = vor.u32 %v7325_v57, %v6745_v27  ;;  %v7223_v57 = vld [vmem:[%s8331_s23 + $0x4a4] sm:$0xf0] }
 0x1f2   : > { %v6338_v28 = vor.u32 %v7223_v57, %v6337_v51  ;;  %v3574_v47 = vadd.f32 %v8994_v6, %v3555_v37 }
 0x1f3   : > { %3969 = vmatpush.bf16.msrb.mxu2 %v6554_v39  ;;  %v9050_v39 = vpop.f32.mrf.mxu0  ;;  %v9056_v27 = vpop.f32.mrf.mxu2  ;;  %3950 = vmatpush.bf16.msrb.mxu1 %v6362_v56  ;;  %v7196_v56 = vld [vmem:[%s8331_s23 + $0x3d4] sm:$0xf] }
 0x1f4   : > { %v3593_v37 = vadd.f32 %v9025_v4, %v3574_v47  ;;  %v5811_v4 = vld [vmem:[%s8331_s23 + $0x88] sm:$0xf0] }
 0x1f5   : > { %3932 = vmatpush.bf16.msrb.mxu0 %v6146_v60  ;;  %3988 = vmatpush.bf16.msrb.mxu3 %v6746_v41  ;;  %v7160_v60 = vld [vmem:[%s8331_s23 + $0x2b4] sm:$0xf]  ;;  %v6243_v41 = vld [vmem:[%s8331_s23 + $0x3e8] sm:$0xf0] }
 0x1f6   : > { %v6102_v51 = vor.u32 %v7160_v60, %v6099_v49  ;;  %v3557_v49 = vadd.f32 %v9017_v1, %v9046_v38  ;;  %v6051_v47 = vld [vmem:[%s8331_s23 + $0x268] sm:$0xf0] }
 0x1f7   : > { %3970 = vmatpush.bf16.msrb.mxu2 %v6530_v25  ;;  %v5883_v25 = vld [vmem:[%s8331_s23 + $0x118] sm:$0xf0]  ;;  %3951 = vmatpush.bf16.msrb.mxu1 %v6338_v28 }
 0x1f8   : > { %v5886_v52 = vor.u32 %v7106_v15, %v5883_v25  ;;  %v6246_v15 = vor.u32 %v7196_v56, %v6243_v41  ;;  %v6075_v25 = vld [vmem:[%s8331_s23 + $0x298] sm:$0xf0]  ;;  %v7148_v41 = vld [vmem:[%s8331_s23 + $0x254] sm:$0xf] }
 0x1f9   : > { %4001 = vmatpush.bf16.msra.mxu0 %v5934_v32  ;;  %v7202_v32 = vld [vmem:[%s8331_s23 + $0x404] sm:$0xf] }
 0x1fa   : > { %v6270_v29 = vor.u32 %v7202_v32, %v6267_v5  ;;  %v5835_v32 = vld [vmem:[%s8331_s23 + $0xb8] sm:$0xf0]  ;;  %v7190_v5 = vld [vmem:[%s8331_s23 + $0x3a4] sm:$0xf]  ;;  %3933 = vmatmul.bf16.vlgmr.msrb.gmra.mxu0 %v8493_v14 }
 0x1fb   : > { %4039 = vmatpush.bf16.msra.mxu2 %v6318_v30  ;;  %v6722_v30 = vor.u32 %v7319_v54, %v6721_v34  ;;  %v3561_v34 = vpop.f32.mrf.mxu0  ;;  %v3580_v54 = vpop.f32.mrf.mxu1  ;;  %4020 = vmatpush.bf16.msra.mxu1 %v6126_v0  ;;  %v7262_v0 = vld [vmem:[%s8331_s23 + $0x5e4] sm:$0xf] }
 0x1fc   : > { %v3562_v6 = vadd.f32 %v3561_v34, %v9046_v38  ;;  %v9080_v57 = vpop.f32.mrf.mxu2  ;;  %v7184_v34 = vld [vmem:[%s8331_s23 + $0x374] sm:$0xf]  ;;  %3952 = vmatmul.bf16.vlgmr.msrb.gmra.mxu1 %v8499_v18  ;;  %3971 = vmatmul.bf16.vlgmr.msrb.gmra.mxu2 %v8509_v43 }
 0x1fd   : > { %4002 = vmatpush.bf16.msra.mxu0 %v5910_v61  ;;  %3989 = vmatpush.bf16.msrb.mxu3 %v6722_v30  ;;  %v9082_v61 = vpop.f32.mrf.mxu3  ;;  %v6219_v30 = vld [vmem:[%s8331_s23 + $0x3b8] sm:$0xf0] }
 0x1fe   : > { %v9091_v28 = vadd.f32 %v3580_v54, %v3562_v6  ;;  %v6222_v56 = vor.u32 %v7190_v5, %v6219_v30  ;;  %v6195_v54 = vld [vmem:[%s8331_s23 + $0x388] sm:$0xf0]  ;;  %v3612_v6 = vadd.f32 %v9027_v22, %v3593_v37 }
 0x1ff   : > { %4040 = vmatpush.bf16.msra.mxu2 %v6294_v11  ;;  %v5862_v11 = vor.u32 %v7100_v13, %v5859_v35  ;;  %4021 = vmatpush.bf16.msra.mxu1 %v6102_v51  ;;  %v6078_v13 = vor.u32 %v7154_v19, %v6075_v25  ;;  %v5838_v35 = vor.u32 %v7094_v16, %v5835_v32  ;;  %v7256_v51 = vld [vmem:[%s8331_s23 + $0x5b4] sm:$0xf]  ;;  %v6483_v19 = vld [vmem:[%s8331_s23 + $0x5c8] sm:$0xf0] }
 0x200   : > { %v6486_v16 = vor.u32 %v7256_v51, %v6483_v19  ;;  %v3576_v32 = vadd.f32 %v9019_v55, %v3557_v49  ;;  %v6198_v37 = vor.u32 %v7184_v34, %v6195_v54  ;;  %v7076_v54 = vld [vmem:[%s8331_s23 + $0x14] sm:$0xf]  ;;  %v6003_v51 = vld [vmem:[%s8331_s23 + $0x208] sm:$0xf0]  ;;  %3990 = vmatmul.bf16.vlgmr.msrb.gmra.mxu3 %v8511_v44 }
 0x201   : > { %4003 = vmatpush.bf16.msra.mxu0 %v5886_v52  ;;  %v6507_v52 = vld [vmem:[%s8331_s23 + $0x5f8] sm:$0xf0]  ;;  %v7172_v19 = vld [vmem:[%s8331_s23 + $0x314] sm:$0xf] }
 0x202   : > { %v6510_v60 = vor.u32 %v7262_v0, %v6507_v52  ;;  %v7082_v0 = vld [vmem:[%s8331_s23 + $0x44] sm:$0xf]  ;;  %v3595_v55 = vadd.f32 %v9056_v27, %v3576_v32  ;;  %v5763_v27 = vld [vmem:[%s8331_s23 + $0x28] sm:$0xf0] }
 0x203   : > { %4041 = vmatpush.bf16.msra.mxu2 %v6270_v29  ;;  %v7088_v29 = vld [vmem:[%s8331_s23 + $0x74] sm:$0xf]  ;;  %v3630_v25 = vpop.f32.mrf.mxu0  ;;  %v3649_v1 = vpop.f32.mrf.mxu1  ;;  %4022 = vmatpush.bf16.msra.mxu1 %v6078_v13  ;;  %v7142_v52 = vld [vmem:[%s8331_s23 + $0x224] sm:$0xf] }
 0x204   : > { %4058 = vmatpush.bf16.msra.mxu3 %v6510_v60  ;;  %v3631_v22 = vadd.f32 %v3630_v25, %v3612_v6  ;;  %v9107_v5 = vpop.f32.mrf.mxu2  ;;  %v6027_v60 = vld [vmem:[%s8331_s23 + $0x238] sm:$0xf0]  ;;  %v7178_v13 = vld [vmem:[%s8331_s23 + $0x344] sm:$0xf]  ;;  %v7136_v6 = vld [vmem:[%s8331_s23 + $0x1f4] sm:$0xf] }
 0x205   : > { %4004 = vmatpush.bf16.msra.mxu0 %v5862_v11  ;;  %v5814_v11 = vor.u32 %v7088_v29, %v5811_v4  ;;  %v9109_v30 = vpop.f32.mrf.mxu3  ;;  %v5787_v29 = vld [vmem:[%s8331_s23 + $0x58] sm:$0xf0]  ;;  %v6147_v25 = vld [vmem:[%s8331_s23 + $0x328] sm:$0xf0] }
 0x206   : > { %v6171_v4 = vld [vmem:[%s8331_s23 + $0x358] sm:$0xf0]  ;;  %v3650_v49 = vadd.f32 %v3649_v1, %v3631_v22 }
 0x207   : > { %4042 = vmatpush.bf16.msra.mxu2 %v6246_v15  ;;  %v6054_v15 = vor.u32 %v7148_v41, %v6051_v47  ;;  %v6030_v41 = vor.u32 %v7142_v52, %v6027_v60  ;;  %v5790_v47 = vor.u32 %v7082_v0, %v5787_v29  ;;  %v6174_v34 = vor.u32 %v7178_v13, %v6171_v4  ;;  %v7130_v0 = vld [vmem:[%s8331_s23 + $0x1c4] sm:$0xf]  ;;  %v5979_v4 = vld [vmem:[%s8331_s23 + $0x1d8] sm:$0xf0] }
 0x208   : > { %4059 = vmatpush.bf16.msra.mxu3 %v6486_v16  ;;  %4213 = vrot.lane.b32.xlu1 %v3650_v49, %s7813_s16  ;;  %v6699_v16 = vld [vmem:[%s8331_s23 + $0x778] sm:$0xf0]  ;;  %v5766_v29 = vor.u32 %v7076_v54, %v5763_v27  ;;  %v6150_v13 = vor.u32 %v7172_v19, %v6147_v25  ;;  %v7304_v54 = vld [vmem:[%s8331_s23 + $0x734] sm:$0xf]  ;;  %v5955_v25 = vld [vmem:[%s8331_s23 + $0x1a8] sm:$0xf0] }
 0x209   : > { %4005 = vmatpush.bf16.msra.mxu0 %v5838_v35  ;;  %v7250_v35 = vld [vmem:[%s8331_s23 + $0x584] sm:$0xf]  ;;  %4023 = vmatpush.bf16.msra.mxu1 %v6054_v15  ;;  %v3614_v15 = vadd.f32 %v9058_v62, %v3595_v55  ;;  %v7244_v55 = vld [vmem:[%s8331_s23 + $0x554] sm:$0xf] }
 0x20a   : > { %4328 = vrot.lane.b32.xlu2 %v3650_v49, %s7814_s20  ;;  %v6435_v49 = vld [vmem:[%s8331_s23 + $0x568] sm:$0xf0]  ;;  %v7124_v19 = vld [vmem:[%s8331_s23 + $0x194] sm:$0xf]  ;;  %3938 = vmatmul.bf16.gmra.mxu0 %v8543_v36 }
 0x20b   : > { %4043 = vmatpush.bf16.msra.mxu2 %v6222_v56  ;;  %v6459_v56 = vld [vmem:[%s8331_s23 + $0x598] sm:$0xf0]  ;;  %v3632_v32 = vpop.f32.mrf.mxu0  ;;  %v3651_v22 = vpop.f32.mrf.mxu1  ;;  %v6438_v27 = vor.u32 %v7244_v55, %v6435_v49  ;;  %v6867_v55 = vld [vmem:[%s8331_s23 + $0x8c8] sm:$0xf0]  ;;  %v7232_v49 = vld [vmem:[%s8331_s23 + $0x4f4] sm:$0xf] }
 0x20c   : > { %v6462_v1 = vor.u32 %v7250_v35, %v6459_v56  ;;  %v3633_v62 = vadd.f32 %v3632_v32, %v3614_v15  ;;  %v9136_v52 = vpop.f32.mrf.mxu2  ;;  %v9629_v56 = vperm.slane %v8458_v21, 1  ;;  %v6411_v15 = vld [vmem:[%s8331_s23 + $0x538] sm:$0xf0]  ;;  %v7298_v32 = vld [vmem:[%s8331_s23 + $0x704] sm:$0xf]  ;;  %3957 = vmatmul.bf16.gmra.mxu1 %v8549_v42  ;;  %3976 = vmatmul.bf16.gmra.mxu2 %v8561_v58 }
 0x20d   : > { %4006 = vmatpush.bf16.msra.mxu0 %v5814_v11  ;;  %v7310_v11 = vld [vmem:[%s8331_s23 + $0x764] sm:$0xf]  ;;  %4024 = vmatpush.bf16.msra.mxu1 %v6030_v41  ;;  %v9138_v60 = vpop.f32.mrf.mxu3 }
 0x20e   : > { %v6702_v35 = vor.u32 %v7310_v11, %v6699_v16  ;;  %4060 = vmatpush.bf16.msra.mxu3 %v6462_v1  ;;  %v1533_v41 = vadd.f32 %v8616_v24, %v9629_v56  ;;  %v7358_v24 = vld [vmem:[%s8331_s23 + $0x8e4] sm:$0xf] }
 0x20f   : > { %4044 = vmatpush.bf16.msra.mxu2 %v6198_v37  ;;  %v6006_v37 = vor.u32 %v7136_v6, %v6003_v51  ;;  %v6675_v6 = vld [vmem:[%s8331_s23 + $0x748] sm:$0xf0]  ;;  %v5982_v51 = vor.u32 %v7130_v0, %v5979_v4  ;;  %v7238_v1 = vld [vmem:[%s8331_s23 + $0x524] sm:$0xf] }
 0x210   : > { %v1547_v11 = vadd.f32 %v8619_v26, %v1533_v41  ;;  %v5958_v26 = vor.u32 %v7124_v19, %v5955_v25  ;;  %v7226_v19 = vld [vmem:[%s8331_s23 + $0x4c4] sm:$0xf]  ;;  %v6363_v25 = vld [vmem:[%s8331_s23 + $0x4d8] sm:$0xf0]  ;;  %3995 = vmatmul.bf16.gmra.mxu3 %v8563_v59 }
 0x211   : > { %4007 = vmatpush.bf16.msra.mxu0 %v5790_v47  ;;  %v3484_v47 = vadd.f32 %v8940_v12, %v8881_v48  ;;  %4025 = vmatpush.bf16.msra.mxu1 %v6006_v37  ;;  %v6678_v48 = vor.u32 %v7304_v54, %v6675_v6  ;;  %v6891_v12 = vld [vmem:[%s8331_s23 + $0x8f8] sm:$0xf0]  ;;  %v6627_v54 = vld [vmem:[%s8331_s23 + $0x6e8] sm:$0xf0] }
 0x212   : > { %4434 = vrot.lane.b32.xlu2 %v8797_v46, %s7815_s10  ;;  %4061 = vmatpush.bf16.msra.mxu3 %v6438_v27  ;;  %v6894_v46 = vor.u32 %v7358_v24, %v6891_v12  ;;  %v1561_v56 = vadd.f32 %v8709_v31, %v1547_v11  ;;  %v7346_v31 = vld [vmem:[%s8331_s23 + $0x884] sm:$0xf]  ;;  %v6843_v27 = vld [vmem:[%s8331_s23 + $0x898] sm:$0xf0] }
 0x213   : > { %4045 = vmatpush.bf16.msra.mxu2 %v6174_v34  ;;  %v3652_v34 = vadd.f32 %v3651_v22, %v3633_v62  ;;  %v3503_v16 = vadd.f32 %v8944_v23, %v3484_v47  ;;  %v6651_v22 = vld [vmem:[%s8331_s23 + $0x718] sm:$0xf0]  ;;  %v9167_v37 = vpop.f32.mrf.mxu1  ;;  %v7292_v47 = vld [vmem:[%s8331_s23 + $0x6d4] sm:$0xf] }
 0x214   : > { %v9170_v0 = vpop.f32.mrf.mxu2  ;;  %v6654_v4 = vor.u32 %v7298_v32, %v6651_v22  ;;  %v1575_v24 = vadd.f32 %v8714_v40, %v1561_v56  ;;  %v6603_v12 = vld [vmem:[%s8331_s23 + $0x6b8] sm:$0xf0]  ;;  %v6846_v32 = vor.u32 %v7346_v31, %v6843_v27  ;;  %v7340_v22 = vld [vmem:[%s8331_s23 + $0x854] sm:$0xf] }
 0x215   : > { %4008 = vmatpush.bf16.msra.mxu0 %v5766_v29  ;;  %4217 = vrot.lane.b32.xlu0 %v3652_v34, %s7813_s16  ;;  %v3522_v23 = vadd.f32 %v8975_v50, %v3503_v16  ;;  %v9172_v62 = vpop.f32.mrf.mxu3  ;;  %v7352_v29 = vld [vmem:[%s8331_s23 + $0x8b4] sm:$0xf]  ;;  %v9630_v50 = vperm.slane %v8458_v21, 2 }
 0x216   : > { %4026 = vmatpush.bf16.msra.mxu1 %v5982_v51  ;;  %v6870_v6 = vor.u32 %v7352_v29, %v6867_v55  ;;  %v1589_v40 = vadd.f32 %v8725_v63, %v1575_v24  ;;  %v6819_v63 = vld [vmem:[%s8331_s23 + $0x868] sm:$0xf0]  ;;  %v7280_v55 = vld [vmem:[%s8331_s23 + $0x674] sm:$0xf] }
 0x217   : > { %4046 = vmatpush.bf16.msra.mxu2 %v6150_v13  ;;  %v6414_v13 = vor.u32 %v7238_v1, %v6411_v15  ;;  %v1617_v41 = vadd.f32 %v8767_v33, %v9630_v50  ;;  %v6630_v33 = vor.u32 %v7292_v47, %v6627_v54  ;;  %v6339_v29 = vld [vmem:[%s8331_s23 + $0x4a8] sm:$0xf0]  ;;  %v6822_v56 = vor.u32 %v7340_v22, %v6819_v63  ;;  %v6795_v54 = vld [vmem:[%s8331_s23 + $0x838] sm:$0xf0]  ;;  %v7328_v24 = vld [vmem:[%s8331_s23 + $0x7f4] sm:$0xf] }
 0x218   : > { %v9632_v22 = vld [vmem:[#allocation21_spill] sm:$0xff] }
 0x219   : > { %4077 = vmatpush.bf16.msrb.mxu0 %v6702_v35  ;;  %v6387_v35 = vld [vmem:[%s8331_s23 + $0x508] sm:$0xf0]  ;;  %4062 = vmatpush.bf16.msra.mxu3 %v6414_v13 }
 0x21a   : > { %4027 = vmatpush.bf16.msra.mxu1 %v5958_v26  ;;  %v6390_v51 = vor.u32 %v7232_v49, %v6387_v35  ;;  %v6366_v26 = vor.u32 %v7226_v19, %v6363_v25  ;;  %v6579_v49 = vld [vmem:[%s8331_s23 + $0x688] sm:$0xf0]  ;;  %v9229_v35 = vadd.f32 %v8730_v3, %v1589_v40  ;;  %v7274_v3 = vld [vmem:[%s8331_s23 + $0x644] sm:$0xf]  ;;  %4009 = vmatmul.bf16.vlgmr.msra.gmra.mxu0 %v9632_v22 }
 0x21b   : > { %6895 = vmatpush.xpose.msk.msrb.mxu2 %vm4115_vm0, %v8956_v53  ;;  %v9165_v53 = vpop.f32.mrf.mxu0  ;;  %v9205_v15 = vpop.f32.mrf.mxu1  ;;  %v6582_v47 = vor.u32 %v7280_v55, %v6579_v49  ;;  %v6531_v40 = vld [vmem:[%s8331_s23 + $0x628] sm:$0xf0]  ;;  %v9639_v22 = vld [vmem:[#allocation26_spill] sm:$0xff] }
 0x21c   : > { %v9215_v11 = vpop.f32.mrf.mxu2  ;;  %4047 = vmatmul.bf16.vlgmr.msra.gmra.mxu2 %v8493_v14 }
 0x21d   : > { %4078 = vmatpush.bf16.msrb.mxu0 %v6678_v48  ;;  %4332 = vrot.lane.b32.xlu0 %v3652_v34, %s7814_s20  ;;  %v7286_v48 = vld [vmem:[%s8331_s23 + $0x6a4] sm:$0xf]  ;;  %v9217_v16 = vpop.f32.mrf.mxu3 }
 0x21e   : > { %4096 = vmatpush.bf16.msrb.mxu1 %v6894_v46  ;;  %4063 = vmatpush.bf16.msra.mxu3 %v6390_v51  ;;  %v7220_v46 = vld [vmem:[%s8331_s23 + $0x494] sm:$0xf] }
 0x21f   : > { %6896 = vmatpush.xpose.msk.msrb.mxu2 %vm4115_vm0, %v8930_v2  ;;  %v9188_v2 = vadd.f32 %v8977_v8, %v3522_v23  ;;  %v1631_v8 = vadd.f32 %v8770_v45, %v1617_v41  ;;  %v9210_v45 = vld [vmem:[%s8840_s30] sm:$0x3f]  ;;  %v6606_v23 = vor.u32 %v7286_v48, %v6603_v12  ;;  %v6342_v50 = vor.u32 %v7220_v46, %v6339_v29  ;;  %v7268_v12 = vld [vmem:[%s8331_s23 + $0x614] sm:$0xf] }
 0x220   : > { %v9213_v34 = vperm.slane %v9210_v45, 2  ;;  %v9634_v46 = vld [vmem:[#allocation22_spill] sm:$0xff]  ;;  %v6534_v29 = vor.u32 %v7268_v12, %v6531_v40  ;;  %v9638_v12 = vld [vmem:[#allocation24_spill] sm:$0xff] }
 0x221   : > { %4079 = vmatpush.bf16.msrb.mxu0 %v6654_v4  ;;  %4636 = vrot.lane.b32.xlu2 %v9188_v2, %s7813_s16  ;;  %v1645_v13 = vadd.f32 %v8783_v7, %v1631_v8  ;;  %v3560_v4 = vadd.f32 %v9050_v39, %v9046_v38  ;;  %v7334_v7 = vld [vmem:[%s8331_s23 + $0x824] sm:$0xf]  ;;  %v6771_v8 = vld [vmem:[%s8331_s23 + $0x808] sm:$0xf0] }
 0x222   : > { %4097 = vmatpush.bf16.msrb.mxu1 %v6870_v6  ;;  %4064 = vmatpush.bf16.msra.mxu3 %v6366_v26  ;;  %v3669_v41 = vadd.f32 %v9136_v52, %v9213_v34  ;;  %v6555_v6 = vld [vmem:[%s8331_s23 + $0x658] sm:$0xf0]  ;;  %v9631_v52 = vld [vmem:[#allocation30_spill] sm:$0xff]  ;;  %v9633_v26 = vld [vmem:[#allocation31_spill] sm:$0xff]  ;;  %v6774_v63 = vor.u32 %v7328_v24, %v6771_v8 }
 0x223   : > { %v9203_v1 = vpop.f32.mrf.mxu0  ;;  %v1659_v38 = vadd.f32 %v8785_v9, %v1645_v13  ;;  %v3579_v39 = vadd.f32 %v9052_v10, %v3560_v4  ;;  %v3725_v51 = vpop.f32.mrf.mxu1  ;;  %v6798_v9 = vor.u32 %v7334_v7, %v6795_v54  ;;  %v6558_v25 = vor.u32 %v7274_v3, %v6555_v6  ;;  %4028 = vmatmul.bf16.vlgmr.msra.gmra.mxu1 %v9634_v46  ;;  %v7322_v13 = vld [vmem:[%s8331_s23 + $0x7c4] sm:$0xf]  ;;  %v6747_v4 = vld [vmem:[%s8331_s23 + $0x7d8] sm:$0xf0]  ;;  %v7316_v54 = vld [vmem:[%s8331_s23 + $0x794] sm:$0xf] }
 0x224   : > { %v9242_v27 = vpop.f32.mrf.mxu2  ;;  %v3688_v10 = vadd.f32 %v9138_v60, %v3669_v41  ;;  %v3671_v60 = vadd.f32 %v9170_v0, %v9213_v34 }
 0x225   : > { %4080 = vmatpush.bf16.msrb.mxu0 %v6630_v33  ;;  %v1673_v33 = vadd.f32 %v9631_v52, %v1659_v38  ;;  %v9244_v19 = vpop.f32.mrf.mxu3  ;;  %v3598_v48 = vadd.f32 %v9080_v57, %v3579_v39  ;;  %v6723_v38 = vld [vmem:[%s8331_s23 + $0x7a8] sm:$0xf0]  ;;  %v9635_v39 = vld [vmem:[#allocation32_spill] sm:$0xff] }
 0x226   : > { %4098 = vmatpush.bf16.msrb.mxu1 %v6846_v32  ;;  %4065 = vmatpush.bf16.msra.mxu3 %v6342_v50  ;;  %v3690_v7 = vadd.f32 %v9172_v62, %v3671_v60 }
 0x227   : > { %v3617_v57 = vadd.f32 %v9082_v61, %v3598_v48  ;;  %v3676_v48 = vadd.f32 %v9242_v27, %v9213_v34  ;;  %v9640_v27 = vld [vmem:[#allocation27_spill] sm:$0xff] }
 0x229   : > { %4081 = vmatpush.bf16.msrb.mxu0 %v6606_v23  ;;  %4631 = vrot.lane.b32.xlu2 %v9229_v35, %s7813_s16  ;;  %v1687_v23 = vadd.f32 %v9633_v26, %v1673_v33  ;;  %v3636_v0 = vadd.f32 %v9165_v53, %v3617_v57 }
 0x22a   : > { %4099 = vmatpush.bf16.msrb.mxu1 %v6822_v56  ;;  %4066 = vmatmul.bf16.vlgmr.msra.gmra.mxu3 %v8499_v18  ;;  %v6726_v18 = vor.u32 %v7316_v54, %v6723_v38 }
 0x22b   : > { %v3706_v31 = vpop.f32.mrf.mxu0  ;;  %v3727_v56 = vpop.f32.mrf.mxu1  ;;  %v3655_v6 = vadd.f32 %v9167_v37, %v3636_v0  ;;  %4014 = vmatmul.bf16.gmra.mxu0 %v8449_v17 }
 0x22c   : > { %v3707_v32 = vadd.f32 %v3706_v31, %v3688_v10  ;;  %v3744_v50 = vpop.f32.mrf.mxu2  ;;  %4052 = vmatmul.bf16.gmra.mxu2 %v8543_v36  ;;  %v9636_v10 = vperm.slane %v8458_v21, 0  ;;  %v3695_v21 = vadd.f32 %v9244_v19, %v3676_v48  ;;  %v9641_v19 = vld [vmem:[#allocation25_spill] sm:$0xff] }
 0x22d   : > { %4082 = vmatpush.bf16.msrb.mxu0 %v6582_v47  ;;  %v3763_v41 = vpop.f32.mrf.mxu3  ;;  %v6750_v47 = vor.u32 %v7322_v13, %v6747_v4  ;;  %v9642_v4 = vld [vmem:[#allocation28_spill] sm:$0xff] }
 0x22e   : > { %4100 = vmatpush.bf16.msrb.mxu1 %v6798_v9  ;;  %v3726_v55 = vadd.f32 %v3725_v51, %v3707_v32 }
 0x230   : > { %v3745_v61 = vadd.f32 %v3744_v50, %v3726_v55 }
 0x231   : > { %4083 = vmatpush.bf16.msrb.mxu0 %v6558_v25  ;;  %4858 = vrot.lane.b32.xlu2 %v1687_v23, %s7815_s10  ;;  %v9637_v25 = vld [vmem:[#allocation23_spill] sm:$0xff] }
 0x232   : > { %4101 = vmatpush.bf16.msrb.mxu1 %v6774_v63  ;;  %v3764_v3 = vadd.f32 %v3763_v41, %v3745_v61  ;;  %v1449_v24 = vadd.f32 %v9637_v25, %v9636_v10 }
 0x233   : > { %v3708_v49 = vpop.f32.mrf.mxu0  ;;  %v3730_v31 = vpop.f32.mrf.mxu1  ;;  %4033 = vmatmul.bf16.gmra.mxu1 %v8454_v20  ;;  %v3600_v20 = vadd.f32 %v9107_v5, %v9091_v28 }
 0x234   : > { %v3709_v14 = vadd.f32 %v3708_v49, %v3690_v7  ;;  %4330 = vrot.lane.b32.xlu0 %v3764_v3, %s7814_s20  ;;  %v3746_v51 = vpop.f32.mrf.mxu2  ;;  %v1463_v40 = vadd.f32 %v9638_v12, %v1449_v24 }
 0x235   : > { %4084 = vmatpush.bf16.msrb.mxu0 %v6534_v29  ;;  %v3765_v33 = vpop.f32.mrf.mxu3  ;;  %v3619_v36 = vadd.f32 %v9109_v30, %v3600_v20  ;;  %v3674_v30 = vadd.f32 %v9215_v11, %v9213_v34 }
 0x236   : > { %4102 = vmatpush.bf16.msrb.mxu1 %v6750_v47  ;;  %v3728_v53 = vadd.f32 %v3727_v56, %v3709_v14  ;;  %v1477_v26 = vadd.f32 %v9639_v22, %v1463_v40  ;;  %v9643_v56 = vld [vmem:[#allocation29_spill] sm:$0xff] }
 0x238   : > { %v3747_v52 = vadd.f32 %v3746_v51, %v3728_v53  ;;  %v1491_v60 = vadd.f32 %v9640_v27, %v1477_v26 }
 0x239   : > { %6911 = vmatpush.xpose.msk.msra.mxu0 %vm4115_vm0, %v9635_v39  ;;  %4752 = vrot.lane.b32.xlu2 %v3655_v6, %s7814_s20 }
 0x23a   : > { %4103 = vmatpush.bf16.msrb.mxu1 %v6726_v18  ;;  %v3766_v9 = vadd.f32 %v3765_v33, %v3747_v52  ;;  %4071 = vmatmul.bf16.gmra.mxu3 %v8549_v42  ;;  %v1505_v57 = vadd.f32 %v9642_v4, %v1491_v60 }
 0x23b   : > { %v3711_v62 = vpop.f32.mrf.mxu0  ;;  %4085 = vmatmul.bf16.vlgmr.msrb.gmra.mxu0 %v8509_v43 }
 0x23c   : > { %4640 = vrot.lane.b32.xlu0 %v9635_v39, %s7813_s16  ;;  %4334 = vrot.lane.b32.xlu1 %v3766_v9, %s7814_s20  ;;  %v3749_v17 = vpop.f32.mrf.mxu2 }
 0x23d   : > { %6912 = vmatpush.xpose.msk.msra.mxu0 %vm4115_vm0, %v9188_v2  ;;  %v3732_v2 = vpop.f32.mrf.mxu1  ;;  %v3768_v8 = vpop.f32.mrf.mxu3  ;;  %6897 = vmatmul.msk.f32.vlgmr.msrb.gmra.mxu2 %vm4115_vm0, %v9641_v19 }
 0x241   : > { %4747 = vrot.lane.b32.xlu2 %v1687_v23, %s7814_s20  ;;  %v3638_v23 = vadd.f32 %v9203_v1, %v3619_v36 }
 0x243   : > { %v3713_v37 = vpop.f32.mrf.mxu0  ;;  %v3657_v46 = vadd.f32 %v9205_v15, %v3638_v23  ;;  %4104 = vmatmul.bf16.vlgmr.msrb.gmra.mxu1 %v8511_v44  ;;  %v3693_v15 = vadd.f32 %v9217_v16, %v3674_v30  ;;  %v1519_v44 = vadd.f32 %v9643_v56, %v1505_v57  ;;  %v1982_v16 = vperm.slane %v9210_v45, 3 }
 0x244   : > { %4438 = vrot.lane.b32.xlu0 %v3766_v9, %s7815_s10  ;;  %4436 = vrot.lane.b32.xlu1 %v3764_v3, %s7815_s10  ;;  %v3714_v28 = vadd.f32 %v3713_v37, %v3695_v21  ;;  %v3751_v5 = vpop.f32.mrf.mxu2 }
 0x245   : > { %v3801_v32 = vpop.f32.mrf.mxu1  ;;  %v3770_v63 = vpop.f32.mrf.mxu3  ;;  %v3712_v34 = vadd.f32 %v3711_v62, %v3693_v15 }
 0x246   : > { %v3733_v29 = vadd.f32 %v3732_v2, %v3714_v28  ;;  %v1983_v2 = vperm.slane %v9210_v45, 4 }
 0x247   : > { %v3731_v0 = vadd.f32 %v3730_v31, %v3712_v34 }
 0x248   : > { %v3752_v1 = vadd.f32 %v3751_v5, %v3733_v29 }
 0x249   : > { %v3750_v50 = vadd.f32 %v3749_v17, %v3731_v0 }
 0x24a   : > { %v3771_v11 = vadd.f32 %v3770_v63, %v3752_v1  ;;  %v4216_v1 = vpop.permute.xlu0 %4215 }
 0x24b   : > { %v3782_v42 = vpop.f32.mrf.mxu0  ;;  %4090 = vmatmul.bf16.gmra.mxu0 %v8561_v58  ;;  %v3769_v54 = vadd.f32 %v3768_v8, %v3750_v50 }
 0x24c   : > { %4638 = vrot.lane.b32.xlu0 %v3655_v6, %s7813_s16  ;;  %4642 = vrot.lane.b32.xlu1 %v3657_v46, %s7813_s16  ;;  %v3820_v55 = vpop.f32.mrf.mxu2  ;;  %v3783_v38 = vadd.f32 %v3782_v42, %v1982_v16 }
 0x24d   : > { %v3803_v43 = vpop.f32.mrf.mxu1  ;;  %v3839_v49 = vpop.f32.mrf.mxu3 }
 0x24e   : > { %v3802_v53 = vadd.f32 %v3801_v32, %v3783_v38 }
 0x250   : > { %v3821_v58 = vadd.f32 %v3820_v55, %v3802_v53 }
 0x252   : > { %v3840_v9 = vadd.f32 %v3839_v49, %v3821_v58 }
 0x253   : > { %v3784_v13 = vpop.f32.mrf.mxu0  ;;  %4109 = vmatmul.bf16.gmra.mxu1 %v8563_v59 }
 0x254   : > { %4862 = vrot.lane.b32.xlu0 %v3771_v11, %s7815_s10  ;;  %4629 = vrot.lane.b32.xlu1 %v1519_v44, %s7813_s16  ;;  %v3822_v7 = vpop.f32.mrf.mxu2  ;;  %v3785_v3 = vadd.f32 %v3784_v13, %v1982_v16 }
 0x255   : > { %v3806_v47 = vpop.f32.mrf.mxu1  ;;  %v3841_v61 = vpop.f32.mrf.mxu3 }
 0x256   : > { %v3804_v62 = vadd.f32 %v3803_v43, %v3785_v3 }
 0x258   : > { %v3823_v51 = vadd.f32 %v3822_v7, %v3804_v62 }
 0x25a   : > { %v3842_v37 = vadd.f32 %v3841_v61, %v3823_v51 }
 0x25b   : > { %v3787_v41 = vpop.f32.mrf.mxu0  ;;  %6913 = vmatmul.msk.f32.vlgmr.msra.gmra.mxu0 %vm4115_vm0, %v1519_v44 }
 0x25c   : > { %4756 = vrot.lane.b32.xlu0 %v3657_v46, %s7814_s20  ;;  %4860 = vrot.lane.b32.xlu1 %v3769_v54, %s7815_s10  ;;  %v3825_v6 = vpop.f32.mrf.mxu2  ;;  %v3788_v10 = vadd.f32 %v3787_v41, %v1982_v16 }
 0x25d   : > { %v3808_v14 = vpop.f32.mrf.mxu1  ;;  %v3844_v18 = vpop.f32.mrf.mxu3 }
 0x25e   : > { %v3807_v36 = vadd.f32 %v3806_v47, %v3788_v10 }
 0x260   : > { %v3826_v26 = vadd.f32 %v3825_v6, %v3807_v36 }
 0x262   : > { %v3845_v60 = vadd.f32 %v3844_v18, %v3826_v26 }
 0x263   : > { %v3789_v39 = vpop.f32.mrf.mxu0 }
 0x264   : > { %4754 = vrot.lane.b32.xlu0 %v3769_v54, %s7814_s20  ;;  %4758 = vrot.lane.b32.xlu1 %v3771_v11, %s7814_s20  ;;  %v3827_v59 = vpop.f32.mrf.mxu2  ;;  %v3790_v17 = vadd.f32 %v3789_v39, %v1982_v16  ;;  %v4204_v11 = vpop.permute.xlu2 %4203 }
 0x265   : > { %v3877_v52 = vpop.f32.mrf.mxu1  ;;  %v3846_v33 = vpop.f32.mrf.mxu3 }
 0x266   : > { %v3809_v22 = vadd.f32 %v3808_v14, %v3790_v17 }
 0x268   : > { %v3828_v28 = vadd.f32 %v3827_v59, %v3809_v22 }
 0x26a   : > { %v3847_v46 = vadd.f32 %v3846_v33, %v3828_v28 }
 0x26b   : > { %v3858_v31 = vpop.f32.mrf.mxu0 }
 0x26c   : > { %4745 = vrot.lane.b32.xlu1 %v9229_v35, %s7814_s20  ;;  %v3859_v25 = vadd.f32 %v3858_v31, %v3840_v9  ;;  %v3896_v20 = vpop.f32.mrf.mxu2  ;;  %v9327_v35 = vpop.permute.xlu1 %4320 }
 0x26d   : > { %v3879_v48 = vpop.f32.mrf.mxu1  ;;  %v3897_v12 = vadd.f32 %v3896_v20, %v1983_v2  ;;  %v3915_v40 = vpop.f32.mrf.mxu3 }
 0x26e   : > { %v9322_v21 = vadd.f32 %v3877_v52, %v3859_v25  ;;  %v4206_v14 = vpop.permute.xlu2 %4205 }
 0x26f   : > { %v3916_v32 = vadd.f32 %v3915_v40, %v3897_v12  ;;  %v4208_v18 = vsel %vm4207_vm1, %v4204_v11, %v4206_v14 }
 0x273   : > { %v3860_v24 = vpop.f32.mrf.mxu0 }
 0x274   : > { %v3861_v8 = vadd.f32 %v3860_v24, %v3842_v37  ;;  %v3898_v5 = vpop.f32.mrf.mxu2  ;;  %v4212_v30 = vpop.permute.xlu1 %4211 }
 0x275   : > { %v3882_v63 = vpop.f32.mrf.mxu1  ;;  %v3917_v27 = vpop.f32.mrf.mxu3  ;;  %v3899_v47 = vadd.f32 %v3898_v5, %v1983_v2 }
 0x276   : > { %v9324_v42 = vadd.f32 %v3879_v48, %v3861_v8  ;;  %v4323_v8 = vpop.permute.xlu2 %4322 }
 0x277   : > { %v3918_v6 = vadd.f32 %v3917_v27, %v3899_v47 }
 0x278   : > { %4196 = vmatpush.msrb.mxu3 %v9324_v42 }
 0x27a   : > { %4197 = vmatpush.msrb.mxu3 %v9322_v21 }
 0x27b   : > { %v3863_v23 = vpop.f32.mrf.mxu0 }
 0x27c   : > { %v3864_v29 = vadd.f32 %v3863_v23, %v3845_v60  ;;  %v3901_v43 = vpop.f32.mrf.mxu2  ;;  %v4214_v56 = vpop.permute.xlu1 %4213 }
 0x27d   : > { %v3902_v4 = vadd.f32 %v3901_v43, %v1983_v2  ;;  %v3884_v57 = vpop.f32.mrf.mxu1  ;;  %v3920_v15 = vpop.f32.mrf.mxu3  ;;  %v4219_v3 = vsel %vm4207_vm1, %v4212_v30, %v4214_v56 }
 0x27e   : > { %v9330_v55 = vadd.f32 %v3882_v63, %v3864_v29  ;;  %v4329_v23 = vpop.permute.xlu2 %4328 }
 0x27f   : > { %v3921_v34 = vadd.f32 %v3920_v15, %v3902_v4 }
 0x283   : > { %v3865_v19 = vpop.f32.mrf.mxu0 }
 0x284   : > { %v3866_v13 = vadd.f32 %v3865_v19, %v3847_v46  ;;  %v3903_v41 = vpop.f32.mrf.mxu2  ;;  %v1984_v46 = vperm.slane %v9210_v45, 5 }
 0x285   : > { %v3904_v61 = vadd.f32 %v3903_v41, %v1983_v2  ;;  %v3953_v54 = vpop.f32.mrf.mxu1  ;;  %v3922_v16 = vpop.f32.mrf.mxu3 }
 0x286   : > { %v9332_v49 = vadd.f32 %v3884_v57, %v3866_v13  ;;  %v4435_v4 = vpop.permute.xlu2 %4434 }
 0x287   : > { %v4218_v44 = vpop.permute.xlu0 %4217  ;;  %v3923_v39 = vadd.f32 %v3922_v16, %v3904_v61 }
 0x288   : > { %4622 = vmatpush.msra.mxu1 %v9332_v49  ;;  %v4220_v0 = vsel %vm4207_vm1, %v4216_v1, %v4218_v44 }
 0x289   : > { %6899 = vmatpush.xpose.msk.msra.mxu2 %vm4115_vm0, %v4220_v0 }
 0x28a   : > { %4623 = vmatpush.msra.mxu1 %v9330_v55 }
 0x28b   : > { %v3934_v50 = vpop.f32.mrf.mxu0 }
 0x28c   : > { %v3935_v7 = vadd.f32 %v3934_v50, %v3916_v32  ;;  %v3972_v62 = vpop.f32.mrf.mxu2 }
 0x28d   : > { %6900 = vmatpush.xpose.msk.msra.mxu2 %vm4115_vm0, %v4219_v3  ;;  %v3955_v51 = vpop.f32.mrf.mxu1  ;;  %v3991_v59 = vpop.f32.mrf.mxu3 }
 0x28e   : > { %v3954_v38 = vadd.f32 %v3953_v54, %v3935_v7  ;;  %v4637_v54 = vpop.permute.xlu2 %4636 }
 0x28f   : > { %v4333_v40 = vpop.permute.xlu0 %4332 }
 0x290   : > { %6901 = vmatmul.msk.f32.vlgmr.msra.gmra.mxu2 %vm4115_vm0, %v4208_v18  ;;  %v3973_v31 = vadd.f32 %v3972_v62, %v3954_v38  ;;  %v4325_v38 = vsel %vm4324_vm2, %v9327_v35, %v4323_v8 }
 0x292   : > { %v9342_v52 = vadd.f32 %v3991_v59, %v3973_v31 }
 0x293   : > { %v3936_v53 = vpop.f32.mrf.mxu0 }
 0x294   : > { %v3937_v58 = vadd.f32 %v3936_v53, %v3918_v6  ;;  %v7471_v9 = vpack.i.bf16 %v9342_v52, %v9322_v21  ;;  %v3974_v2 = vpop.f32.mrf.mxu2 }
 0x295   : > { %v3958_v24 = vpop.f32.mrf.mxu1  ;;  %v3993_v17 = vpop.f32.mrf.mxu3 }
 0x296   : > { %v3956_v33 = vadd.f32 %v3955_v51, %v3937_v58  ;;  %v4632_v59 = vpop.permute.xlu2 %4631 }
 0x298   : > { %v3975_v25 = vadd.f32 %v3974_v2, %v3956_v33 }
 0x29a   : > { %v9346_v48 = vadd.f32 %v3993_v17, %v3975_v25 }
 0x29b   : > { %v3939_v37 = vpop.f32.mrf.mxu0 }
 0x29c   : > { %v3940_v10 = vadd.f32 %v3939_v37, %v3921_v34  ;;  %v7466_v12 = vpack.i.bf16 %v9346_v48, %v9324_v42  ;;  %v3977_v22 = vpop.f32.mrf.mxu2 }
 0x29d   : > { %v3960_v26 = vpop.f32.mrf.mxu1  ;;  %v3996_v5 = vpop.f32.mrf.mxu3 }
 0x29e   : > { %v3959_v20 = vadd.f32 %v3958_v24, %v3940_v10  ;;  %7467 = vrot.lane.b32.xlu1 %v7466_v12, %s7813_s16 }
 0x2a0   : > { %v3978_v28 = vadd.f32 %v3977_v22, %v3959_v20 }
 0x2a2   : > { %v9351_v27 = vadd.f32 %v3996_v5, %v3978_v28  ;;  %v4859_v5 = vpop.permute.xlu2 %4858 }
 0x2a3   : > { %v3941_v36 = vpop.f32.mrf.mxu0 }
 0x2a4   : > { %v3942_v32 = vadd.f32 %v3941_v36, %v3923_v39  ;;  %v7496_v60 = vpack.i.bf16 %v9351_v27, %v9330_v55  ;;  %v3979_v29 = vpop.f32.mrf.mxu2 }
 0x2a5   : > { %v4029_v1 = vpop.f32.mrf.mxu1  ;;  %v3998_v43 = vpop.f32.mrf.mxu3 }
 0x2a6   : > { %v3961_v63 = vadd.f32 %v3960_v26, %v3942_v32  ;;  %v4331_v30 = vpop.permute.xlu0 %4330 }
 0x2a7   : > { %v4336_v61 = vsel %vm4324_vm2, %v4329_v23, %v4331_v30 }
 0x2a8   : > { %v3980_v13 = vadd.f32 %v3979_v29, %v3961_v63 }
 0x2aa   : > { %v9356_v57 = vadd.f32 %v3998_v43, %v3980_v13 }
 0x2ab   : > { %v4010_v42 = vpop.f32.mrf.mxu0 }
 0x2ac   : > { %v4011_v19 = vadd.f32 %v4010_v42, %v1984_v46  ;;  %v7491_v34 = vpack.i.bf16 %v9356_v57, %v9332_v49  ;;  %v4048_v50 = vpop.f32.mrf.mxu2 }
 0x2ad   : > { %v4031_v41 = vpop.f32.mrf.mxu1  ;;  %v4067_v58 = vpop.f32.mrf.mxu3 }
 0x2ae   : > { %v4030_v15 = vadd.f32 %v4029_v1, %v4011_v19  ;;  %v4641_v11 = vpop.permute.xlu0 %4640  ;;  %v4335_v56 = vpop.permute.xlu1 %4334 }
 0x2af   : > { %v4337_v45 = vsel %vm4324_vm2, %v4333_v40, %v4335_v56 }
 0x2b0   : > { %6903 = vmatpush.xpose.msk.msrb.mxu2 %vm4115_vm0, %v4337_v45  ;;  %v4049_v47 = vadd.f32 %v4048_v50, %v4030_v15 }
 0x2b2   : > { %v4068_v8 = vadd.f32 %v4067_v58, %v4049_v47 }
 0x2b3   : > { %v4012_v44 = vpop.f32.mrf.mxu0 }
 0x2b4   : > { %v4013_v0 = vadd.f32 %v4012_v44, %v1984_v46  ;;  %6904 = vmatpush.xpose.msk.msrb.mxu2 %vm4115_vm0, %v4336_v61  ;;  %v4050_v6 = vpop.f32.mrf.mxu2  ;;  %v4753_v44 = vpop.permute.xlu2 %4752 }
 0x2b5   : > { %v4034_v18 = vpop.f32.mrf.mxu1  ;;  %v4069_v12 = vpop.f32.mrf.mxu3 }
 0x2b6   : > { %v4032_v7 = vadd.f32 %v4031_v41, %v4013_v0  ;;  %v4439_v16 = vpop.permute.xlu0 %4438  ;;  %v4437_v39 = vpop.permute.xlu1 %4436 }
 0x2b7   : > { %6905 = vmatmul.msk.f32.vlgmr.msrb.gmra.mxu2 %vm4115_vm0, %v4325_v38 }
 0x2b8   : > { %6907 = vmatpush.xpose.msk.msra.mxu2 %vm4115_vm0, %v4439_v16  ;;  %v4051_v53 = vadd.f32 %v4050_v6, %v4032_v7 }
 0x2ba   : > { %v4070_v30 = vadd.f32 %v4069_v12, %v4051_v53 }
 0x2bb   : > { %v4015_v14 = vpop.f32.mrf.mxu0 }
 0x2bc   : > { %v4016_v3 = vadd.f32 %v4015_v14, %v1984_v46  ;;  %6908 = vmatpush.xpose.msk.msra.mxu2 %vm4115_vm0, %v4437_v39  ;;  %v4053_v2 = vpop.f32.mrf.mxu2 }
 0x2bd   : > { %v4036_v10 = vpop.f32.mrf.mxu1  ;;  %v4072_v19 = vpop.f32.mrf.mxu3 }
 0x2be   : > { %v4035_v62 = vadd.f32 %v4034_v18, %v4016_v3  ;;  %v4639_v31 = vpop.permute.xlu0 %4638  ;;  %v4643_v51 = vpop.permute.xlu1 %4642 }
 0x2bf   : > { %v4645_v35 = vsel %vm4207_vm1, %v4641_v11, %v4643_v51  ;;  %6909 = vmatmul.msk.f32.vlgmr.msra.gmra.mxu2 %vm4115_vm0, %v4435_v4  ;;  %v4644_v17 = vsel %vm4207_vm1, %v4637_v54, %v4639_v31  ;;  %v4748_v18 = vpop.permute.xlu2 %4747 }
 0x2c0   : > { %6915 = vmatpush.xpose.msk.msrb.mxu2 %vm4115_vm0, %v4645_v35  ;;  %v4054_v25 = vadd.f32 %v4053_v2, %v4035_v62 }
 0x2c2   : > { %v4073_v50 = vadd.f32 %v4072_v19, %v4054_v25 }
 0x2c3   : > { %v4017_v33 = vpop.f32.mrf.mxu0 }
 0x2c4   : > { %v4018_v37 = vadd.f32 %v4017_v33, %v1984_v46  ;;  %6916 = vmatpush.xpose.msk.msrb.mxu2 %vm4115_vm0, %v4644_v17  ;;  %v4055_v26 = vpop.f32.mrf.mxu2 }
 0x2c5   : > { %v4105_v23 = vpop.f32.mrf.mxu1  ;;  %v4074_v38 = vpop.f32.mrf.mxu3 }
 0x2c6   : > { %v4037_v24 = vadd.f32 %v4036_v10, %v4018_v37  ;;  %v4863_v20 = vpop.permute.xlu0 %4862  ;;  %v4630_v40 = vpop.permute.xlu1 %4629 }
 0x2c7   : > { %v4633_v32 = vsel %vm4207_vm1, %v4630_v40, %v4632_v59 }
 0x2c8   : > { %6923 = vmatpush.xpose.msk.msra.mxu2 %vm4115_vm0, %v4863_v20  ;;  %v4056_v28 = vadd.f32 %v4055_v26, %v4037_v24 }
 0x2c9   : > { %6917 = vmatmul.msk.f32.vlgmr.msrb.gmra.mxu2 %vm4115_vm0, %v4633_v32 }
 0x2ca   : > { %v4075_v6 = vadd.f32 %v4074_v38, %v4056_v28 }
 0x2cb   : > { %v4086_v36 = vpop.f32.mrf.mxu0 }
 0x2cc   : > { %v4087_v22 = vadd.f32 %v4086_v36, %v4068_v8  ;;  %v4142_v43 = vpop.f32.mrf.mxu2 }
 0x2cd   : > { %v4107_v4 = vpop.f32.mrf.mxu1  ;;  %v4145_v15 = vmul.f32 0.03608439, %v4142_v43 }
 0x2ce   : > { %v9377_v63 = vadd.f32 %v4105_v23, %v4087_v22  ;;  %v4757_v42 = vpop.permute.xlu0 %4756  ;;  %v4861_v29 = vpop.permute.xlu1 %4860 }
 0x2cf   : > { %6924 = vmatpush.xpose.msk.msra.mxu2 %vm4115_vm0, %v4861_v29  ;;  %v4147_v56 = vsel %vm4146_vm3, %v4145_v15, -inf }
 0x2d0   : > { %v7481_v46 = vpack.i.bf16 %v9377_v63, %v9342_v52  ;;  %4148 = vmax.xlane.f32.xlu0 %v4147_v56 }
 0x2d2   : > { %6925 = vmatmul.msk.f32.vlgmr.msra.gmra.mxu2 %vm4115_vm0, %v4859_v5 }
 0x2d3   : > { %v4088_v1 = vpop.f32.mrf.mxu0 }
 0x2d4   : > { %v4089_v13 = vadd.f32 %v4088_v1, %v4070_v30 }
 0x2d5   : > { %v4110_v16 = vpop.f32.mrf.mxu1 }
 0x2d6   : > { %v9382_v11 = vadd.f32 %v4107_v4, %v4089_v13  ;;  %v4759_v41 = vpop.permute.xlu1 %4758  ;;  %v4755_v54 = vpop.permute.xlu0 %4754 }
 0x2d7   : > { %v4761_v7 = vsel %vm4324_vm2, %v4757_v42, %v4759_v41  ;;  %v4760_v14 = vsel %vm4324_vm2, %v4753_v44, %v4755_v54 }
 0x2d8   : > { %v7486_v45 = vpack.i.bf16 %v9377_v63, %v9382_v11  ;;  %v7476_v0 = vpack.i.bf16 %v9382_v11, %v9346_v48  ;;  %6919 = vmatpush.xpose.msk.msrb.mxu0 %vm4115_vm0, %v4761_v7 }
 0x2db   : > { %v4091_v47 = vpop.f32.mrf.mxu0 }
 0x2dc   : > { %v4092_v61 = vadd.f32 %v4091_v47, %v4073_v50  ;;  %6920 = vmatpush.xpose.msk.msrb.mxu0 %vm4115_vm0, %v4760_v14 }
 0x2dd   : > { %v4112_v51 = vpop.f32.mrf.mxu1 }
 0x2de   : > { %v9392_v39 = vadd.f32 %v4110_v16, %v4092_v61  ;;  %v4746_v53 = vpop.permute.xlu1 %4745 }
 0x2df   : > { %v4749_v58 = vsel %vm4324_vm2, %v4746_v53, %v4748_v18 }
 0x2e0   : > { %v7511_v3 = vpack.i.bf16 %v9392_v39, %v9351_v27  ;;  %6921 = vmatmul.msk.f32.vlgmr.msrb.gmra.mxu0 %vm4115_vm0, %v4749_v58 }
 0x2e3   : > { %v4093_v62 = vpop.f32.mrf.mxu0 }
 0x2e4   : > { %v4094_v31 = vadd.f32 %v4093_v62, %v4075_v6 }
 0x2e6   : > { %v9400_v59 = vadd.f32 %v4112_v51, %v4094_v31 }
 0x2e8   : > { %v7501_v33 = vpack.i.bf16 %v9392_v39, %v9400_v59  ;;  %v7506_v35 = vpack.i.bf16 %v9400_v59, %v9356_v57 }
 0x2eb   : > { %v4569_v37 = vpop.f32.mrf.mxu0 }
 0x2ec   : > { %v4572_v2 = vmul.f32 0.03608439, %v4569_v37 }
 0x2ee   : > { %v4573_v10 = vsel %vm4146_vm3, %v4572_v2, -inf }
 0x2ef   : > { %4574 = vmax.xlane.f32.xlu1 %v4573_v10 }
 0x310   : > { %v7468_v25 = vpop.permute.xlu1 %7467 }
 0x311   : > { %v7470_v24 = vunpack.i.h.bf16 %v7468_v25  ;;  %v7469_v17 = vunpack.i.l.bf16 %v7468_v25 }
 0x313   : > { %v4244_v8 = vpop.f32.mrf.mxu2  ;;  %v4293_v12 = vsel %vm4207_vm1, %v7469_v17, %v7470_v24 }
 0x314   : > { %v4247_v20 = vmul.f32 0.03608439, %v4244_v8  ;;  %4313 = vmatpush.msra.mxu3 %v4293_v12 }
 0x316   : > { %v4248_v40 = vsel %vm4146_vm3, %v4247_v20, -inf }
 0x317   : > { %4249 = vmax.xlane.f32.xlu1 %v4248_v40 }
 0x33a   : > { %v4361_v36 = vpop.f32.mrf.mxu2 }
 0x33b   : > { %v4364_v32 = vmul.f32 0.03608439, %v4361_v36 }
 0x33d   : > { %v4365_v22 = vsel %vm4146_vm3, %v4364_v32, -inf }
 0x33e   : > { %4366 = vmax.xlane.f32.xlu2 %v4365_v22 }
 0x342   : > { %v4463_v26 = vpop.f32.mrf.mxu2 }
 0x343   : > { %v4466_v23 = vmul.f32 0.03608439, %v4463_v26  ;;  %v4149_v5 = vpop.xlane.xlu0 %4148 }
 0x344   : > { %v4150_v30 = vsub.f32 %v4145_v15, %v4149_v5 }
 0x345   : > { %v4467_v28 = vsel %vm4146_vm3, %v4466_v23, -inf }
 0x346   : > { %4468 = vmax.xlane.f32.xlu2 %v4467_v28  ;;  %v4151_v42 = vmul.f32 1.442695, %v4150_v30 }
 0x348   : > { %7516 = vpow2.f32 %v4151_v42 }
 0x34c   : > { %v4669_v29 = vpop.f32.mrf.mxu2 }
 0x34d   : > { %v9420_v50 = vmul.f32 0.03608439, %v4669_v29 }
 0x34e   : > { %v9411_v1 = vpop.eup %7516 }
 0x34f   : > { %v4153_v19 = vsel %vm4146_vm3, %v9411_v1, 0.0  ;;  %v4673_v41 = vsel %vm4146_vm3, %v9420_v50, -inf }
 0x350   : > { %4154 = vadd.xlane.f32.xlu1 %v4153_v19 }
 0x355   : > { %v4887_v13 = vpop.f32.mrf.mxu2 }
 0x356   : > { %v9415_v43 = vmul.f32 0.03608439, %v4887_v13 }
 0x358   : > { %v4891_v4 = vsel %vm4146_vm3, %v9415_v43, -inf }
 0x359   : > { %4892 = vmax.xlane.f32.xlu2 %v4891_v4 }
 0x35d   : > { %v4785_v56 = vpop.f32.mrf.mxu0 }
 0x35e   : > { %v4788_v44 = vmul.f32 0.03608439, %v4785_v56 }
 0x360   : > { %v4789_v15 = vsel %vm4146_vm3, %v4788_v44, -inf }
 0x361   : > { %4790 = vmax.xlane.f32.xlu0 %v4789_v15 }
 0x362   : > { %v4575_v47 = vpop.xlane.xlu1 %4574 }
 0x363   : > { %v4576_v38 = vsub.f32 %v4572_v2, %v4575_v47 }
 0x365   : > { %v4577_v6 = vmul.f32 1.442695, %v4576_v38 }
 0x369   : > { %4674 = vmax.xlane.f32.xlu0 %v4673_v41  ;;  %7482 = vrot.lane.b32.xlu1 %v7481_v46, %s7814_s20 }
 0x37d   : > { %7472 = vrot.lane.b32.xlu0 %v7471_v9, %s7813_s16 }
 0x38a   : > { %v4250_v7 = vpop.xlane.xlu1 %4249 }
 0x38b   : > { %v4251_v61 = vsub.f32 %v4247_v20, %v4250_v7 }
 0x38d   : > { %v4252_v54 = vmul.f32 1.442695, %v4251_v61 }
 0x38f   : > { %7518 = vpow2.f32 %v4252_v54 }
 0x390   : > { %7520 = vpow2.f32 %v4577_v6 }
 0x395   : > { %v9432_v16 = vpop.eup %7518 }
 0x396   : > { %v4254_v14 = vsel %vm4146_vm3, %v9432_v16, 0.0  ;;  %v9436_v46 = vpop.eup %7520 }
 0x397   : > { %4255 = vadd.xlane.f32.xlu2 %v4254_v14  ;;  %v4579_v21 = vsel %vm4146_vm3, %v9436_v46, 0.0 }
 0x3a7   : > { %4580 = vadd.xlane.f32.xlu0 %v4579_v21 }
 0x3af   : > { %7477 = vrot.lane.b32.xlu2 %v7476_v0, %s7814_s20 }
 0x3b1   : > { %v4367_v52 = vpop.xlane.xlu2 %4366 }
 0x3b2   : > { %v4368_v9 = vsub.f32 %v4364_v32, %v4367_v52 }
 0x3b4   : > { %v4369_v18 = vmul.f32 1.442695, %v4368_v9 }
 0x3b6   : > { %7522 = vpow2.f32 %v4369_v18 }
 0x3b9   : > { %v4469_v53 = vpop.xlane.xlu2 %4468 }
 0x3ba   : > { %v4470_v62 = vsub.f32 %v4466_v23, %v4469_v53 }
 0x3bc   : > { %v9444_v58 = vpop.eup %7522  ;;  %v4471_v31 = vmul.f32 1.442695, %v4470_v62 }
 0x3bd   : > { %v4371_v51 = vsel %vm4146_vm3, %v9444_v58, 0.0 }
 0x3be   : > { %7524 = vpow2.f32 %v4471_v31  ;;  %4372 = vadd.xlane.f32.xlu0 %v4371_v51 }
 0x3c3   : > { %v4155_v0 = vpop.xlane.xlu1 %4154 }
 0x3c4   : > { %v9448_v37 = vpop.eup %7524  ;;  %7526 = vrcp.f32 %v4155_v0  ;;  %v4167_v24 = vand.u32 2147483648, %v4155_v0  ;;  %v4165_v8 = vand.u32 2147483647, %v4155_v0  ;;  %vm4161_vm5 = vweird.f32 %v4155_v0 }
 0x3c5   : > { %v4473_v48 = vsel %vm4146_vm3, %v9448_v37, 0.0 }
 0x3c6   : > { %4474 = vadd.xlane.f32.xlu1 %v4473_v48  ;;  %v4168_v36 = vor.u32 1.1754944e-38, %v4167_v24  ;;  %vm4166_vm7 = vcmp.eq.f32.partialorder %v4165_v8, 8.507059e+37 }
 0x3ca   : > { %v7527_v2 = vpop.eup %7526 }
 0x3cb   : > { %v4157_v10 = vmul.f32 %v7527_v2, %v4155_v0  ;;  %vm4162_vm4 = vweird.f32 %v7527_v2 }
 0x3cc   : > { %vm4163_vm6 = vmor %vm4161_vm5, %vm4162_vm4 }
 0x3cd   : > { %v4158_v25 = vsub.f32 1.0, %v4157_v10 }
 0x3cf   : > { %v4159_v17 = vmul.f32 %v7527_v2, %v4158_v25 }
 0x3d1   : > { %v4160_v12 = vadd.f32 %v7527_v2, %v4159_v17 }
 0x3d2   : > { %7487 = vrot.lane.b32.xlu0 %v7486_v45, %s7815_s10  ;;  %v4893_v45 = vpop.xlane.xlu2 %4892 }
 0x3d3   : > { %v4164_v32 = vsel %vm4163_vm6, %v7527_v2, %v4160_v12  ;;  %v4894_v29 = vsub.f32 %v9415_v43, %v4893_v45 }
 0x3d4   : > { %v4791_v20 = vpop.xlane.xlu0 %4790  ;;  %v4169_v26 = vsel %vm4166_vm7, %v4168_v36, %v4164_v32 }
 0x3d5   : > { %v4792_v40 = vsub.f32 %v4788_v44, %v4791_v20  ;;  %v4170_v23 = vmul.f32 %v9411_v1, %v4169_v26  ;;  %v4895_v13 = vmul.f32 1.442695, %v4894_v29 }
 0x3d7   : > { %v4793_v22 = vmul.f32 1.442695, %v4792_v40  ;;  %v4171_v63 = vsel %vm4146_vm3, %v4170_v23, 0.0 }
 0x3d8   : > { %v4172_v11 = vrot.slane %v4171_v63, 4 }
 0x3d9   : > { %7528 = vpow2.f32 %v4793_v22 }
 0x3da   : > { %7497 = vrot.lane.b32.xlu0 %v7496_v60, %s7813_s16  ;;  %v4173_v30 = vadd.f32 %v4172_v11, %v4171_v63 }
 0x3dc   : > { %v4675_v28 = vpop.xlane.xlu0 %4674  ;;  %v4174_v55 = vrot.slane %v4173_v30, 2 }
 0x3dd   : > { %v4676_v5 = vsub.f32 %v9420_v50, %v4675_v28 }
 0x3de   : > { %v4175_v1 = vadd.f32 %v4174_v55, %v4173_v30 }
 0x3df   : > { %v9463_v42 = vpop.eup %7528  ;;  %v4677_v19 = vmul.f32 1.442695, %v4676_v5  ;;  %7492 = vrot.lane.b32.xlu1 %v7491_v34, %s7813_s16 }
 0x3e0   : > { %v4795_v60 = vsel %vm4146_vm3, %v9463_v42, 0.0  ;;  %v4176_v43 = vrot.slane %v4175_v1, 1 }
 0x3e1   : > { %7530 = vpow2.f32 %v4677_v19  ;;  %4796 = vadd.xlane.f32.xlu2 %v4795_v60 }
 0x3e2   : > { %7507 = vrot.lane.b32.xlu0 %v7506_v35, %s7814_s20  ;;  %v4177_v4 = vadd.f32 %v4176_v43, %v4175_v1  ;;  %7532 = vpow2.f32 %v4895_v13 }
 0x3e4   : > { %v4178_v49 = vmul.f32 0.125, %v4177_v4 }
 0x3e6   : > { %6898 = vmatmul.msk.f32.vlgmr.msrb.gmra.mxu3 %vm4146_vm3, %v4178_v49 }
 0x3e7   : > { %v9476_v56 = vpop.eup %7530  ;;  %7502 = vrot.lane.b32.xlu1 %v7501_v33, %s7815_s10  ;;  %v7483_v33 = vpop.permute.xlu1 %7482 }
 0x3e8   : > { %v4679_v34 = vsel %vm4146_vm3, %v9476_v56, 0.0  ;;  %v9485_v57 = vpop.eup %7532  ;;  %v7485_v54 = vunpack.i.h.bf16 %v7483_v33  ;;  %v7484_v38 = vunpack.i.l.bf16 %v7483_v33 }
 0x3e9   : > { %4680 = vadd.xlane.f32.xlu2 %v4679_v34  ;;  %v4897_v50 = vsel %vm4146_vm3, %v9485_v57, 0.0 }
 0x3ea   : > { %v4407_v27 = vsel %vm4324_vm2, %v7484_v38, %v7485_v54 }
 0x3ef   : > { %v7473_v35 = vpop.permute.xlu0 %7472 }
 0x3f0   : > { %v7475_v44 = vunpack.i.h.bf16 %v7473_v35  ;;  %v7474_v15 = vunpack.i.l.bf16 %v7473_v35 }
 0x3f1   : > { %4898 = vadd.xlane.f32.xlu2 %v4897_v50 }
 0x3f2   : > { %v4292_v41 = vsel %vm4207_vm1, %v7474_v15, %v7475_v44 }
 0x3f3   : > { %4314 = vmatpush.msra.mxu3 %v4292_v41 }
 0x409   : > { %7512 = vrot.lane.b32.xlu2 %v7511_v3, %s7814_s20 }
 0x40a   : > { %v4256_v59 = vpop.xlane.xlu2 %4255 }
 0x40b   : > { %7534 = vrcp.f32 %v4256_v59  ;;  %v4268_v52 = vand.u32 2147483648, %v4256_v59  ;;  %v4266_v53 = vand.u32 2147483647, %v4256_v59  ;;  %vm4262_vm9 = vweird.f32 %v4256_v59 }
 0x40d   : > { %v4269_v3 = vor.u32 1.1754944e-38, %v4268_v52  ;;  %vm4267_vm11 = vcmp.eq.f32.partialorder %v4266_v53, 8.507059e+37 }
 0x411   : > { %v7535_v47 = vpop.eup %7534 }
 0x412   : > { %v4258_v7 = vmul.f32 %v7535_v47, %v4256_v59  ;;  %v7478_v61 = vpop.permute.xlu2 %7477  ;;  %vm4263_vm8 = vweird.f32 %v7535_v47 }
 0x413   : > { %v7480_v14 = vunpack.i.h.bf16 %v7478_v61  ;;  %v7479_v6 = vunpack.i.l.bf16 %v7478_v61  ;;  %vm4264_vm10 = vmor %vm4262_vm9, %vm4263_vm8 }
 0x414   : > { %v4259_v21 = vsub.f32 1.0, %v4258_v7 }
 0x415   : > { %v4408_v9 = vsel %vm4324_vm2, %v7479_v6, %v7480_v14 }
 0x416   : > { %v4260_v18 = vmul.f32 %v7535_v47, %v4259_v21  ;;  %4428 = vmatpush.msrb.mxu3 %v4408_v9 }
 0x418   : > { %v4261_v39 = vadd.f32 %v7535_v47, %v4260_v18  ;;  %4429 = vmatpush.msrb.mxu3 %v4407_v27 }
 0x41a   : > { %v4265_v62 = vsel %vm4264_vm10, %v7535_v47, %v4261_v39  ;;  %v4581_v51 = vpop.xlane.xlu0 %4580 }
 0x41b   : > { %v4270_v31 = vsel %vm4267_vm11, %v4269_v3, %v4265_v62  ;;  %7536 = vrcp.f32 %v4581_v51  ;;  %v4593_v12 = vand.u32 2147483648, %v4581_v51  ;;  %v4591_v32 = vand.u32 2147483647, %v4581_v51 }
 0x41c   : > { %v4271_v48 = vmul.f32 %v9432_v16, %v4270_v31  ;;  %vm4587_vm13 = vweird.f32 %v4581_v51 }
 0x41d   : > { %v4594_v16 = vor.u32 1.1754944e-38, %v4593_v12  ;;  %vm4592_vm15 = vcmp.eq.f32.partialorder %v4591_v32, 8.507059e+37 }
 0x41e   : > { %v4272_v0 = vsel %vm4146_vm3, %v4271_v48, 0.0 }
 0x41f   : > { %v4273_v2 = vrot.slane %v4272_v0, 4 }
 0x421   : > { %v4274_v10 = vadd.f32 %v4273_v2, %v4272_v0  ;;  %v7537_v25 = vpop.eup %7536 }
 0x422   : > { %v4583_v17 = vmul.f32 %v7537_v25, %v4581_v51  ;;  %vm4588_vm12 = vweird.f32 %v7537_v25 }
 0x423   : > { %v4275_v24 = vrot.slane %v4274_v10, 2  ;;  %vm4589_vm14 = vmor %vm4587_vm13, %vm4588_vm12 }
 0x424   : > { %v4584_v20 = vsub.f32 1.0, %v4583_v17 }
 0x425   : > { %v4276_v8 = vadd.f32 %v4275_v24, %v4274_v10 }
 0x426   : > { %v4585_v36 = vmul.f32 %v7537_v25, %v4584_v20 }
 0x427   : > { %v4277_v40 = vrot.slane %v4276_v8, 1 }
 0x428   : > { %v4586_v22 = vadd.f32 %v7537_v25, %v4585_v36 }
 0x429   : > { %v4278_v26 = vadd.f32 %v4277_v40, %v4276_v8 }
 0x42a   : > { %v4590_v23 = vsel %vm4589_vm14, %v7537_v25, %v4586_v22 }
 0x42b   : > { %v4279_v63 = vmul.f32 0.125, %v4278_v26  ;;  %v4595_v11 = vsel %vm4592_vm15, %v4594_v16, %v4590_v23 }
 0x42c   : > { %v4596_v45 = vmul.f32 %v9436_v46, %v4595_v11 }
 0x42d   : > { %6902 = vmatmul.msk.f32.vlgmr.msra.gmra.mxu3 %vm4146_vm3, %v4279_v63 }
 0x42e   : > { %v4597_v28 = vsel %vm4146_vm3, %v4596_v45, 0.0 }
 0x42f   : > { %v4598_v5 = vrot.slane %v4597_v28, 4 }
 0x431   : > { %v4599_v30 = vadd.f32 %v4598_v5, %v4597_v28  ;;  %v4373_v29 = vpop.xlane.xlu0 %4372 }
 0x432   : > { %7538 = vrcp.f32 %v4373_v29  ;;  %v4385_v35 = vand.u32 2147483648, %v4373_v29  ;;  %v4383_v44 = vand.u32 2147483647, %v4373_v29  ;;  %vm4379_vm5 = vweird.f32 %v4373_v29 }
 0x433   : > { %v4600_v19 = vrot.slane %v4599_v30, 2 }
 0x434   : > { %v4386_v41 = vor.u32 1.1754944e-38, %v4385_v35  ;;  %vm4384_vm7 = vcmp.eq.f32.partialorder %v4383_v44, 8.507059e+37 }
 0x435   : > { %v4601_v55 = vadd.f32 %v4600_v19, %v4599_v30 }
 0x437   : > { %v4602_v60 = vrot.slane %v4601_v55, 1 }
 0x438   : > { %v7539_v1 = vpop.eup %7538 }
 0x439   : > { %v4375_v13 = vmul.f32 %v7539_v1, %v4373_v29  ;;  %v4475_v43 = vpop.xlane.xlu1 %4474  ;;  %v4603_v4 = vadd.f32 %v4602_v60, %v4601_v55  ;;  %vm4380_vm4 = vweird.f32 %v7539_v1 }
 0x43a   : > { %7540 = vrcp.f32 %v4475_v43  ;;  %vm4381_vm6 = vmor %vm4379_vm5, %vm4380_vm4  ;;  %v4485_v54 = vand.u32 2147483647, %v4475_v43  ;;  %v4487_v38 = vand.u32 2147483648, %v4475_v43  ;;  %vm4481_vm9 = vweird.f32 %v4475_v43 }
 0x43b   : > { %v4376_v49 = vsub.f32 1.0, %v4375_v13  ;;  %v4604_v34 = vmul.f32 0.125, %v4603_v4 }
 0x43c   : > { %v4488_v39 = vor.u32 1.1754944e-38, %v4487_v38  ;;  %vm4486_vm11 = vcmp.eq.f32.partialorder %v4485_v54, 8.507059e+37 }
 0x43d   : > { %v4377_v46 = vmul.f32 %v7539_v1, %v4376_v49  ;;  %6914 = vmatmul.msk.f32.vlgmr.msra.gmra.mxu1 %vm4146_vm3, %v4604_v34 }
 0x43f   : > { %v4378_v15 = vadd.f32 %v7539_v1, %v4377_v46 }
 0x440   : > { %v7541_v50 = vpop.eup %7540 }
 0x441   : > { %v4382_v59 = vsel %vm4381_vm6, %v7539_v1, %v4378_v15  ;;  %v4477_v33 = vmul.f32 %v7541_v50, %v4475_v43  ;;  %vm4482_vm8 = vweird.f32 %v7541_v50 }
 0x442   : > { %v4387_v47 = vsel %vm4384_vm7, %v4386_v41, %v4382_v59  ;;  %vm4483_vm10 = vmor %vm4481_vm9, %vm4482_vm8 }
 0x443   : > { %v4388_v7 = vmul.f32 %v9444_v58, %v4387_v47  ;;  %v4478_v61 = vsub.f32 1.0, %v4477_v33 }
 0x444   : > { %v7488_v14 = vpop.permute.xlu0 %7487 }
 0x445   : > { %v4389_v6 = vsel %vm4146_vm3, %v4388_v7, 0.0  ;;  %v4479_v21 = vmul.f32 %v7541_v50, %v4478_v61  ;;  %v7489_v52 = vunpack.i.l.bf16 %v7488_v14  ;;  %v7490_v53 = vunpack.i.h.bf16 %v7488_v14 }
 0x446   : > { %v4390_v9 = vrot.slane %v4389_v6, 4 }
 0x447   : > { %v4480_v18 = vadd.f32 %v7541_v50, %v4479_v21  ;;  %4522 = vmatpush.msra.mxu3 %v7489_v52 }
 0x448   : > { %v4391_v27 = vadd.f32 %v4390_v9, %v4389_v6 }
 0x449   : > { %v4484_v3 = vsel %vm4483_vm10, %v7541_v50, %v4480_v18  ;;  %4523 = vmatpush.msra.mxu3 %v7490_v53 }
 0x44a   : > { %v4392_v58 = vrot.slane %v4391_v27, 2  ;;  %v4489_v62 = vsel %vm4486_vm11, %v4488_v39, %v4484_v3 }
 0x44b   : > { %v4490_v31 = vmul.f32 %v9448_v37, %v4489_v62 }
 0x44c   : > { %v4393_v51 = vadd.f32 %v4392_v58, %v4391_v27  ;;  %v7498_v48 = vpop.permute.xlu0 %7497 }
 0x44d   : > { %v4491_v0 = vsel %vm4146_vm3, %v4490_v31, 0.0  ;;  %v7500_v17 = vunpack.i.h.bf16 %v7498_v48  ;;  %v7499_v8 = vunpack.i.l.bf16 %v7498_v48 }
 0x44e   : > { %v4394_v2 = vrot.slane %v4393_v51, 1  ;;  %v4492_v10 = vrot.slane %v4491_v0, 4 }
 0x44f   : > { %v4717_v45 = vsel %vm4207_vm1, %v7499_v8, %v7500_v17 }
 0x450   : > { %v4493_v25 = vadd.f32 %v4492_v10, %v4491_v0  ;;  %v4395_v24 = vadd.f32 %v4394_v2, %v4393_v51 }
 0x451   : > { %v7493_v20 = vpop.permute.xlu1 %7492 }
 0x452   : > { %v4494_v12 = vrot.slane %v4493_v25, 2  ;;  %v7495_v40 = vunpack.i.h.bf16 %v7493_v20  ;;  %v7494_v36 = vunpack.i.l.bf16 %v7493_v20  ;;  %v4396_v32 = vmul.f32 0.125, %v4395_v24 }
 0x454   : > { %v4495_v22 = vadd.f32 %v4494_v12, %v4493_v25  ;;  %v4797_v26 = vpop.xlane.xlu2 %4796  ;;  %v7508_v16 = vpop.permute.xlu0 %7507  ;;  %6906 = vmatmul.msk.f32.vlgmr.msrb.gmra.mxu3 %vm4146_vm3, %v4396_v32  ;;  %v4718_v37 = vsel %vm4207_vm1, %v7494_v36, %v7495_v40 }
 0x455   : > { %7542 = vrcp.f32 %v4797_v26  ;;  %4738 = vmatpush.msrb.mxu3 %v4718_v37  ;;  %v7510_v63 = vunpack.i.h.bf16 %v7508_v16  ;;  %v7509_v11 = vunpack.i.l.bf16 %v7508_v16  ;;  %v4809_v4 = vand.u32 2147483648, %v4797_v26 }
 0x456   : > { %v4496_v23 = vrot.slane %v4495_v22, 1  ;;  %v4807_v34 = vand.u32 2147483647, %v4797_v26  ;;  %vm4803_vm13 = vweird.f32 %v4797_v26 }
 0x457   : > { %4739 = vmatpush.msrb.mxu3 %v4717_v45  ;;  %v4832_v28 = vsel %vm4324_vm2, %v7509_v11, %v7510_v63  ;;  %v4810_v44 = vor.u32 1.1754944e-38, %v4809_v4 }
 0x458   : > { %v4497_v5 = vadd.f32 %v4496_v23, %v4495_v22  ;;  %4852 = vmatpush.msrb.mxu1 %v4832_v28  ;;  %vm4808_vm15 = vcmp.eq.f32.partialorder %v4807_v34, 8.507059e+37 }
 0x459   : > { %v7503_v30 = vpop.permute.xlu1 %7502 }
 0x45a   : > { %v7504_v29 = vunpack.i.l.bf16 %v7503_v30  ;;  %v4498_v19 = vmul.f32 0.125, %v4497_v5  ;;  %v7505_v13 = vunpack.i.h.bf16 %v7503_v30 }
 0x45b   : > { %v7543_v55 = vpop.eup %7542 }
 0x45c   : > { %v4799_v60 = vmul.f32 %v7543_v55, %v4797_v26  ;;  %v4681_v1 = vpop.xlane.xlu2 %4680  ;;  %6910 = vmatmul.msk.f32.vlgmr.msra.gmra.mxu3 %vm4146_vm3, %v4498_v19  ;;  %vm4804_vm12 = vweird.f32 %v7543_v55 }
 0x45d   : > { %7544 = vrcp.f32 %v4681_v1  ;;  %4946 = vmatpush.msra.mxu3 %v7504_v29  ;;  %vm4805_vm14 = vmor %vm4803_vm13, %vm4804_vm12  ;;  %v4693_v7 = vand.u32 2147483648, %v4681_v1  ;;  %v4691_v38 = vand.u32 2147483647, %v4681_v1  ;;  %vm4687_vm5 = vweird.f32 %v4681_v1 }
 0x45e   : > { %v4800_v43 = vsub.f32 1.0, %v4799_v60  ;;  %vm4985_vm12 = vcmask 1041408   ;;  %vm4987_vm13 = vcmask 1043456  }
 0x45f   : > { %4947 = vmatpush.msra.mxu3 %v7505_v13  ;;  %v4694_v9 = vor.u32 1.1754944e-38, %v4693_v7  ;;  %vm4692_vm7 = vcmp.eq.f32.partialorder %v4691_v38, 8.507059e+37 }
 0x460   : > { %v4801_v49 = vmul.f32 %v7543_v55, %v4800_v43 }
 0x462   : > { %v4802_v35 = vadd.f32 %v7543_v55, %v4801_v49 }
 0x463   : > { %v7545_v46 = vpop.eup %7544 }
 0x464   : > { %v4806_v15 = vsel %vm4805_vm14, %v7543_v55, %v4802_v35  ;;  %v4683_v50 = vmul.f32 %v7545_v46, %v4681_v1  ;;  %v4899_v41 = vpop.xlane.xlu2 %4898  ;;  %vm4688_vm4 = vweird.f32 %v7545_v46 }
 0x465   : > { %v4811_v59 = vsel %vm4808_vm15, %v4810_v44, %v4806_v15  ;;  %7546 = vrcp.f32 %v4899_v41  ;;  %vm4689_vm6 = vmor %vm4687_vm5, %vm4688_vm4  ;;  %v4911_v48 = vand.u32 2147483648, %v4899_v41  ;;  %v4909_v25 = vand.u32 2147483647, %v4899_v41 }
 0x466   : > { %v4812_v33 = vmul.f32 %v9463_v42, %v4811_v59  ;;  %v4684_v47 = vsub.f32 1.0, %v4683_v50  ;;  %vm4905_vm9 = vweird.f32 %v4899_v41 }
 0x467   : > { %v4912_v12 = vor.u32 1.1754944e-38, %v4911_v48  ;;  %vm4910_vm11 = vcmp.eq.f32.partialorder %v4909_v25, 8.507059e+37 }
 0x468   : > { %v4813_v61 = vsel %vm4146_vm3, %v4812_v33, 0.0  ;;  %v4685_v54 = vmul.f32 %v7545_v46, %v4684_v47 }
 0x469   : > { %v4814_v14 = vrot.slane %v4813_v61, 4 }
 0x46a   : > { %v4686_v6 = vadd.f32 %v7545_v46, %v4685_v54 }
 0x46b   : > { %v7547_v21 = vpop.eup %7546  ;;  %v4815_v52 = vadd.f32 %v4814_v14, %v4813_v61 }
 0x46c   : > { %v4690_v18 = vsel %vm4689_vm6, %v7545_v46, %v4686_v6  ;;  %v4901_v53 = vmul.f32 %v7547_v21, %v4899_v41  ;;  %v7513_v27 = vpop.permute.xlu2 %7512  ;;  %vm4906_vm8 = vweird.f32 %v7547_v21 }
 0x46d   : > { %v4816_v39 = vrot.slane %v4815_v52, 2  ;;  %v4695_v42 = vsel %vm4692_vm7, %v4694_v9, %v4690_v18  ;;  %v7515_v3 = vunpack.i.h.bf16 %v7513_v27  ;;  %v7514_v58 = vunpack.i.l.bf16 %v7513_v27  ;;  %vm4907_vm10 = vmor %vm4905_vm9, %vm4906_vm8 }
 0x46e   : > { %v4696_v62 = vmul.f32 %v9476_v56, %v4695_v42  ;;  %v4902_v31 = vsub.f32 1.0, %v4901_v53 }
 0x46f   : > { %v4817_v51 = vadd.f32 %v4816_v39, %v4815_v52  ;;  %v4831_v0 = vsel %vm4324_vm2, %v7514_v58, %v7515_v3 }
 0x470   : > { %v4697_v2 = vsel %vm4146_vm3, %v4696_v62, 0.0  ;;  %v4903_v10 = vmul.f32 %v7547_v21, %v4902_v31  ;;  %4853 = vmatpush.msrb.mxu1 %v4831_v0 }
 0x471   : > { %v4818_v24 = vrot.slane %v4817_v51, 1  ;;  %v4698_v17 = vrot.slane %v4697_v2, 4 }
 0x472   : > { %v4904_v8 = vadd.f32 %v7547_v21, %v4903_v10 }
 0x473   : > { %v4699_v20 = vadd.f32 %v4698_v17, %v4697_v2  ;;  %v4819_v40 = vadd.f32 %v4818_v24, %v4817_v51 }
 0x474   : > { %v4908_v56 = vsel %vm4907_vm10, %v7547_v21, %v4904_v8 }
 0x475   : > { %v4700_v36 = vrot.slane %v4699_v20, 2  ;;  %v4913_v32 = vsel %vm4910_vm11, %v4912_v12, %v4908_v56  ;;  %v4820_v22 = vmul.f32 0.125, %v4819_v40 }
 0x476   : > { %v4914_v26 = vmul.f32 %v9485_v57, %v4913_v32  ;;  %v4199_v57 = vpop.f32.mrf.mxu3 }
 0x477   : > { %v4701_v16 = vadd.f32 %v4700_v36, %v4699_v20  ;;  %6922 = vmatmul.msk.f32.vlgmr.msrb.gmra.mxu1 %vm4146_vm3, %v4820_v22 }
 0x478   : > { %v4915_v37 = vsel %vm4146_vm3, %v4914_v26, 0.0 }
 0x479   : > { %v4702_v23 = vrot.slane %v4701_v16, 1  ;;  %v4916_v63 = vrot.slane %v4915_v37, 4 }
 0x47b   : > { %v4917_v11 = vadd.f32 %v4916_v63, %v4915_v37  ;;  %v4703_v45 = vadd.f32 %v4702_v23, %v4701_v16 }
 0x47d   : > { %v4918_v28 = vrot.slane %v4917_v11, 2  ;;  %v4704_v5 = vmul.f32 0.125, %v4703_v45 }
 0x47f   : > { %v4919_v30 = vadd.f32 %v4918_v28, %v4917_v11  ;;  %6918 = vmatmul.msk.f32.vlgmr.msrb.gmra.mxu3 %vm4146_vm3, %v4704_v5 }
 0x481   : > { %v4920_v29 = vrot.slane %v4919_v30, 1 }
 0x483   : > { %v4921_v19 = vadd.f32 %v4920_v29, %v4919_v30 }
 0x485   : > { %v4922_v55 = vmul.f32 0.125, %v4921_v19 }
 0x487   : > { %6926 = vmatmul.msk.f32.vlgmr.msra.gmra.mxu3 %vm4146_vm3, %v4922_v55  ;;  %vm4976_vm3 = vcmask 1040384  }
 0x4b0   : > { %v4316_v60 = vpop.f32.mrf.mxu3 }
 0x4b1   : > { %4529 = vrot.lane.b32.xlu1 %v4316_v60, %s7815_s10 }
 0x4ba   : > { %v4625_v43 = vpop.f32.mrf.mxu1 }
 0x4d7   : > { %v4431_v1 = vpop.f32.mrf.mxu3 }
 0x4d8   : > { %4533 = vrot.lane.b32.xlu0 %v4431_v1, %s7814_s20 }
 0x4df   : > { %v4525_v13 = vpop.f32.mrf.mxu3 }
 0x4e0   : > { %4537 = vrot.lane.b32.xlu2 %v4525_v13, %s7813_s16 }
 0x4f4   : > { %v4855_v4 = vpop.f32.mrf.mxu1 }
 0x4f5   : > { %4957 = vrot.lane.b32.xlu0 %v4855_v4, %s7814_s20 }
 0x502   : > { %v4741_v49 = vpop.f32.mrf.mxu3 }
 0x503   : > { %4953 = vrot.lane.b32.xlu1 %v4741_v49, %s7815_s10 }
 0x50a   : > { %v4949_v34 = vpop.f32.mrf.mxu3 }
 0x50b   : > { %4961 = vrot.lane.b32.xlu2 %v4949_v34, %s7813_s16 }
 0x523   : > { %v4530_v44 = vpop.permute.xlu1 %4529 }
 0x524   : > { %v4540_v52 = vsel %vm4115_vm0, %v4199_v57, %v4530_v44 }
 0x53a   : > { %v4538_v46 = vpop.permute.xlu2 %4537 }
 0x54a   : > { %v4534_v35 = vpop.permute.xlu0 %4533 }
 0x54b   : > { %v4542_v61 = vsel %vm4207_vm1, %v4534_v35, %v4538_v46  ;;  %v4541_v14 = vsel %vm4324_vm2, %v4530_v44, %v4534_v35 }
 0x565   : > { %v4962_v50 = vpop.permute.xlu2 %4961 }
 0x567   : > { %v4958_v15 = vpop.permute.xlu0 %4957 }
 0x568   : > { %v4966_v41 = vsel %vm4207_vm1, %v4958_v15, %v4962_v50 }
 0x569   : > { %v4972_v59 = vrot.slane %v4966_v41, 7 }
 0x56b   : > { %v4979_v6 = vsel %vm4976_vm3, %v4542_v61, %v4972_v59 }
 0x56c   : > { %v4984_v18 = vrot.slane %v4979_v6, 4 }
 0x575   : > { %v4954_v33 = vpop.permute.xlu1 %4953 }
 0x576   : > { %v4964_v47 = vsel %vm4115_vm0, %v4625_v43, %v4954_v33  ;;  %v4965_v7 = vsel %vm4324_vm2, %v4954_v33, %v4958_v15 }
 0x577   : > { %v4970_v54 = vrot.slane %v4964_v47, 7  ;;  %v4971_v38 = vrot.slane %v4965_v7, 7 }
 0x579   : > { %v4978_v21 = vsel %vm4976_vm3, %v4541_v14, %v4971_v38  ;;  %v4977_v53 = vsel %vm4976_vm3, %v4540_v52, %v4970_v54 }
 0x57a   : > { %v4983_v9 = vrot.slane %v4978_v21, 6 }
 0x57c   : > { %v4986_v27 = vsel %vm4985_vm12, %v4977_v53, %v4983_v9 }
 0x57d   : > { %v4988_v39 = vsel %vm4987_vm13, %v4986_v27, %v4984_v18 }
 0x57e   : > { %4990 = vst [vmem:[%s413_s25] sm:$0x3f] %v4988_v39 }
 0x57f   : > { %7756 = shalt.err (!%p7753_p10)
}
 0x580   : > { %7391 = dma.vmem_to_hbm [thread:$0]  (%p7903_p11), %s5006_s17, 96, %s5008_s26, %s4992_s21  }
 0x581 PF: > { %s9644_s1 = sld [smem:[#allocation16_spill]]  ;;  %p9646_p0 = scmp.ge.s32.totalorder %s7803_s24, 2 }
 0x583   : > { %p7414_p8 = pnand %p9646_p0, %p7907_p12 }
 0x585   : > { %p7415_p3 = pneg %p7414_p8 }
 0x587   : > { %s5019_s18 = sand.u32 1, %s9644_s1  }
 0x588   : > { %s5020_s2 = scalar_lea.sflag [#allocation4], %s5019_s18 }
 0x589   : > { %7786 = dma.done.wait (%p7415_p3), %s5020_s2, 96  }
 0x58a   : > { %7788 = vsyncadd (%p7415_p3), %s5020_s2, 4294967200  ;;  %s9647_s24 = sld [smem:[#allocation18_spill]]  ;;  %s9650_s21 = smov %s7795_s22 }
 0x58b   : > { %s9648_s16 = sld [smem:[#allocation17_spill]] }
 0x58c   : > { %s9649_s23 = sld [smem:[#allocation19_spill]] }
 0x590   : > { %p18_p4 = scmp.ge.s32.totalorder %s9647_s24, 4  }
 0x591   : > { %s9651_s22 = smov %s9648_s16 }
 0x592   :  { %20 = sbr.rel (!%p18_p4) target bundleno = 9 (0x9), region = 129 }
 0x597   :  { %5026 = vsyncpa [#allocation3], 1 }
 0x598   :  { %5028 = vsyncpa [#allocation3 + $0x1], 1 }
 0x599   :  { %5029 = vsyncpa [#allocation6], 1 }
 0x59a   :  { %5030 = vsyncpa [#allocation4], 1 }
 0x59b   :  { %5032 = vsyncpa [#allocation4 + $0x1], 1 }

</bundles_post_ra>
